<compile_context>
chip_gen: v7x
topology: tpu7x:2x2x1
jax: 0.10.0
libtpu: 0.0.40
codegen_flags: <defaults>
</compile_context>

<pallas_src>
from functools import partial

import jax
import jax.numpy as jnp
from jax.experimental import pallas as pl
from jax.experimental.pallas import tpu as pltpu

IN_DIM = 6400        # affine1 input features
HID = 200            # affine1 output features
NUM_ACTIONS = 2
OUT_PAD = 128        # lane-dense padded output width: [probs | value | zeros]
BATCH_TILE = 128     # batch tile for the large-B grid path
GRID_MIN_BATCH = 256 # switch to the batch grid at/above this batch size


def _pg_kernel(x_ref, w1_ref, b1_ref, wh_ref, bh_ref, out_ref, *, num_actions):
    # affine1: cast x to bf16 in-kernel, bf16 x / W1 on the MXU, f32 accumulate;
    # bias + ReLU on the VPU.
    x = x_ref[...].astype(jnp.bfloat16)
    h = jnp.dot(x, w1_ref[...], preferred_element_type=jnp.float32)
    h = jnp.maximum(h + b1_ref[...], 0.0)                                 # (B, HID) f32

    # Fused heads: lanes [0:A] are action logits, lane A is the state value,
    # remaining lanes are exactly zero (zero weights + zero bias).
    logits = jnp.dot(h, wh_ref[...],
                     preferred_element_type=jnp.float32) + bh_ref[...]    # (B, 128)

    lane = jax.lax.broadcasted_iota(jnp.int32, logits.shape, 1)
    act_mask = lane < num_actions

    # Numerically-stable softmax over the action lanes only.
    masked = jnp.where(act_mask, logits, jnp.float32(-1e30))
    m = jnp.max(masked, axis=-1, keepdims=True)
    e = jnp.where(act_mask, jnp.exp(logits - m), 0.0)
    denom = jnp.sum(e, axis=-1, keepdims=True)
    probs = e * pl.reciprocal(denom, approx=False)   # exact: one recip per row

    # Single lane-dense (B, 128) store: probs | value | zeros.
    out_ref[...] = jnp.where(lane == num_actions, logits, probs)


def prepare_params(w1, b1, wa, ba, wv, bv):
    """One-time (per parameter update) preparation, hoisted out of the forward.

    Weights are stored transposed w.r.t. PyTorch, i.e. (in, out): y = x @ W + b.
    Builds the bf16 copy of W1 and the fused lane-dense head weight/bias.
    """
    A = wa.shape[1]
    assert A + 1 <= OUT_PAD, "num_actions + 1 must fit in the 128-lane output"
    pad = OUT_PAD - (A + 1)

    w1_bf16 = w1.astype(jnp.bfloat16)                      # (6400, 200) bf16
    b1_f32 = b1.reshape(1, HID).astype(jnp.float32)        # (1, 200)    f32

    w_heads = jnp.concatenate(
        [wa.astype(jnp.float32), wv.astype(jnp.float32),
         jnp.zeros((HID, pad), jnp.float32)], axis=1)      # (200, 128)  f32
    b_heads = jnp.concatenate(
        [ba.reshape(1, A).astype(jnp.float32),
         bv.reshape(1, 1).astype(jnp.float32),
         jnp.zeros((1, pad), jnp.float32)], axis=1)        # (1, 128)    f32

    return {"w1": w1_bf16, "b1": b1_f32,
            "w_heads": w_heads, "b_heads": b_heads,
            "num_actions": A}


def pg_baseline_forward(x, params):
    """x: (B, 6400) f32.  params: output of prepare_params.
    Returns (probs (B, A), values (B, 1))."""
    B = x.shape[0]
    A = params["num_actions"]
    kernel = partial(_pg_kernel, num_actions=A)

    flops = 2 * B * IN_DIM * HID + 2 * B * HID * OUT_PAD
    bytes_accessed = (x.size * 4                         # x stream (f32)
                      + IN_DIM * HID * 2                 # W1 bf16
                      + HID * OUT_PAD * 4                # fused head weight
                      + (HID + OUT_PAD) * 4              # biases
                      + B * OUT_PAD * 4)                 # output
    cost = pl.CostEstimate(flops=flops,
                           transcendentals=B * OUT_PAD,
                           bytes_accessed=bytes_accessed)

    args = (x, params["w1"], params["b1"], params["w_heads"], params["b_heads"])

    if B < GRID_MIN_BATCH or B % BATCH_TILE != 0:
        # Small-B RL path: grid-less, everything resident in VMEM (~3.6 MB).
        out = pl.pallas_call(
            kernel,
            out_shape=jax.ShapeDtypeStruct((B, OUT_PAD), jnp.float32),
            in_specs=[pl.BlockSpec(memory_space=pltpu.MemorySpace.VMEM)] * 5,
            out_specs=pl.BlockSpec(memory_space=pltpu.MemorySpace.VMEM),
            cost_estimate=cost,
        )(*args)
    else:
        # Large-B path: batch grid.  Weights use constant index_maps so they
        # are DMA'd once and stay VMEM-resident across batch tiles; x / out
        # are streamed per tile; the batch axis is "parallel" so v7x's two
        # TensorCores split the batch.
        out = pl.pallas_call(
            kernel,
            out_shape=jax.ShapeDtypeStruct((B, OUT_PAD), jnp.float32),
            grid=(B // BATCH_TILE,),
            in_specs=[
                pl.BlockSpec((BATCH_TILE, IN_DIM), lambda b: (b, 0)),   # x tile
                pl.BlockSpec((IN_DIM, HID), lambda b: (0, 0)),          # W1 (resident)
                pl.BlockSpec((1, HID), lambda b: (0, 0)),               # b1
                pl.BlockSpec((HID, OUT_PAD), lambda b: (0, 0)),         # fused head W
                pl.BlockSpec((1, OUT_PAD), lambda b: (0, 0)),           # fused head b
            ],
            out_specs=pl.BlockSpec((BATCH_TILE, OUT_PAD), lambda b: (b, 0)),
            cost_estimate=cost,
            compiler_params=pltpu.CompilerParams(
                dimension_semantics=("parallel",),
                vmem_limit_bytes=32 * 1024 * 1024),
        )(*args)

    probs = out[:, :A]
    values = out[:, A:A + 1]
    return probs, values


def _init_linear(key, fan_in, fan_out):
    # Deterministic init mimicking torch.nn.Linear default:
    # uniform(-1/sqrt(fan_in), 1/sqrt(fan_in)); stored as (in, out).
    kw, kb = jax.random.split(key)
    bound = 1.0 / jnp.sqrt(float(fan_in))
    w = jax.random.uniform(kw, (fan_in, fan_out), jnp.float32, -bound, bound)
    b = jax.random.uniform(kb, (1, fan_out), jnp.float32, -bound, bound)
    return w, b


def _reference(x, w1, b1, wa, ba, wv, bv):
    h = jnp.maximum(x @ w1 + b1, 0.0)
    logits = h @ wa + ba
    probs = jax.nn.softmax(logits, axis=-1)
    values = h @ wv + bv
    return probs, values


if __name__ == "__main__":
    key = jax.random.PRNGKey(0)
    kx, k1, k2, k3, kxl = jax.random.split(key, 5)

    w1, b1 = _init_linear(k1, IN_DIM, HID)
    wa, ba = _init_linear(k2, HID, NUM_ACTIONS)
    wv, bv = _init_linear(k3, HID, 1)

    # One-time parameter prep (bf16 W1, fused lane-dense heads) — hoisted out
    # of the per-step forward.
    params = prepare_params(w1, b1, wa, ba, wv, bv)

    def check(x, atol_p=2e-3, atol_v=1e-3):
        probs, values = pg_baseline_forward(x, params)
        jax.block_until_ready((probs, values))
        # Reference in f32 on the same bf16-quantised x / W1.
        ref_probs, ref_values = _reference(
            x.astype(jnp.bfloat16).astype(jnp.float32),
            w1.astype(jnp.bfloat16).astype(jnp.float32), b1, wa, ba, wv, bv)
        assert probs.shape == (x.shape[0], NUM_ACTIONS)
        assert values.shape == (x.shape[0], 1)
        assert jnp.allclose(probs, ref_probs, atol=atol_p, rtol=2e-3)
        assert jnp.allclose(values, ref_values, atol=atol_v, rtol=2e-3)
        assert jnp.allclose(jnp.sum(probs, axis=-1), 1.0, atol=1e-3)

    # Small-batch RL path (grid-less), as used by select_action.
    x_small = jax.random.normal(kx, (2, IN_DIM), jnp.float32)
    check(x_small)

    # Large-batch path (parallel batch grid, VMEM-resident weights).
    x_large = jax.random.normal(kxl, (GRID_MIN_BATCH, IN_DIM), jnp.float32)
    check(x_large)

    print("KERNEL_OK")
</pallas_src>

<mosaic_0001>
module attributes {stable_mosaic.version = 11 : i64} {
  func.func @_pg_kernel(%arg0: memref<2x6400xf32, #tpu.memory_space<vmem>>, %arg1: memref<6400x200xbf16, #tpu.memory_space<vmem>>, %arg2: memref<1x200xf32, #tpu.memory_space<vmem>>, %arg3: memref<200x128xf32, #tpu.memory_space<vmem>>, %arg4: memref<1x128xf32, #tpu.memory_space<vmem>>, %arg5: memref<2x128xf32, #tpu.memory_space<vmem>>) attributes {dimension_semantics = [], scalar_prefetch = 0 : i64, scratch_operands = 0 : i64, tpu.core_type = #tpu.core_type<tc>} {
    %c0 = arith.constant 0 : index
    %c0_0 = arith.constant 0 : index
    %0 = vector.load %arg0[%c0, %c0_0] : memref<2x6400xf32, #tpu.memory_space<vmem>>, vector<2x6400xf32>
    %1 = arith.truncf %0 : vector<2x6400xf32> to vector<2x6400xbf16>
    %c0_1 = arith.constant 0 : index
    %c0_2 = arith.constant 0 : index
    %2 = vector.load %arg1[%c0_1, %c0_2] : memref<6400x200xbf16, #tpu.memory_space<vmem>>, vector<6400x200xbf16>
    %cst = arith.constant dense<0.000000e+00> : vector<2x200xf32>
    %3 = tpu.matmul %1, %2, %cst {dimension_numbers = #tpu.dot_dimension_numbers<[1], [0], [0], [1], [0, 0, 1, 1], [], []>} : vector<2x6400xbf16>, vector<6400x200xbf16>, vector<2x200xf32> -> vector<2x200xf32>
    %c0_3 = arith.constant 0 : index
    %c0_4 = arith.constant 0 : index
    %4 = vector.load %arg2[%c0_3, %c0_4] : memref<1x200xf32, #tpu.memory_space<vmem>>, vector<1x200xf32>
    %5 = vector.broadcast %4 : vector<1x200xf32> to vector<2x200xf32>
    %6 = arith.addf %3, %5 : vector<2x200xf32>
    %cst_5 = arith.constant 0.000000e+00 : f32
    %7 = vector.broadcast %cst_5 : f32 to vector<2x200xf32>
    %8 = arith.maximumf %6, %7 : vector<2x200xf32>
    %c0_6 = arith.constant 0 : index
    %c0_7 = arith.constant 0 : index
    %9 = vector.load %arg3[%c0_6, %c0_7] : memref<200x128xf32, #tpu.memory_space<vmem>>, vector<200x128xf32>
    %cst_8 = arith.constant dense<0.000000e+00> : vector<2x128xf32>
    %10 = tpu.matmul %8, %9, %cst_8 {dimension_numbers = #tpu.dot_dimension_numbers<[1], [0], [0], [1], [0, 0, 1, 1], [], []>} : vector<2x200xf32>, vector<200x128xf32>, vector<2x128xf32> -> vector<2x128xf32>
    %c0_9 = arith.constant 0 : index
    %c0_10 = arith.constant 0 : index
    %11 = vector.load %arg4[%c0_9, %c0_10] : memref<1x128xf32, #tpu.memory_space<vmem>>, vector<1x128xf32>
    %12 = vector.broadcast %11 : vector<1x128xf32> to vector<2x128xf32>
    %13 = arith.addf %10, %12 : vector<2x128xf32>
    %14 = tpu.iota {dimensions = array<i32: 1>} : vector<2x128xi32>
    %c2_i32 = arith.constant 2 : i32
    %15 = vector.broadcast %c2_i32 : i32 to vector<2x128xi32>
    %16 = arith.cmpi slt, %14, %15 : vector<2x128xi32>
    %cst_11 = arith.constant -1.000000e+30 : f32
    %17 = vector.broadcast %cst_11 : f32 to vector<2x128xf32>
    %18 = arith.select %16, %13, %17 : vector<2x128xi1>, vector<2x128xf32>
    %cst_12 = arith.constant dense<0xFF800000> : vector<2xf32>
    %19 = vector.multi_reduction <maximumf>, %18, %cst_12 [1] : vector<2x128xf32> to vector<2xf32>
    %20 = vector.shape_cast %19 : vector<2xf32> to vector<2x1xf32>
    %21 = vector.broadcast %20 : vector<2x1xf32> to vector<2x128xf32>
    %22 = arith.subf %13, %21 : vector<2x128xf32>
    %23 = math.exp %22 : vector<2x128xf32>
    %cst_13 = arith.constant 0.000000e+00 : f32
    %24 = vector.broadcast %cst_13 : f32 to vector<2x128xf32>
    %25 = arith.select %16, %23, %24 : vector<2x128xi1>, vector<2x128xf32>
    %cst_14 = arith.constant dense<0.000000e+00> : vector<2xf32>
    %26 = vector.multi_reduction <add>, %25, %cst_14 [1] : vector<2x128xf32> to vector<2xf32>
    %27 = vector.shape_cast %26 : vector<2xf32> to vector<2x1xf32>
    %28 = tpu.reciprocal %27 : vector<2x1xf32> -> vector<2x1xf32>
    %29 = vector.broadcast %28 : vector<2x1xf32> to vector<2x128xf32>
    %30 = arith.mulf %25, %29 : vector<2x128xf32>
    %c2_i32_15 = arith.constant 2 : i32
    %31 = vector.broadcast %c2_i32_15 : i32 to vector<2x128xi32>
    %32 = arith.cmpi eq, %14, %31 : vector<2x128xi32>
    %33 = arith.select %32, %13, %30 : vector<2x128xi1>, vector<2x128xf32>
    %c0_16 = arith.constant 0 : index
    %c0_17 = arith.constant 0 : index
    %34 = vector.load %arg5[%c0_16, %c0_17] : memref<2x128xf32, #tpu.memory_space<vmem>>, vector<2x128xf32>
    tpu.vector_store %arg5[%c0_16, %c0_17], %33 {strides = array<i32>} : memref<2x128xf32, #tpu.memory_space<vmem>>, vector<2x128xf32>,
    return
  }
}

</mosaic_0001>

<bundles_post_ra>
// kernel: tpu_custom_call.1
= control target key start
LH: loop header
LB: loop body
LE: loop exit
PB: predicated region body
PF: predicated region fallthrough
CT: control target
= control target key end

     0   :  { %v8517_v36 = vmov 1983009808   ;;  %v51_v38 = vlaneseq  ;;  %s11310_s0 = inlined_call_operand.vmem [shape: f32[2,6400], index: 0, kind: input, shape index: {}]   ;;  %s11311_s1 = inlined_call_operand.vmem [shape: bf16[6400,200], index: 1, kind: input, shape index: {}]   ;;  %s11312_s2 = inlined_call_operand.vmem [shape: f32[1,200], index: 2, kind: input, shape index: {}]   ;;  %s11313_s3 = inlined_call_operand.vmem [shape: f32[200,128], index: 3, kind: input, shape index: {}]   ;;  %s11314_s4 = inlined_call_operand.vmem [shape: f32[1,128], index: 4, kind: input, shape index: {}]   ;;  %s11315_s5 = inlined_call_operand.hbm [shape: f32[2,128], index: 5, kind: output, shape index: {}]  }
   0x1   :  { %v7277_v0 = vld [vmem:[%s11311_s1 + $0x4] ss:$8 sps:$4 sm:$0xff]   ;;  %v7281_v2 = vld [vmem:[%s11311_s1] ss:$8 sps:$4 sm:$0xff]   ;;  %v7283_v4 = vld [vmem:[%s11311_s1 + $0x14] ss:$8 sps:$4 sm:$0xff]   ;;  %v49_v37 = vunpack.c.l.s4 %v8517_v36 }
   0x2   :  { %v7279_v1 = vld [vmem:[%s11311_s1 + $0xc04] ss:$8 sps:$4 sm:$0xff]   ;;  %5171 = vmatprep.subr.bf16.mxu1 %v7277_v0  ;;  %v7282_v3 = vld [vmem:[%s11311_s1 + $0xc00] ss:$8 sps:$4 sm:$0xff]   ;;  %v7285_v5 = vld [vmem:[%s11311_s1 + $0xc14] ss:$8 sps:$4 sm:$0xff]  }
   0x3   :  { %5663 = vmatprep.subr.bf16.mxu0 %v7279_v1  ;;  %5172 = vmatpush1.bf16.msra.mxu1 %v7281_v2  ;;  %v7287_v6 = vld [vmem:[%s11311_s1 + $0x10] ss:$8 sps:$4 sm:$0xff]   ;;  %v7289_v8 = vld [vmem:[%s11311_s1 + $0x24] ss:$8 sps:$4 sm:$0xff]   ;;  %v7293_v10 = vld [vmem:[%s11311_s1 + $0x20] ss:$8 sps:$4 sm:$0xff]   ;;  %v50_v42 = vunpack.c.0.s8 %v49_v37 }
   0x4   :  { %5664 = vmatpush1.bf16.msra.mxu0 %v7282_v3  ;;  %5173 = vmatprep.subr.bf16.mxu1 %v7283_v4  ;;  %v7288_v7 = vld [vmem:[%s11311_s1 + $0xc10] ss:$8 sps:$4 sm:$0xff]   ;;  %v7291_v9 = vld [vmem:[%s11311_s1 + $0xc24] ss:$8 sps:$4 sm:$0xff]   ;;  %v7294_v11 = vld [vmem:[%s11311_s1 + $0xc20] ss:$8 sps:$4 sm:$0xff]  }
   0x5   :  { %5665 = vmatprep.subr.bf16.mxu0 %v7285_v5  ;;  %v7295_v12 = vld [vmem:[%s11311_s1 + $0x34] ss:$8 sps:$4 sm:$0xff]   ;;  %v7299_v14 = vld [vmem:[%s11311_s1 + $0x30] ss:$8 sps:$4 sm:$0xff]   ;;  %v7301_v16 = vld [vmem:[%s11311_s1 + $0x44] ss:$8 sps:$4 sm:$0xff]  }
   0x6   :  { %v7297_v13 = vld [vmem:[%s11311_s1 + $0xc34] ss:$8 sps:$4 sm:$0xff]   ;;  %v7300_v15 = vld [vmem:[%s11311_s1 + $0xc30] ss:$8 sps:$4 sm:$0xff]   ;;  %v7303_v17 = vld [vmem:[%s11311_s1 + $0xc44] ss:$8 sps:$4 sm:$0xff]  }
   0x7   :  { %5174 = vmatpush1.bf16.msra.mxu1 %v7287_v6  ;;  %v7305_v18 = vld [vmem:[%s11311_s1 + $0x40] ss:$8 sps:$4 sm:$0xff]   ;;  %v7307_v20 = vld [vmem:[%s11311_s1 + $0x54] ss:$8 sps:$4 sm:$0xff]   ;;  %v7311_v22 = vld [vmem:[%s11311_s1 + $0x50] ss:$8 sps:$4 sm:$0xff]  }
   0x8   :  { %5666 = vmatpush1.bf16.msra.mxu0 %v7288_v7  ;;  %5175 = vmatprep.subr.bf16.mxu1 %v7289_v8  ;;  %v7306_v19 = vld [vmem:[%s11311_s1 + $0xc40] ss:$8 sps:$4 sm:$0xff]   ;;  %v7309_v21 = vld [vmem:[%s11311_s1 + $0xc54] ss:$8 sps:$4 sm:$0xff]   ;;  %v7312_v23 = vld [vmem:[%s11311_s1 + $0xc50] ss:$8 sps:$4 sm:$0xff]  }
   0x9   :  { %5667 = vmatprep.subr.bf16.mxu0 %v7291_v9  ;;  %v7313_v24 = vld [vmem:[%s11311_s1 + $0x64] ss:$8 sps:$4 sm:$0xff]   ;;  %v7317_v26 = vld [vmem:[%s11311_s1 + $0x60] ss:$8 sps:$4 sm:$0xff]   ;;  %v7319_v28 = vld [vmem:[%s11311_s1 + $0x74] ss:$8 sps:$4 sm:$0xff]  }
   0xa   :  { %v7315_v25 = vld [vmem:[%s11311_s1 + $0xc64] ss:$8 sps:$4 sm:$0xff]   ;;  %v7318_v27 = vld [vmem:[%s11311_s1 + $0xc60] ss:$8 sps:$4 sm:$0xff]   ;;  %v7321_v29 = vld [vmem:[%s11311_s1 + $0xc74] ss:$8 sps:$4 sm:$0xff]  }
   0xb   :  { %5176 = vmatpush1.bf16.msra.mxu1 %v7293_v10  ;;  %v7323_v30 = vld [vmem:[%s11311_s1 + $0x70] ss:$8 sps:$4 sm:$0xff]   ;;  %v7325_v32 = vld [vmem:[%s11311_s1 + $0x84] ss:$8 sps:$4 sm:$0xff]   ;;  %v7329_v34 = vld [vmem:[%s11311_s1 + $0x80] ss:$8 sps:$4 sm:$0xff]  }
   0xc   :  { %5668 = vmatpush1.bf16.msra.mxu0 %v7294_v11  ;;  %5177 = vmatprep.subr.bf16.mxu1 %v7295_v12  ;;  %v7324_v31 = vld [vmem:[%s11311_s1 + $0xc70] ss:$8 sps:$4 sm:$0xff]   ;;  %v7327_v33 = vld [vmem:[%s11311_s1 + $0xc84] ss:$8 sps:$4 sm:$0xff]   ;;  %v7330_v35 = vld [vmem:[%s11311_s1 + $0xc80] ss:$8 sps:$4 sm:$0xff]  }
   0xd   :  { %5669 = vmatprep.subr.bf16.mxu0 %v7297_v13  ;;  %v7331_v39 = vld [vmem:[%s11311_s1 + $0x94] ss:$8 sps:$4 sm:$0xff]   ;;  %v7335_v41 = vld [vmem:[%s11311_s1 + $0x90] ss:$8 sps:$4 sm:$0xff]   ;;  %v8669_v43 = vshrl.u32 %v51_v38, 7  ;;  %v21_v52 = vld [vmem:[%s11310_s0] sm:$0xff] }
   0xe   :  { %v7333_v40 = vld [vmem:[%s11311_s1 + $0xc94] ss:$8 sps:$4 sm:$0xff]   ;;  %v7336_v44 = vld [vmem:[%s11311_s1 + $0xc90] ss:$8 sps:$4 sm:$0xff]   ;;  %v7337_v45 = vld [vmem:[%s11311_s1 + $0xa4] ss:$8 sps:$4 sm:$0xff]   ;;  %v47_v8 = vcombine.high %v21_v52, %v21_v52 }
   0xf   :  { %5178 = vmatpush1.bf16.msra.mxu1 %v7299_v14  ;;  %v7339_v46 = vld [vmem:[%s11311_s1 + $0xca4] ss:$8 sps:$4 sm:$0xff]   ;;  %v7341_v47 = vld [vmem:[%s11311_s1 + $0xa0] ss:$8 sps:$4 sm:$0xff]   ;;  %v8687_v49 = vsub.s32 %v50_v42, %v8669_v43  ;;  %v7343_v50 = vld [vmem:[%s11311_s1 + $0xb4] ss:$8 sps:$4 sm:$0xff]  }
  0x10   :  { %5670 = vmatpush1.bf16.msra.mxu0 %v7300_v15  ;;  %5179 = vmatprep.subr.bf16.mxu1 %v7301_v16  ;;  %v7342_v48 = vld [vmem:[%s11311_s1 + $0xca0] ss:$8 sps:$4 sm:$0xff]   ;;  %v7345_v51 = vld [vmem:[%s11311_s1 + $0xcb4] ss:$8 sps:$4 sm:$0xff]   ;;  %v7347_v53 = vld [vmem:[%s11311_s1 + $0xb0] ss:$8 sps:$4 sm:$0xff]  }
  0x11   :  { %5671 = vmatprep.subr.bf16.mxu0 %v7303_v17  ;;  %v8702_v54 = vrot.slane %v21_v52, %v8687_v49  ;;  %v7348_v55 = vld [vmem:[%s11311_s1 + $0xcb0] ss:$8 sps:$4 sm:$0xff]   ;;  %v7349_v57 = vld [vmem:[%s11311_s1 + $0xc4] ss:$8 sps:$4 sm:$0xff]   ;;  %v7353_v63 = vld [vmem:[%s11311_s1 + $0xc0] ss:$8 sps:$4 sm:$0xff]   ;;  %v8756_v14 = vrot.slane %v47_v8, %v8687_v49 }
  0x12   :  { %v27_v56 = vld [vmem:[%s11310_s0 + $0x30] sm:$0xff]  ;;  %v7351_v58 = vld [vmem:[%s11311_s1 + $0xcc4] ss:$8 sps:$4 sm:$0xff]   ;;  %v7354_v0 = vld [vmem:[%s11311_s1 + $0xcc0] ss:$8 sps:$4 sm:$0xff]  }
  0x13   :  { %5180 = vmatpush1.bf16.msra.mxu1 %v7305_v18  ;;  %v62_v59 = vcombine.high %v8702_v54, %v8702_v54  ;;  %v156_v60 = vrot.slane %v27_v56, %v8687_v49  ;;  %v7355_v1 = vld [vmem:[%s11311_s1 + $0xd4] ss:$8 sps:$4 sm:$0xff]   ;;  %v7359_v4 = vld [vmem:[%s11311_s1 + $0xd0] ss:$8 sps:$4 sm:$0xff]   ;;  %v7361_v6 = vld [vmem:[%s11311_s1 + $0xe4] ss:$8 sps:$4 sm:$0xff]   ;;  %v149_v9 = vcombine.high %v27_v56, %v27_v56 }
  0x14   :  { %5672 = vmatpush1.bf16.msra.mxu0 %v7306_v19  ;;  %5181 = vmatprep.subr.bf16.mxu1 %v7307_v20  ;;  %v7357_v2 = vld [vmem:[%s11311_s1 + $0xcd4] ss:$8 sps:$4 sm:$0xff]   ;;  %v7360_v5 = vld [vmem:[%s11311_s1 + $0xcd0] ss:$8 sps:$4 sm:$0xff]   ;;  %v7363_v7 = vld [vmem:[%s11311_s1 + $0xce4] ss:$8 sps:$4 sm:$0xff]   ;;  %v63_v20 = vcombine.high %v8756_v14, %v8756_v14 }
  0x15   :  { %5673 = vmatprep.subr.bf16.mxu0 %v7309_v21  ;;  %v310_v61 = vpack.c.bf16 %v62_v59, %v62_v59  ;;  %v164_v62 = vcombine.high %v156_v60, %v156_v60  ;;  %v7365_v10 = vld [vmem:[%s11311_s1 + $0xe0] ss:$8 sps:$4 sm:$0xff]   ;;  %v7367_v12 = vld [vmem:[%s11311_s1 + $0xf4] ss:$8 sps:$4 sm:$0xff]   ;;  %v8759_v15 = vrot.slane %v149_v9, %v8687_v49  ;;  %v7371_v16 = vld [vmem:[%s11311_s1 + $0xf0] ss:$8 sps:$4 sm:$0xff]  }
  0x16   :  { %v7366_v11 = vld [vmem:[%s11311_s1 + $0xce0] ss:$8 sps:$4 sm:$0xff]   ;;  %v7369_v13 = vld [vmem:[%s11311_s1 + $0xcf4] ss:$8 sps:$4 sm:$0xff]   ;;  %v7372_v17 = vld [vmem:[%s11311_s1 + $0xcf0] ss:$8 sps:$4 sm:$0xff]  }
  0x17   :  { %5182 = vmatpush1.bf16.msra.mxu1 %v7311_v22  ;;  %v334_v3 = vpack.c.bf16 %v164_v62, %v164_v62  ;;  %5203 = vmatprep.mubr.bf16.mxu1 %v310_v61  ;;  %v7376_v18 = vld [vmem:[%s11311_s1 + $0x104] ss:$8 sps:$4 sm:$0xff]   ;;  %v165_v21 = vcombine.high %v8759_v15, %v8759_v15  ;;  %v309_v22 = vpack.c.bf16 %v8702_v54, %v8702_v54  ;;  %v7395_v36 = vld [vmem:[%s11311_s1 + $0x134] ss:$8 sps:$4 sm:$0xff]   ;;  %v7414_v54 = vld [vmem:[%s11311_s1 + $0xd60] ss:$8 sps:$4 sm:$0xff]  }
  0x18   :  { %5674 = vmatpush1.bf16.msra.mxu0 %v7312_v23  ;;  %5183 = vmatprep.subr.bf16.mxu1 %v7313_v24  ;;  %v7380_v19 = vld [vmem:[%s11311_s1 + $0xd04] ss:$8 sps:$4 sm:$0xff]   ;;  %v333_v23 = vpack.c.bf16 %v156_v60, %v156_v60  ;;  %v7374_v24 = vld [vmem:[%s11311_s1 + $0x100] ss:$8 sps:$4 sm:$0xff]   ;;  %v7398_v37 = vld [vmem:[%s11311_s1 + $0xd34] ss:$8 sps:$4 sm:$0xff]  }
  0x19   :  { %5675 = vmatprep.subr.bf16.mxu0 %v7315_v25  ;;  %5695 = vmatprep.mubr.bf16.mxu0 %v334_v3  ;;  %v7378_v25 = vld [vmem:[%s11311_s1 + $0xd00] ss:$8 sps:$4 sm:$0xff]   ;;  %v7404_v42 = vld [vmem:[%s11311_s1 + $0xd44] ss:$8 sps:$4 sm:$0xff]   ;;  %v7422_v56 = vld [vmem:[%s11311_s1 + $0xd74] ss:$8 sps:$4 sm:$0xff]  }
  0x1a   :  { %v7416_v52 = vld [vmem:[%s11311_s1 + $0xd64] ss:$8 sps:$4 sm:$0xff]   ;;  %v7423_v61 = vld [vmem:[%s11311_s1 + $0x180] ss:$8 sps:$4 sm:$0xff]   ;;  %v7446_v8 = vld [vmem:[%s11311_s1 + $0xdb4] ss:$8 sps:$4 sm:$0xff]  }
  0x1b   :  { %5184 = vmatpush1.bf16.msra.mxu1 %v7317_v26  ;;  %v7383_v26 = vld [vmem:[%s11311_s1 + $0x114] ss:$8 sps:$4 sm:$0xff]   ;;  %v7425_v59 = vld [vmem:[%s11311_s1 + $0x184] ss:$8 sps:$4 sm:$0xff]   ;;  %v7426_v62 = vld [vmem:[%s11311_s1 + $0xd80] ss:$8 sps:$4 sm:$0xff]  }
  0x1c   :  { %5676 = vmatpush1.bf16.msra.mxu0 %v7318_v27  ;;  %5185 = vmatprep.subr.bf16.mxu1 %v7319_v28  ;;  %v7386_v27 = vld [vmem:[%s11311_s1 + $0xd14] ss:$8 sps:$4 sm:$0xff]   ;;  %v312_v28 = vpack.c.bf16 %v63_v20, %v63_v20  ;;  %v7428_v60 = vld [vmem:[%s11311_s1 + $0xd84] ss:$8 sps:$4 sm:$0xff]   ;;  %v7441_v9 = vld [vmem:[%s11311_s1 + $0x1b0] ss:$8 sps:$4 sm:$0xff]  }
  0x1d   :  { %5677 = vmatprep.subr.bf16.mxu0 %v7321_v29  ;;  %v336_v29 = vpack.c.bf16 %v165_v21, %v165_v21  ;;  %v7437_v3 = vld [vmem:[%s11311_s1 + $0x1a4] ss:$8 sps:$4 sm:$0xff]   ;;  %v7456_v20 = vld [vmem:[%s11311_s1 + $0xdd0] ss:$8 sps:$4 sm:$0xff]  }
  0x1e   :  { %v7461_v21 = vld [vmem:[%s11311_s1 + $0x1e4] ss:$8 sps:$4 sm:$0xff]  }
  0x1f   :  { %5186 = vmatpush1.bf16.msra.mxu1 %v7323_v30  ;;  %v7381_v30 = vld [vmem:[%s11311_s1 + $0x110] ss:$8 sps:$4 sm:$0xff]  }
  0x20   :  { %5678 = vmatpush1.bf16.msra.mxu0 %v7324_v31  ;;  %5187 = vmatprep.subr.bf16.mxu1 %v7325_v32  ;;  %v7384_v31 = vld [vmem:[%s11311_s1 + $0xd10] ss:$8 sps:$4 sm:$0xff]   ;;  %v7389_v32 = vld [vmem:[%s11311_s1 + $0x124] ss:$8 sps:$4 sm:$0xff]  }
  0x21   :  { %5679 = vmatprep.subr.bf16.mxu0 %v7327_v33  ;;  %v7392_v33 = vld [vmem:[%s11311_s1 + $0xd24] ss:$8 sps:$4 sm:$0xff]  }
  0x23   :  { %5188 = vmatpush1.bf16.msra.mxu1 %v7329_v34  ;;  %v7387_v34 = vld [vmem:[%s11311_s1 + $0x120] ss:$8 sps:$4 sm:$0xff]  }
  0x24   :  { %5680 = vmatpush1.bf16.msra.mxu0 %v7330_v35  ;;  %5189 = vmatprep.subr.bf16.mxu1 %v7331_v39  ;;  %v7390_v35 = vld [vmem:[%s11311_s1 + $0xd20] ss:$8 sps:$4 sm:$0xff]   ;;  %v7393_v39 = vld [vmem:[%s11311_s1 + $0x130] ss:$8 sps:$4 sm:$0xff]  }
  0x25   :  { %5681 = vmatprep.subr.bf16.mxu0 %v7333_v40  ;;  %v7396_v40 = vld [vmem:[%s11311_s1 + $0xd30] ss:$8 sps:$4 sm:$0xff]  }
  0x27   :  { %5190 = vmatpush1.bf16.msra.mxu1 %v7335_v41  ;;  %v7401_v41 = vld [vmem:[%s11311_s1 + $0x144] ss:$8 sps:$4 sm:$0xff]  }
  0x28   :  { %5682 = vmatpush1.bf16.msra.mxu0 %v7336_v44  ;;  %5191 = vmatprep.subr.bf16.mxu1 %v7337_v45  ;;  %v7399_v44 = vld [vmem:[%s11311_s1 + $0x140] ss:$8 sps:$4 sm:$0xff]  }
  0x29   :  { %5683 = vmatprep.subr.bf16.mxu0 %v7339_v46  ;;  %v7402_v45 = vld [vmem:[%s11311_s1 + $0xd40] ss:$8 sps:$4 sm:$0xff]   ;;  %v7407_v46 = vld [vmem:[%s11311_s1 + $0x154] ss:$8 sps:$4 sm:$0xff]  }
  0x2b   :  { %5192 = vmatpush1.bf16.msra.mxu1 %v7341_v47  ;;  %v7410_v47 = vld [vmem:[%s11311_s1 + $0xd54] ss:$8 sps:$4 sm:$0xff]  }
  0x2c   :  { %5684 = vmatpush1.bf16.msra.mxu0 %v7342_v48  ;;  %5193 = vmatprep.subr.bf16.mxu1 %v7343_v50  ;;  %v7405_v48 = vld [vmem:[%s11311_s1 + $0x150] ss:$8 sps:$4 sm:$0xff]  }
  0x2d   :  { %5685 = vmatprep.subr.bf16.mxu0 %v7345_v51  ;;  %v7408_v50 = vld [vmem:[%s11311_s1 + $0xd50] ss:$8 sps:$4 sm:$0xff]   ;;  %v7413_v51 = vld [vmem:[%s11311_s1 + $0x164] ss:$8 sps:$4 sm:$0xff]  }
  0x2f   :  { %5194 = vmatpush1.bf16.msra.mxu1 %v7347_v53  ;;  %v7411_v53 = vld [vmem:[%s11311_s1 + $0x160] ss:$8 sps:$4 sm:$0xff]  }
  0x30   :  { %5686 = vmatpush1.bf16.msra.mxu0 %v7348_v55  ;;  %5195 = vmatprep.subr.bf16.mxu1 %v7349_v57  ;;  %v7419_v55 = vld [vmem:[%s11311_s1 + $0x174] ss:$8 sps:$4 sm:$0xff]   ;;  %v7417_v57 = vld [vmem:[%s11311_s1 + $0x170] ss:$8 sps:$4 sm:$0xff]  }
  0x31   :  { %5687 = vmatprep.subr.bf16.mxu0 %v7351_v58  ;;  %v7420_v58 = vld [vmem:[%s11311_s1 + $0xd70] ss:$8 sps:$4 sm:$0xff]  }
  0x33   :  { %5196 = vmatpush1.bf16.msra.mxu1 %v7353_v63  ;;  %v7431_v63 = vld [vmem:[%s11311_s1 + $0x194] ss:$8 sps:$4 sm:$0xff]  }
  0x34   :  { %5688 = vmatpush1.bf16.msra.mxu0 %v7354_v0  ;;  %5197 = vmatprep.subr.bf16.mxu1 %v7355_v1  ;;  %v7434_v0 = vld [vmem:[%s11311_s1 + $0xd94] ss:$8 sps:$4 sm:$0xff]   ;;  %v7429_v1 = vld [vmem:[%s11311_s1 + $0x190] ss:$8 sps:$4 sm:$0xff]  }
  0x35   :  { %5689 = vmatprep.subr.bf16.mxu0 %v7357_v2  ;;  %v7432_v2 = vld [vmem:[%s11311_s1 + $0xd90] ss:$8 sps:$4 sm:$0xff]  }
  0x37   :  { %5198 = vmatpush1.bf16.msra.mxu1 %v7359_v4  ;;  %v7440_v4 = vld [vmem:[%s11311_s1 + $0xda4] ss:$8 sps:$4 sm:$0xff]  }
  0x38   :  { %5690 = vmatpush1.bf16.msra.mxu0 %v7360_v5  ;;  %5199 = vmatprep.subr.bf16.mxu1 %v7361_v6  ;;  %v7435_v5 = vld [vmem:[%s11311_s1 + $0x1a0] ss:$8 sps:$4 sm:$0xff]  }
  0x39   :  { %5691 = vmatprep.subr.bf16.mxu0 %v7363_v7  ;;  %v7438_v6 = vld [vmem:[%s11311_s1 + $0xda0] ss:$8 sps:$4 sm:$0xff]   ;;  %v7443_v7 = vld [vmem:[%s11311_s1 + $0x1b4] ss:$8 sps:$4 sm:$0xff]  }
  0x3b   :  { %5200 = vmatpush1.bf16.msra.mxu1 %v7365_v10  ;;  %v7444_v10 = vld [vmem:[%s11311_s1 + $0xdb0] ss:$8 sps:$4 sm:$0xff]  }
  0x3c   :  { %5692 = vmatpush1.bf16.msra.mxu0 %v7366_v11  ;;  %5201 = vmatprep.subr.bf16.mxu1 %v7367_v12  ;;  %v7449_v11 = vld [vmem:[%s11311_s1 + $0x1c4] ss:$8 sps:$4 sm:$0xff]  }
  0x3d   :  { %5693 = vmatprep.subr.bf16.mxu0 %v7369_v13  ;;  %v7452_v12 = vld [vmem:[%s11311_s1 + $0xdc4] ss:$8 sps:$4 sm:$0xff]   ;;  %v7447_v13 = vld [vmem:[%s11311_s1 + $0x1c0] ss:$8 sps:$4 sm:$0xff]  }
  0x3f   :  { %5202 = vmatpush1.bf16.msra.mxu1 %v7371_v16  ;;  %v7450_v16 = vld [vmem:[%s11311_s1 + $0xdc0] ss:$8 sps:$4 sm:$0xff]  }
  0x40   :  { %5694 = vmatpush1.bf16.msra.mxu0 %v7372_v17  ;;  %5212 = vmatprep.subr.bf16.mxu1 %v7376_v18  ;;  %v7455_v17 = vld [vmem:[%s11311_s1 + $0x1d4] ss:$8 sps:$4 sm:$0xff]  }
  0x41   :  { %5704 = vmatprep.subr.bf16.mxu0 %v7380_v19  ;;  %v7458_v18 = vld [vmem:[%s11311_s1 + $0xdd4] ss:$8 sps:$4 sm:$0xff]   ;;  %v7453_v19 = vld [vmem:[%s11311_s1 + $0x1d0] ss:$8 sps:$4 sm:$0xff]  }
  0x42   :  { %5204 = vmatmul.mubr.bf16.vlgmr.msra.gmra.mrb[0].mxu1 %v309_v22  ;;  %v7464_v22 = vld [vmem:[%s11311_s1 + $0xde4] ss:$8 sps:$4 sm:$0xff]  }
  0x43   :  { %5696 = vmatmul.mubr.bf16.vlgmr.msra.gmra.mrb[0].mxu0 %v333_v23  ;;  %5213 = vmatpush1.bf16.msra.mxu1 %v7374_v24  ;;  %v7459_v23 = vld [vmem:[%s11311_s1 + $0x1e0] ss:$8 sps:$4 sm:$0xff]  }
  0x44   :  { %5705 = vmatpush1.bf16.msra.mxu0 %v7378_v25  ;;  %5214 = vmatprep.subr.bf16.mxu1 %v7383_v26  ;;  %v7462_v24 = vld [vmem:[%s11311_s1 + $0xde0] ss:$8 sps:$4 sm:$0xff]   ;;  %v7467_v25 = vld [vmem:[%s11311_s1 + $0x1f4] ss:$8 sps:$4 sm:$0xff]  }
  0x45   :  { %5706 = vmatprep.subr.bf16.mxu0 %v7386_v27  ;;  %5244 = vmatprep.mubr.bf16.mxu1 %v312_v28  ;;  %v7470_v26 = vld [vmem:[%s11311_s1 + $0xdf4] ss:$8 sps:$4 sm:$0xff]   ;;  %v7465_v27 = vld [vmem:[%s11311_s1 + $0x1f0] ss:$8 sps:$4 sm:$0xff]  }
  0x46   :  { %5736 = vmatprep.mubr.bf16.mxu0 %v336_v29  ;;  %v7468_v28 = vld [vmem:[%s11311_s1 + $0xdf0] ss:$8 sps:$4 sm:$0xff]   ;;  %v7473_v29 = vld [vmem:[%s11311_s1 + $0x204] ss:$8 sps:$4 sm:$0xff]  }
  0x47   :  { %5215 = vmatpush1.bf16.msra.mxu1 %v7381_v30  ;;  %v7476_v30 = vld [vmem:[%s11311_s1 + $0xe04] ss:$8 sps:$4 sm:$0xff]  }
  0x48   :  { %5707 = vmatpush1.bf16.msra.mxu0 %v7384_v31  ;;  %5216 = vmatprep.subr.bf16.mxu1 %v7389_v32  ;;  %v7471_v31 = vld [vmem:[%s11311_s1 + $0x200] ss:$8 sps:$4 sm:$0xff]   ;;  %v311_v32 = vpack.c.bf16 %v8756_v14, %v8756_v14  ;;  %v7482_v14 = vld [vmem:[%s11311_s1 + $0xe14] ss:$8 sps:$4 sm:$0xff]  }
  0x49   :  { %5708 = vmatprep.subr.bf16.mxu0 %v7392_v33  ;;  %v335_v33 = vpack.c.bf16 %v8759_v15, %v8759_v15 }
  0x4b   :  { %5217 = vmatpush1.bf16.msra.mxu1 %v7387_v34  ;;  %v7474_v34 = vld [vmem:[%s11311_s1 + $0xe00] ss:$8 sps:$4 sm:$0xff]  }
  0x4c   :  { %5709 = vmatpush1.bf16.msra.mxu0 %v7390_v35  ;;  %5218 = vmatprep.subr.bf16.mxu1 %v7395_v36  ;;  %v7479_v35 = vld [vmem:[%s11311_s1 + $0x214] ss:$8 sps:$4 sm:$0xff]   ;;  %v8987_v36 = vld [vmem:[%s11310_s0 + $0x8] sm:$0xff] }
  0x4d   :  { %5710 = vmatprep.subr.bf16.mxu0 %v7398_v37  ;;  %v8994_v15 = vrot.slane %v8987_v36, %v8687_v49  ;;  %v8999_v37 = vld [vmem:[%s11310_s0 + $0x38] sm:$0xff] }
  0x4f   :  { %5219 = vmatpush1.bf16.msra.mxu1 %v7393_v39  ;;  %v7477_v39 = vld [vmem:[%s11311_s1 + $0x210] ss:$8 sps:$4 sm:$0xff]  }
  0x50   :  { %5711 = vmatpush1.bf16.msra.mxu0 %v7396_v40  ;;  %5220 = vmatprep.subr.bf16.mxu1 %v7401_v41  ;;  %v7480_v40 = vld [vmem:[%s11311_s1 + $0xe10] ss:$8 sps:$4 sm:$0xff]   ;;  %v79_v41 = vcombine.high %v8994_v15, %v8994_v15 }
  0x51   :  { %5712 = vmatprep.subr.bf16.mxu0 %v7404_v42  ;;  %v9011_v42 = vrot.slane %v8999_v37, %v8687_v49 }
  0x53   :  { %5221 = vmatpush1.bf16.msra.mxu1 %v7399_v44  ;;  %v7485_v44 = vld [vmem:[%s11311_s1 + $0x224] ss:$8 sps:$4 sm:$0xff]  }
  0x54   :  { %5713 = vmatpush1.bf16.msra.mxu0 %v7402_v45  ;;  %5222 = vmatprep.subr.bf16.mxu1 %v7407_v46  ;;  %v7488_v45 = vld [vmem:[%s11311_s1 + $0xe24] ss:$8 sps:$4 sm:$0xff]   ;;  %v314_v46 = vpack.c.bf16 %v79_v41, %v79_v41  ;;  %v7558_v41 = vld [vmem:[%s11311_s1 + $0xee0] ss:$8 sps:$4 sm:$0xff]  }
  0x55   :  { %5714 = vmatprep.subr.bf16.mxu0 %v7410_v47  ;;  %v181_v47 = vcombine.high %v9011_v42, %v9011_v42 }
  0x57   :  { %5223 = vmatpush1.bf16.msra.mxu1 %v7405_v48  ;;  %v7483_v48 = vld [vmem:[%s11311_s1 + $0x220] ss:$8 sps:$4 sm:$0xff]  }
  0x58   :  { %5715 = vmatpush1.bf16.msra.mxu0 %v7408_v50  ;;  %5224 = vmatprep.subr.bf16.mxu1 %v7413_v51  ;;  %v7486_v50 = vld [vmem:[%s11311_s1 + $0xe20] ss:$8 sps:$4 sm:$0xff]   ;;  %v338_v51 = vpack.c.bf16 %v181_v47, %v181_v47  ;;  %v7564_v47 = vld [vmem:[%s11311_s1 + $0xef0] ss:$8 sps:$4 sm:$0xff]  }
  0x59   :  { %5716 = vmatprep.subr.bf16.mxu0 %v7416_v52  ;;  %v7491_v52 = vld [vmem:[%s11311_s1 + $0x234] ss:$8 sps:$4 sm:$0xff]  }
  0x5b   :  { %5225 = vmatpush1.bf16.msra.mxu1 %v7411_v53  ;;  %v7494_v53 = vld [vmem:[%s11311_s1 + $0xe34] ss:$8 sps:$4 sm:$0xff]  }
  0x5c   :  { %5717 = vmatpush1.bf16.msra.mxu0 %v7414_v54  ;;  %5226 = vmatprep.subr.bf16.mxu1 %v7419_v55  ;;  %v7489_v54 = vld [vmem:[%s11311_s1 + $0x230] ss:$8 sps:$4 sm:$0xff]  }
  0x5d   :  { %5718 = vmatprep.subr.bf16.mxu0 %v7422_v56  ;;  %v7492_v55 = vld [vmem:[%s11311_s1 + $0xe30] ss:$8 sps:$4 sm:$0xff]   ;;  %v7497_v56 = vld [vmem:[%s11311_s1 + $0x244] ss:$8 sps:$4 sm:$0xff]  }
  0x5f   :  { %5227 = vmatpush1.bf16.msra.mxu1 %v7417_v57  ;;  %v7500_v57 = vld [vmem:[%s11311_s1 + $0xe44] ss:$8 sps:$4 sm:$0xff]  }
  0x60   :  { %5719 = vmatpush1.bf16.msra.mxu0 %v7420_v58  ;;  %5228 = vmatprep.subr.bf16.mxu1 %v7425_v59  ;;  %v7495_v58 = vld [vmem:[%s11311_s1 + $0x240] ss:$8 sps:$4 sm:$0xff]  }
  0x61   :  { %5720 = vmatprep.subr.bf16.mxu0 %v7428_v60  ;;  %v7498_v59 = vld [vmem:[%s11311_s1 + $0xe40] ss:$8 sps:$4 sm:$0xff]   ;;  %v7503_v60 = vld [vmem:[%s11311_s1 + $0x254] ss:$8 sps:$4 sm:$0xff]  }
  0x63   :  { %5229 = vmatpush1.bf16.msra.mxu1 %v7423_v61  ;;  %v7506_v61 = vld [vmem:[%s11311_s1 + $0xe54] ss:$8 sps:$4 sm:$0xff]  }
  0x64   :  { %5721 = vmatpush1.bf16.msra.mxu0 %v7426_v62  ;;  %5230 = vmatprep.subr.bf16.mxu1 %v7431_v63  ;;  %v7501_v62 = vld [vmem:[%s11311_s1 + $0x250] ss:$8 sps:$4 sm:$0xff]  }
  0x65   :  { %5722 = vmatprep.subr.bf16.mxu0 %v7434_v0  ;;  %v7504_v63 = vld [vmem:[%s11311_s1 + $0xe50] ss:$8 sps:$4 sm:$0xff]   ;;  %v7509_v0 = vld [vmem:[%s11311_s1 + $0x264] ss:$8 sps:$4 sm:$0xff]  }
  0x67   :  { %5231 = vmatpush1.bf16.msra.mxu1 %v7429_v1  ;;  %v7512_v1 = vld [vmem:[%s11311_s1 + $0xe64] ss:$8 sps:$4 sm:$0xff]  }
  0x68   :  { %5723 = vmatpush1.bf16.msra.mxu0 %v7432_v2  ;;  %5232 = vmatprep.subr.bf16.mxu1 %v7437_v3  ;;  %v7507_v2 = vld [vmem:[%s11311_s1 + $0x260] ss:$8 sps:$4 sm:$0xff]  }
  0x69   :  { %5724 = vmatprep.subr.bf16.mxu0 %v7440_v4  ;;  %v7510_v3 = vld [vmem:[%s11311_s1 + $0xe60] ss:$8 sps:$4 sm:$0xff]   ;;  %v7515_v4 = vld [vmem:[%s11311_s1 + $0x274] ss:$8 sps:$4 sm:$0xff]  }
  0x6b   :  { %5233 = vmatpush1.bf16.msra.mxu1 %v7435_v5  ;;  %v7518_v5 = vld [vmem:[%s11311_s1 + $0xe74] ss:$8 sps:$4 sm:$0xff]  }
  0x6c   :  { %5725 = vmatpush1.bf16.msra.mxu0 %v7438_v6  ;;  %5234 = vmatprep.subr.bf16.mxu1 %v7443_v7  ;;  %v7513_v6 = vld [vmem:[%s11311_s1 + $0x270] ss:$8 sps:$4 sm:$0xff]  }
  0x6d   :  { %5726 = vmatprep.subr.bf16.mxu0 %v7446_v8  ;;  %v7516_v7 = vld [vmem:[%s11311_s1 + $0xe70] ss:$8 sps:$4 sm:$0xff]   ;;  %v7521_v8 = vld [vmem:[%s11311_s1 + $0x284] ss:$8 sps:$4 sm:$0xff]  }
  0x6f   :  { %5235 = vmatpush1.bf16.msra.mxu1 %v7441_v9  ;;  %v7524_v9 = vld [vmem:[%s11311_s1 + $0xe84] ss:$8 sps:$4 sm:$0xff]  }
  0x70   :  { %5727 = vmatpush1.bf16.msra.mxu0 %v7444_v10  ;;  %5236 = vmatprep.subr.bf16.mxu1 %v7449_v11  ;;  %v7519_v10 = vld [vmem:[%s11311_s1 + $0x280] ss:$8 sps:$4 sm:$0xff]  }
  0x71   :  { %5728 = vmatprep.subr.bf16.mxu0 %v7452_v12  ;;  %v7522_v11 = vld [vmem:[%s11311_s1 + $0xe80] ss:$8 sps:$4 sm:$0xff]   ;;  %v7527_v12 = vld [vmem:[%s11311_s1 + $0x294] ss:$8 sps:$4 sm:$0xff]  }
  0x73   :  { %5237 = vmatpush1.bf16.msra.mxu1 %v7447_v13  ;;  %v7530_v13 = vld [vmem:[%s11311_s1 + $0xe94] ss:$8 sps:$4 sm:$0xff]  }
  0x74   :  { %5729 = vmatpush1.bf16.msra.mxu0 %v7450_v16  ;;  %5238 = vmatprep.subr.bf16.mxu1 %v7455_v17  ;;  %v7525_v16 = vld [vmem:[%s11311_s1 + $0x290] ss:$8 sps:$4 sm:$0xff]  }
  0x75   :  { %5730 = vmatprep.subr.bf16.mxu0 %v7458_v18  ;;  %v7528_v17 = vld [vmem:[%s11311_s1 + $0xe90] ss:$8 sps:$4 sm:$0xff]   ;;  %v7533_v18 = vld [vmem:[%s11311_s1 + $0x2a4] ss:$8 sps:$4 sm:$0xff]  }
  0x77   :  { %5239 = vmatpush1.bf16.msra.mxu1 %v7453_v19  ;;  %v7536_v19 = vld [vmem:[%s11311_s1 + $0xea4] ss:$8 sps:$4 sm:$0xff]  }
  0x78   :  { %5731 = vmatpush1.bf16.msra.mxu0 %v7456_v20  ;;  %5240 = vmatprep.subr.bf16.mxu1 %v7461_v21  ;;  %v7531_v20 = vld [vmem:[%s11311_s1 + $0x2a0] ss:$8 sps:$4 sm:$0xff]  }
  0x79   :  { %5732 = vmatprep.subr.bf16.mxu0 %v7464_v22  ;;  %v7534_v21 = vld [vmem:[%s11311_s1 + $0xea0] ss:$8 sps:$4 sm:$0xff]   ;;  %v7539_v22 = vld [vmem:[%s11311_s1 + $0x2b4] ss:$8 sps:$4 sm:$0xff]  }
  0x7b   :  { %5241 = vmatpush1.bf16.msra.mxu1 %v7459_v23  ;;  %v7542_v23 = vld [vmem:[%s11311_s1 + $0xeb4] ss:$8 sps:$4 sm:$0xff]  }
  0x7c   :  { %5733 = vmatpush1.bf16.msra.mxu0 %v7462_v24  ;;  %5242 = vmatprep.subr.bf16.mxu1 %v7467_v25  ;;  %v7537_v24 = vld [vmem:[%s11311_s1 + $0x2b0] ss:$8 sps:$4 sm:$0xff]  }
  0x7d   :  { %5734 = vmatprep.subr.bf16.mxu0 %v7470_v26  ;;  %v7540_v25 = vld [vmem:[%s11311_s1 + $0xeb0] ss:$8 sps:$4 sm:$0xff]   ;;  %v7545_v26 = vld [vmem:[%s11311_s1 + $0x2c4] ss:$8 sps:$4 sm:$0xff]  }
  0x7f   :  { %5243 = vmatpush1.bf16.msra.mxu1 %v7465_v27  ;;  %v7548_v27 = vld [vmem:[%s11311_s1 + $0xec4] ss:$8 sps:$4 sm:$0xff]  }
  0x80   :  { %5735 = vmatpush1.bf16.msra.mxu0 %v7468_v28  ;;  %5253 = vmatprep.subr.bf16.mxu1 %v7473_v29  ;;  %v7543_v28 = vld [vmem:[%s11311_s1 + $0x2c0] ss:$8 sps:$4 sm:$0xff]  }
  0x81   :  { %5745 = vmatprep.subr.bf16.mxu0 %v7476_v30  ;;  %v7546_v29 = vld [vmem:[%s11311_s1 + $0xec0] ss:$8 sps:$4 sm:$0xff]   ;;  %v7551_v30 = vld [vmem:[%s11311_s1 + $0x2d4] ss:$8 sps:$4 sm:$0xff]  }
  0x82   :  { %5245 = vmatmul.mubr.bf16.vlgmr.msra.gmra.mrb[0].mxu1 %v311_v32  ;;  %v7549_v32 = vld [vmem:[%s11311_s1 + $0x2d0] ss:$8 sps:$4 sm:$0xff]  }
  0x83   :  { %5737 = vmatmul.mubr.bf16.vlgmr.msra.gmra.mrb[0].mxu0 %v335_v33  ;;  %5254 = vmatpush1.bf16.msra.mxu1 %v7471_v31  ;;  %v7554_v31 = vld [vmem:[%s11311_s1 + $0xed4] ss:$8 sps:$4 sm:$0xff]   ;;  %v7552_v33 = vld [vmem:[%s11311_s1 + $0xed0] ss:$8 sps:$4 sm:$0xff]  }
  0x84   :  { %5746 = vmatpush1.bf16.msra.mxu0 %v7474_v34  ;;  %5255 = vmatprep.subr.bf16.mxu1 %v7479_v35  ;;  %v7557_v34 = vld [vmem:[%s11311_s1 + $0x2e4] ss:$8 sps:$4 sm:$0xff]  }
  0x85   :  { %5747 = vmatprep.subr.bf16.mxu0 %v7482_v14  ;;  %5285 = vmatprep.mubr.bf16.mxu1 %v314_v46  ;;  %v7560_v35 = vld [vmem:[%s11311_s1 + $0xee4] ss:$8 sps:$4 sm:$0xff]   ;;  %v64_v14 = vcombine.high %v8987_v36, %v8987_v36  ;;  %v7566_v36 = vld [vmem:[%s11311_s1 + $0xef4] ss:$8 sps:$4 sm:$0xff]   ;;  %v7561_v46 = vld [vmem:[%s11311_s1 + $0x2f0] ss:$8 sps:$4 sm:$0xff]  }
  0x86   :  { %5777 = vmatprep.mubr.bf16.mxu0 %v338_v51 }
  0x87   :  { %5256 = vmatpush1.bf16.msra.mxu1 %v7477_v39  ;;  %v166_v39 = vcombine.high %v8999_v37, %v8999_v37  ;;  %v9182_v37 = vrot.slane %v64_v14, %v8687_v49  ;;  %v7638_v14 = vld [vmem:[%s11311_s1 + $0xfb4] ss:$8 sps:$4 sm:$0xff]  }
  0x88   :  { %5748 = vmatpush1.bf16.msra.mxu0 %v7480_v40  ;;  %5257 = vmatprep.subr.bf16.mxu1 %v7485_v44  ;;  %v7555_v40 = vld [vmem:[%s11311_s1 + $0x2e0] ss:$8 sps:$4 sm:$0xff]   ;;  %v7563_v44 = vld [vmem:[%s11311_s1 + $0x2f4] ss:$8 sps:$4 sm:$0xff]  }
  0x89   :  { %5749 = vmatprep.subr.bf16.mxu0 %v7488_v45  ;;  %v9185_v45 = vrot.slane %v166_v39, %v8687_v49  ;;  %v80_v51 = vcombine.high %v9182_v37, %v9182_v37  ;;  %v7633_v39 = vld [vmem:[%s11311_s1 + $0x3b0] ss:$8 sps:$4 sm:$0xff]  }
  0x8b   :  { %5258 = vmatpush1.bf16.msra.mxu1 %v7483_v48  ;;  %v7569_v48 = vld [vmem:[%s11311_s1 + $0x304] ss:$8 sps:$4 sm:$0xff]  }
  0x8c   :  { %5750 = vmatpush1.bf16.msra.mxu0 %v7486_v50  ;;  %5259 = vmatprep.subr.bf16.mxu1 %v7491_v52  ;;  %v7572_v50 = vld [vmem:[%s11311_s1 + $0xf04] ss:$8 sps:$4 sm:$0xff]   ;;  %v182_v52 = vcombine.high %v9185_v45, %v9185_v45 }
  0x8d   :  { %5751 = vmatprep.subr.bf16.mxu0 %v7494_v53  ;;  %v7567_v53 = vld [vmem:[%s11311_s1 + $0x300] ss:$8 sps:$4 sm:$0xff]  }
  0x8f   :  { %5260 = vmatpush1.bf16.msra.mxu1 %v7489_v54  ;;  %v7570_v54 = vld [vmem:[%s11311_s1 + $0xf00] ss:$8 sps:$4 sm:$0xff]  }
  0x90   :  { %5752 = vmatpush1.bf16.msra.mxu0 %v7492_v55  ;;  %5261 = vmatprep.subr.bf16.mxu1 %v7497_v56  ;;  %v313_v55 = vpack.c.bf16 %v8994_v15, %v8994_v15  ;;  %v337_v56 = vpack.c.bf16 %v9011_v42, %v9011_v42  ;;  %v7573_v15 = vld [vmem:[%s11311_s1 + $0x310] ss:$8 sps:$4 sm:$0xff]  }
  0x91   :  { %5753 = vmatprep.subr.bf16.mxu0 %v7500_v57  ;;  %v7575_v57 = vld [vmem:[%s11311_s1 + $0x314] ss:$8 sps:$4 sm:$0xff]   ;;  %v7576_v42 = vld [vmem:[%s11311_s1 + $0xf10] ss:$8 sps:$4 sm:$0xff]  }
  0x93   :  { %5262 = vmatpush1.bf16.msra.mxu1 %v7495_v58  ;;  %v7578_v58 = vld [vmem:[%s11311_s1 + $0xf14] ss:$8 sps:$4 sm:$0xff]  }
  0x94   :  { %5754 = vmatpush1.bf16.msra.mxu0 %v7498_v59  ;;  %5263 = vmatprep.subr.bf16.mxu1 %v7503_v60  ;;  %v316_v59 = vpack.c.bf16 %v80_v51, %v80_v51  ;;  %v340_v60 = vpack.c.bf16 %v182_v52, %v182_v52  ;;  %v7648_v51 = vld [vmem:[%s11311_s1 + $0xfd0] ss:$8 sps:$4 sm:$0xff]   ;;  %v7653_v52 = vld [vmem:[%s11311_s1 + $0x3e4] ss:$8 sps:$4 sm:$0xff]  }
  0x95   :  { %5755 = vmatprep.subr.bf16.mxu0 %v7506_v61  ;;  %v7581_v61 = vld [vmem:[%s11311_s1 + $0x324] ss:$8 sps:$4 sm:$0xff]  }
  0x97   :  { %5264 = vmatpush1.bf16.msra.mxu1 %v7501_v62  ;;  %v7584_v62 = vld [vmem:[%s11311_s1 + $0xf24] ss:$8 sps:$4 sm:$0xff]  }
  0x98   :  { %5756 = vmatpush1.bf16.msra.mxu0 %v7504_v63  ;;  %5265 = vmatprep.subr.bf16.mxu1 %v7509_v0  ;;  %v7579_v63 = vld [vmem:[%s11311_s1 + $0x320] ss:$8 sps:$4 sm:$0xff]  }
  0x99   :  { %5757 = vmatprep.subr.bf16.mxu0 %v7512_v1  ;;  %v7582_v0 = vld [vmem:[%s11311_s1 + $0xf20] ss:$8 sps:$4 sm:$0xff]   ;;  %v7587_v1 = vld [vmem:[%s11311_s1 + $0x334] ss:$8 sps:$4 sm:$0xff]  }
  0x9b   :  { %5266 = vmatpush1.bf16.msra.mxu1 %v7507_v2  ;;  %v7590_v2 = vld [vmem:[%s11311_s1 + $0xf34] ss:$8 sps:$4 sm:$0xff]  }
  0x9c   :  { %5758 = vmatpush1.bf16.msra.mxu0 %v7510_v3  ;;  %5267 = vmatprep.subr.bf16.mxu1 %v7515_v4  ;;  %v7585_v3 = vld [vmem:[%s11311_s1 + $0x330] ss:$8 sps:$4 sm:$0xff]  }
  0x9d   :  { %5759 = vmatprep.subr.bf16.mxu0 %v7518_v5  ;;  %v7588_v4 = vld [vmem:[%s11311_s1 + $0xf30] ss:$8 sps:$4 sm:$0xff]   ;;  %v7593_v5 = vld [vmem:[%s11311_s1 + $0x344] ss:$8 sps:$4 sm:$0xff]  }
  0x9f   :  { %5268 = vmatpush1.bf16.msra.mxu1 %v7513_v6  ;;  %v7596_v6 = vld [vmem:[%s11311_s1 + $0xf44] ss:$8 sps:$4 sm:$0xff]  }
  0xa0   :  { %5760 = vmatpush1.bf16.msra.mxu0 %v7516_v7  ;;  %5269 = vmatprep.subr.bf16.mxu1 %v7521_v8  ;;  %v7591_v7 = vld [vmem:[%s11311_s1 + $0x340] ss:$8 sps:$4 sm:$0xff]  }
  0xa1   :  { %5761 = vmatprep.subr.bf16.mxu0 %v7524_v9  ;;  %v7594_v8 = vld [vmem:[%s11311_s1 + $0xf40] ss:$8 sps:$4 sm:$0xff]   ;;  %v7599_v9 = vld [vmem:[%s11311_s1 + $0x354] ss:$8 sps:$4 sm:$0xff]  }
  0xa3   :  { %5270 = vmatpush1.bf16.msra.mxu1 %v7519_v10  ;;  %v7602_v10 = vld [vmem:[%s11311_s1 + $0xf54] ss:$8 sps:$4 sm:$0xff]  }
  0xa4   :  { %5762 = vmatpush1.bf16.msra.mxu0 %v7522_v11  ;;  %5271 = vmatprep.subr.bf16.mxu1 %v7527_v12  ;;  %v7597_v11 = vld [vmem:[%s11311_s1 + $0x350] ss:$8 sps:$4 sm:$0xff]  }
  0xa5   :  { %5763 = vmatprep.subr.bf16.mxu0 %v7530_v13  ;;  %v7600_v12 = vld [vmem:[%s11311_s1 + $0xf50] ss:$8 sps:$4 sm:$0xff]   ;;  %v7605_v13 = vld [vmem:[%s11311_s1 + $0x364] ss:$8 sps:$4 sm:$0xff]  }
  0xa7   :  { %5272 = vmatpush1.bf16.msra.mxu1 %v7525_v16  ;;  %v7608_v16 = vld [vmem:[%s11311_s1 + $0xf64] ss:$8 sps:$4 sm:$0xff]  }
  0xa8   :  { %5764 = vmatpush1.bf16.msra.mxu0 %v7528_v17  ;;  %5273 = vmatprep.subr.bf16.mxu1 %v7533_v18  ;;  %v7603_v17 = vld [vmem:[%s11311_s1 + $0x360] ss:$8 sps:$4 sm:$0xff]  }
  0xa9   :  { %5765 = vmatprep.subr.bf16.mxu0 %v7536_v19  ;;  %v7606_v18 = vld [vmem:[%s11311_s1 + $0xf60] ss:$8 sps:$4 sm:$0xff]   ;;  %v7611_v19 = vld [vmem:[%s11311_s1 + $0x374] ss:$8 sps:$4 sm:$0xff]  }
  0xab   :  { %5274 = vmatpush1.bf16.msra.mxu1 %v7531_v20  ;;  %v7614_v20 = vld [vmem:[%s11311_s1 + $0xf74] ss:$8 sps:$4 sm:$0xff]  }
  0xac   :  { %5766 = vmatpush1.bf16.msra.mxu0 %v7534_v21  ;;  %5275 = vmatprep.subr.bf16.mxu1 %v7539_v22  ;;  %v7609_v21 = vld [vmem:[%s11311_s1 + $0x370] ss:$8 sps:$4 sm:$0xff]  }
  0xad   :  { %5767 = vmatprep.subr.bf16.mxu0 %v7542_v23  ;;  %v7612_v22 = vld [vmem:[%s11311_s1 + $0xf70] ss:$8 sps:$4 sm:$0xff]   ;;  %v7617_v23 = vld [vmem:[%s11311_s1 + $0x384] ss:$8 sps:$4 sm:$0xff]  }
  0xaf   :  { %5276 = vmatpush1.bf16.msra.mxu1 %v7537_v24  ;;  %v7620_v24 = vld [vmem:[%s11311_s1 + $0xf84] ss:$8 sps:$4 sm:$0xff]  }
  0xb0   :  { %5768 = vmatpush1.bf16.msra.mxu0 %v7540_v25  ;;  %5277 = vmatprep.subr.bf16.mxu1 %v7545_v26  ;;  %v7615_v25 = vld [vmem:[%s11311_s1 + $0x380] ss:$8 sps:$4 sm:$0xff]  }
  0xb1   :  { %5769 = vmatprep.subr.bf16.mxu0 %v7548_v27  ;;  %v7618_v26 = vld [vmem:[%s11311_s1 + $0xf80] ss:$8 sps:$4 sm:$0xff]   ;;  %v7623_v27 = vld [vmem:[%s11311_s1 + $0x394] ss:$8 sps:$4 sm:$0xff]  }
  0xb3   :  { %5278 = vmatpush1.bf16.msra.mxu1 %v7543_v28  ;;  %v7626_v28 = vld [vmem:[%s11311_s1 + $0xf94] ss:$8 sps:$4 sm:$0xff]  }
  0xb4   :  { %5770 = vmatpush1.bf16.msra.mxu0 %v7546_v29  ;;  %5279 = vmatprep.subr.bf16.mxu1 %v7551_v30  ;;  %v7621_v29 = vld [vmem:[%s11311_s1 + $0x390] ss:$8 sps:$4 sm:$0xff]  }
  0xb5   :  { %5771 = vmatprep.subr.bf16.mxu0 %v7554_v31  ;;  %v7624_v30 = vld [vmem:[%s11311_s1 + $0xf90] ss:$8 sps:$4 sm:$0xff]   ;;  %v7629_v31 = vld [vmem:[%s11311_s1 + $0x3a4] ss:$8 sps:$4 sm:$0xff]  }
  0xb7   :  { %5280 = vmatpush1.bf16.msra.mxu1 %v7549_v32  ;;  %v7632_v32 = vld [vmem:[%s11311_s1 + $0xfa4] ss:$8 sps:$4 sm:$0xff]  }
  0xb8   :  { %5772 = vmatpush1.bf16.msra.mxu0 %v7552_v33  ;;  %5281 = vmatprep.subr.bf16.mxu1 %v7557_v34  ;;  %v7627_v33 = vld [vmem:[%s11311_s1 + $0x3a0] ss:$8 sps:$4 sm:$0xff]  }
  0xb9   :  { %5773 = vmatprep.subr.bf16.mxu0 %v7560_v35  ;;  %v7630_v34 = vld [vmem:[%s11311_s1 + $0xfa0] ss:$8 sps:$4 sm:$0xff]   ;;  %v7635_v35 = vld [vmem:[%s11311_s1 + $0x3b4] ss:$8 sps:$4 sm:$0xff]  }
  0xbb   :  { %5282 = vmatpush1.bf16.msra.mxu1 %v7555_v40  ;;  %v7636_v40 = vld [vmem:[%s11311_s1 + $0xfb0] ss:$8 sps:$4 sm:$0xff]  }
  0xbc   :  { %5774 = vmatpush1.bf16.msra.mxu0 %v7558_v41  ;;  %5283 = vmatprep.subr.bf16.mxu1 %v7563_v44  ;;  %v7641_v41 = vld [vmem:[%s11311_s1 + $0x3c4] ss:$8 sps:$4 sm:$0xff]  }
  0xbd   :  { %5775 = vmatprep.subr.bf16.mxu0 %v7566_v36  ;;  %v7644_v44 = vld [vmem:[%s11311_s1 + $0xfc4] ss:$8 sps:$4 sm:$0xff]   ;;  %v7639_v36 = vld [vmem:[%s11311_s1 + $0x3c0] ss:$8 sps:$4 sm:$0xff]  }
  0xbf   :  { %5284 = vmatpush1.bf16.msra.mxu1 %v7561_v46  ;;  %v7642_v46 = vld [vmem:[%s11311_s1 + $0xfc0] ss:$8 sps:$4 sm:$0xff]  }
  0xc0   :  { %5776 = vmatpush1.bf16.msra.mxu0 %v7564_v47  ;;  %5294 = vmatprep.subr.bf16.mxu1 %v7569_v48  ;;  %v7647_v47 = vld [vmem:[%s11311_s1 + $0x3d4] ss:$8 sps:$4 sm:$0xff]  }
  0xc1   :  { %5786 = vmatprep.subr.bf16.mxu0 %v7572_v50  ;;  %v7650_v48 = vld [vmem:[%s11311_s1 + $0xfd4] ss:$8 sps:$4 sm:$0xff]   ;;  %v7645_v50 = vld [vmem:[%s11311_s1 + $0x3d0] ss:$8 sps:$4 sm:$0xff]  }
  0xc2   :  { %5286 = vmatmul.mubr.bf16.vlgmr.msra.gmra.mrb[0].mxu1 %v313_v55  ;;  %v9383_v55 = vld [vmem:[%s11310_s0 + $0x40] sm:$0xff] }
  0xc3   :  { %5778 = vmatmul.mubr.bf16.vlgmr.msra.gmra.mrb[0].mxu0 %v337_v56  ;;  %5295 = vmatpush1.bf16.msra.mxu1 %v7567_v53  ;;  %v7656_v53 = vld [vmem:[%s11311_s1 + $0xfe4] ss:$8 sps:$4 sm:$0xff]   ;;  %v7651_v56 = vld [vmem:[%s11311_s1 + $0x3e0] ss:$8 sps:$4 sm:$0xff]  }
  0xc4   :  { %5787 = vmatpush1.bf16.msra.mxu0 %v7570_v54  ;;  %5296 = vmatprep.subr.bf16.mxu1 %v7575_v57  ;;  %v9378_v54 = vld [vmem:[%s11310_s0 + $0x10] sm:$0xff]  ;;  %v7654_v57 = vld [vmem:[%s11311_s1 + $0xfe0] ss:$8 sps:$4 sm:$0xff]  }
  0xc5   :  { %5788 = vmatprep.subr.bf16.mxu0 %v7578_v58  ;;  %5326 = vmatprep.mubr.bf16.mxu1 %v316_v59  ;;  %v7659_v58 = vld [vmem:[%s11311_s1 + $0x3f4] ss:$8 sps:$4 sm:$0xff]  }
  0xc6   :  { %5818 = vmatprep.mubr.bf16.mxu0 %v340_v60  ;;  %v7662_v59 = vld [vmem:[%s11311_s1 + $0xff4] ss:$8 sps:$4 sm:$0xff]   ;;  %v9399_v60 = vrot.slane %v9378_v54, %v8687_v49 }
  0xc7   :  { %5297 = vmatpush1.bf16.msra.mxu1 %v7573_v15  ;;  %v9403_v15 = vrot.slane %v9383_v55, %v8687_v49 }
  0xc8   :  { %5789 = vmatpush1.bf16.msra.mxu0 %v7576_v42  ;;  %5298 = vmatprep.subr.bf16.mxu1 %v7581_v61  ;;  %v7657_v42 = vld [vmem:[%s11311_s1 + $0x3f0] ss:$8 sps:$4 sm:$0xff]  }
  0xc9   :  { %5790 = vmatprep.subr.bf16.mxu0 %v7584_v62  ;;  %v7660_v61 = vld [vmem:[%s11311_s1 + $0xff0] ss:$8 sps:$4 sm:$0xff]   ;;  %v7666_v62 = vld [vmem:[%s11311_s1 + $0x404] ss:$8 sps:$4 sm:$0xff]  }
  0xcb   :  { %5299 = vmatpush1.bf16.msra.mxu1 %v7579_v63  ;;  %v7670_v63 = vld [vmem:[%s11311_s1 + $0x1004] ss:$8 sps:$4 sm:$0xff]  }
  0xcc   :  { %5791 = vmatpush1.bf16.msra.mxu0 %v7582_v0  ;;  %5300 = vmatprep.subr.bf16.mxu1 %v7587_v1  ;;  %v96_v0 = vcombine.high %v9399_v60, %v9399_v60  ;;  %v198_v1 = vcombine.high %v9403_v15, %v9403_v15 }
  0xcd   :  { %5792 = vmatprep.subr.bf16.mxu0 %v7590_v2  ;;  %v315_v2 = vpack.c.bf16 %v9182_v37, %v9182_v37  ;;  %v7676_v37 = vld [vmem:[%s11311_s1 + $0x1014] ss:$8 sps:$4 sm:$0xff]  }
  0xcf   :  { %5301 = vmatpush1.bf16.msra.mxu1 %v7585_v3  ;;  %v339_v3 = vpack.c.bf16 %v9185_v45, %v9185_v45  ;;  %v318_v45 = vpack.c.bf16 %v96_v0, %v96_v0  ;;  %v7748_v0 = vld [vmem:[%s11311_s1 + $0x10d4] ss:$8 sps:$4 sm:$0xff]  }
  0xd0   :  { %5793 = vmatpush1.bf16.msra.mxu0 %v7588_v4  ;;  %5302 = vmatprep.subr.bf16.mxu1 %v7593_v5  ;;  %v7664_v4 = vld [vmem:[%s11311_s1 + $0x400] ss:$8 sps:$4 sm:$0xff]  }
  0xd1   :  { %5794 = vmatprep.subr.bf16.mxu0 %v7596_v6  ;;  %v7668_v5 = vld [vmem:[%s11311_s1 + $0x1000] ss:$8 sps:$4 sm:$0xff]   ;;  %v7673_v6 = vld [vmem:[%s11311_s1 + $0x414] ss:$8 sps:$4 sm:$0xff]  }
  0xd3   :  { %5303 = vmatpush1.bf16.msra.mxu1 %v7591_v7  ;;  %v342_v7 = vpack.c.bf16 %v198_v1, %v198_v1  ;;  %v7743_v1 = vld [vmem:[%s11311_s1 + $0x4d0] ss:$8 sps:$4 sm:$0xff]  }
  0xd4   :  { %5795 = vmatpush1.bf16.msra.mxu0 %v7594_v8  ;;  %5304 = vmatprep.subr.bf16.mxu1 %v7599_v9  ;;  %v7671_v8 = vld [vmem:[%s11311_s1 + $0x410] ss:$8 sps:$4 sm:$0xff]  }
  0xd5   :  { %5796 = vmatprep.subr.bf16.mxu0 %v7602_v10  ;;  %v7674_v9 = vld [vmem:[%s11311_s1 + $0x1010] ss:$8 sps:$4 sm:$0xff]   ;;  %v7679_v10 = vld [vmem:[%s11311_s1 + $0x424] ss:$8 sps:$4 sm:$0xff]  }
  0xd7   :  { %5305 = vmatpush1.bf16.msra.mxu1 %v7597_v11  ;;  %v7682_v11 = vld [vmem:[%s11311_s1 + $0x1024] ss:$8 sps:$4 sm:$0xff]  }
  0xd8   :  { %5797 = vmatpush1.bf16.msra.mxu0 %v7600_v12  ;;  %5306 = vmatprep.subr.bf16.mxu1 %v7605_v13  ;;  %v7677_v12 = vld [vmem:[%s11311_s1 + $0x420] ss:$8 sps:$4 sm:$0xff]  }
  0xd9   :  { %5798 = vmatprep.subr.bf16.mxu0 %v7608_v16  ;;  %v7680_v13 = vld [vmem:[%s11311_s1 + $0x1020] ss:$8 sps:$4 sm:$0xff]   ;;  %v7685_v16 = vld [vmem:[%s11311_s1 + $0x434] ss:$8 sps:$4 sm:$0xff]  }
  0xdb   :  { %5307 = vmatpush1.bf16.msra.mxu1 %v7603_v17  ;;  %v7688_v17 = vld [vmem:[%s11311_s1 + $0x1034] ss:$8 sps:$4 sm:$0xff]  }
  0xdc   :  { %5799 = vmatpush1.bf16.msra.mxu0 %v7606_v18  ;;  %5308 = vmatprep.subr.bf16.mxu1 %v7611_v19  ;;  %v7683_v18 = vld [vmem:[%s11311_s1 + $0x430] ss:$8 sps:$4 sm:$0xff]  }
  0xdd   :  { %5800 = vmatprep.subr.bf16.mxu0 %v7614_v20  ;;  %v7686_v19 = vld [vmem:[%s11311_s1 + $0x1030] ss:$8 sps:$4 sm:$0xff]   ;;  %v7691_v20 = vld [vmem:[%s11311_s1 + $0x444] ss:$8 sps:$4 sm:$0xff]  }
  0xdf   :  { %5309 = vmatpush1.bf16.msra.mxu1 %v7609_v21  ;;  %v7694_v21 = vld [vmem:[%s11311_s1 + $0x1044] ss:$8 sps:$4 sm:$0xff]  }
  0xe0   :  { %5801 = vmatpush1.bf16.msra.mxu0 %v7612_v22  ;;  %5310 = vmatprep.subr.bf16.mxu1 %v7617_v23  ;;  %v7689_v22 = vld [vmem:[%s11311_s1 + $0x440] ss:$8 sps:$4 sm:$0xff]  }
  0xe1   :  { %5802 = vmatprep.subr.bf16.mxu0 %v7620_v24  ;;  %v7692_v23 = vld [vmem:[%s11311_s1 + $0x1040] ss:$8 sps:$4 sm:$0xff]   ;;  %v7697_v24 = vld [vmem:[%s11311_s1 + $0x454] ss:$8 sps:$4 sm:$0xff]  }
  0xe3   :  { %5311 = vmatpush1.bf16.msra.mxu1 %v7615_v25  ;;  %v7700_v25 = vld [vmem:[%s11311_s1 + $0x1054] ss:$8 sps:$4 sm:$0xff]  }
  0xe4   :  { %5803 = vmatpush1.bf16.msra.mxu0 %v7618_v26  ;;  %5312 = vmatprep.subr.bf16.mxu1 %v7623_v27  ;;  %v7695_v26 = vld [vmem:[%s11311_s1 + $0x450] ss:$8 sps:$4 sm:$0xff]  }
  0xe5   :  { %5804 = vmatprep.subr.bf16.mxu0 %v7626_v28  ;;  %v7698_v27 = vld [vmem:[%s11311_s1 + $0x1050] ss:$8 sps:$4 sm:$0xff]   ;;  %v7703_v28 = vld [vmem:[%s11311_s1 + $0x464] ss:$8 sps:$4 sm:$0xff]  }
  0xe7   :  { %5313 = vmatpush1.bf16.msra.mxu1 %v7621_v29  ;;  %v7706_v29 = vld [vmem:[%s11311_s1 + $0x1064] ss:$8 sps:$4 sm:$0xff]  }
  0xe8   :  { %5805 = vmatpush1.bf16.msra.mxu0 %v7624_v30  ;;  %5314 = vmatprep.subr.bf16.mxu1 %v7629_v31  ;;  %v7701_v30 = vld [vmem:[%s11311_s1 + $0x460] ss:$8 sps:$4 sm:$0xff]  }
  0xe9   :  { %5806 = vmatprep.subr.bf16.mxu0 %v7632_v32  ;;  %v7704_v31 = vld [vmem:[%s11311_s1 + $0x1060] ss:$8 sps:$4 sm:$0xff]   ;;  %v7709_v32 = vld [vmem:[%s11311_s1 + $0x474] ss:$8 sps:$4 sm:$0xff]  }
  0xeb   :  { %5315 = vmatpush1.bf16.msra.mxu1 %v7627_v33  ;;  %v7712_v33 = vld [vmem:[%s11311_s1 + $0x1074] ss:$8 sps:$4 sm:$0xff]  }
  0xec   :  { %5807 = vmatpush1.bf16.msra.mxu0 %v7630_v34  ;;  %5316 = vmatprep.subr.bf16.mxu1 %v7635_v35  ;;  %v7707_v34 = vld [vmem:[%s11311_s1 + $0x470] ss:$8 sps:$4 sm:$0xff]  }
  0xed   :  { %5808 = vmatprep.subr.bf16.mxu0 %v7638_v14  ;;  %v7710_v35 = vld [vmem:[%s11311_s1 + $0x1070] ss:$8 sps:$4 sm:$0xff]   ;;  %v7715_v14 = vld [vmem:[%s11311_s1 + $0x484] ss:$8 sps:$4 sm:$0xff]  }
  0xef   :  { %5317 = vmatpush1.bf16.msra.mxu1 %v7633_v39  ;;  %v7718_v39 = vld [vmem:[%s11311_s1 + $0x1084] ss:$8 sps:$4 sm:$0xff]  }
  0xf0   :  { %5809 = vmatpush1.bf16.msra.mxu0 %v7636_v40  ;;  %5318 = vmatprep.subr.bf16.mxu1 %v7641_v41  ;;  %v7713_v40 = vld [vmem:[%s11311_s1 + $0x480] ss:$8 sps:$4 sm:$0xff]  }
  0xf1   :  { %5810 = vmatprep.subr.bf16.mxu0 %v7644_v44  ;;  %v7716_v41 = vld [vmem:[%s11311_s1 + $0x1080] ss:$8 sps:$4 sm:$0xff]   ;;  %v7721_v44 = vld [vmem:[%s11311_s1 + $0x494] ss:$8 sps:$4 sm:$0xff]  }
  0xf3   :  { %5319 = vmatpush1.bf16.msra.mxu1 %v7639_v36  ;;  %v7724_v36 = vld [vmem:[%s11311_s1 + $0x1094] ss:$8 sps:$4 sm:$0xff]  }
  0xf4   :  { %5811 = vmatpush1.bf16.msra.mxu0 %v7642_v46  ;;  %5320 = vmatprep.subr.bf16.mxu1 %v7647_v47  ;;  %v7719_v46 = vld [vmem:[%s11311_s1 + $0x490] ss:$8 sps:$4 sm:$0xff]  }
  0xf5   :  { %5812 = vmatprep.subr.bf16.mxu0 %v7650_v48  ;;  %v7722_v47 = vld [vmem:[%s11311_s1 + $0x1090] ss:$8 sps:$4 sm:$0xff]   ;;  %v7727_v48 = vld [vmem:[%s11311_s1 + $0x4a4] ss:$8 sps:$4 sm:$0xff]  }
  0xf7   :  { %5321 = vmatpush1.bf16.msra.mxu1 %v7645_v50  ;;  %v7730_v50 = vld [vmem:[%s11311_s1 + $0x10a4] ss:$8 sps:$4 sm:$0xff]  }
  0xf8   :  { %5813 = vmatpush1.bf16.msra.mxu0 %v7648_v51  ;;  %5322 = vmatprep.subr.bf16.mxu1 %v7653_v52  ;;  %v7725_v51 = vld [vmem:[%s11311_s1 + $0x4a0] ss:$8 sps:$4 sm:$0xff]  }
  0xf9   :  { %5814 = vmatprep.subr.bf16.mxu0 %v7656_v53  ;;  %v7728_v52 = vld [vmem:[%s11311_s1 + $0x10a0] ss:$8 sps:$4 sm:$0xff]   ;;  %v7733_v53 = vld [vmem:[%s11311_s1 + $0x4b4] ss:$8 sps:$4 sm:$0xff]  }
  0xfb   :  { %5323 = vmatpush1.bf16.msra.mxu1 %v7651_v56  ;;  %v7736_v56 = vld [vmem:[%s11311_s1 + $0x10b4] ss:$8 sps:$4 sm:$0xff]  }
  0xfc   :  { %5815 = vmatpush1.bf16.msra.mxu0 %v7654_v57  ;;  %5324 = vmatprep.subr.bf16.mxu1 %v7659_v58  ;;  %v7731_v57 = vld [vmem:[%s11311_s1 + $0x4b0] ss:$8 sps:$4 sm:$0xff]  }
  0xfd   :  { %5816 = vmatprep.subr.bf16.mxu0 %v7662_v59  ;;  %v7734_v58 = vld [vmem:[%s11311_s1 + $0x10b0] ss:$8 sps:$4 sm:$0xff]   ;;  %v7739_v59 = vld [vmem:[%s11311_s1 + $0x4c4] ss:$8 sps:$4 sm:$0xff]  }
  0xff   :  { %5325 = vmatpush1.bf16.msra.mxu1 %v7657_v42  ;;  %v7742_v42 = vld [vmem:[%s11311_s1 + $0x10c4] ss:$8 sps:$4 sm:$0xff]  }
 0x100   :  { %5817 = vmatpush1.bf16.msra.mxu0 %v7660_v61  ;;  %5335 = vmatprep.subr.bf16.mxu1 %v7666_v62  ;;  %v7737_v61 = vld [vmem:[%s11311_s1 + $0x4c0] ss:$8 sps:$4 sm:$0xff]  }
 0x101   :  { %5827 = vmatprep.subr.bf16.mxu0 %v7670_v63  ;;  %v7740_v62 = vld [vmem:[%s11311_s1 + $0x10c0] ss:$8 sps:$4 sm:$0xff]   ;;  %v7745_v63 = vld [vmem:[%s11311_s1 + $0x4d4] ss:$8 sps:$4 sm:$0xff]  }
 0x102   :  { %5327 = vmatmul.mubr.bf16.vlgmr.msra.gmra.mrb[0].mxu1 %v315_v2  ;;  %v7746_v2 = vld [vmem:[%s11311_s1 + $0x10d0] ss:$8 sps:$4 sm:$0xff]  }
 0x103   :  { %5819 = vmatmul.mubr.bf16.vlgmr.msra.gmra.mrb[0].mxu0 %v339_v3  ;;  %5336 = vmatpush1.bf16.msra.mxu1 %v7664_v4  ;;  %v7751_v3 = vld [vmem:[%s11311_s1 + $0x4e4] ss:$8 sps:$4 sm:$0xff]  }
 0x104   :  { %5828 = vmatpush1.bf16.msra.mxu0 %v7668_v5  ;;  %5337 = vmatprep.subr.bf16.mxu1 %v7673_v6  ;;  %v7754_v4 = vld [vmem:[%s11311_s1 + $0x10e4] ss:$8 sps:$4 sm:$0xff]   ;;  %v81_v5 = vcombine.high %v9378_v54, %v9378_v54  ;;  %v183_v6 = vcombine.high %v9383_v55, %v9383_v55  ;;  %v7760_v54 = vld [vmem:[%s11311_s1 + $0x10f4] ss:$8 sps:$4 sm:$0xff]  }
 0x105   :  { %5829 = vmatprep.subr.bf16.mxu0 %v7676_v37  ;;  %5367 = vmatprep.mubr.bf16.mxu1 %v318_v45  ;;  %v7749_v37 = vld [vmem:[%s11311_s1 + $0x4e0] ss:$8 sps:$4 sm:$0xff]  }
 0x106   :  { %5859 = vmatprep.mubr.bf16.mxu0 %v342_v7  ;;  %v7752_v45 = vld [vmem:[%s11311_s1 + $0x10e0] ss:$8 sps:$4 sm:$0xff]   ;;  %v7757_v7 = vld [vmem:[%s11311_s1 + $0x4f4] ss:$8 sps:$4 sm:$0xff]   ;;  %v9610_v55 = vrot.slane %v81_v5, %v8687_v49 }
 0x107   :  { %5338 = vmatpush1.bf16.msra.mxu1 %v7671_v8  ;;  %v9613_v8 = vrot.slane %v183_v6, %v8687_v49  ;;  %v7832_v5 = vld [vmem:[%s11311_s1 + $0x11b4] ss:$8 sps:$4 sm:$0xff]   ;;  %v7827_v6 = vld [vmem:[%s11311_s1 + $0x5b0] ss:$8 sps:$4 sm:$0xff]  }
 0x108   :  { %5830 = vmatpush1.bf16.msra.mxu0 %v7674_v9  ;;  %5339 = vmatprep.subr.bf16.mxu1 %v7679_v10  ;;  %v7755_v9 = vld [vmem:[%s11311_s1 + $0x4f0] ss:$8 sps:$4 sm:$0xff]  }
 0x109   :  { %5831 = vmatprep.subr.bf16.mxu0 %v7682_v11  ;;  %v7758_v10 = vld [vmem:[%s11311_s1 + $0x10f0] ss:$8 sps:$4 sm:$0xff]   ;;  %v7763_v11 = vld [vmem:[%s11311_s1 + $0x504] ss:$8 sps:$4 sm:$0xff]  }
 0x10b   :  { %5340 = vmatpush1.bf16.msra.mxu1 %v7677_v12  ;;  %v7766_v12 = vld [vmem:[%s11311_s1 + $0x1104] ss:$8 sps:$4 sm:$0xff]  }
 0x10c   :  { %5832 = vmatpush1.bf16.msra.mxu0 %v7680_v13  ;;  %5341 = vmatprep.subr.bf16.mxu1 %v7685_v16  ;;  %v97_v13 = vcombine.high %v9610_v55, %v9610_v55  ;;  %v199_v16 = vcombine.high %v9613_v8, %v9613_v8 }
 0x10d   :  { %5833 = vmatprep.subr.bf16.mxu0 %v7688_v17  ;;  %v317_v17 = vpack.c.bf16 %v9399_v60, %v9399_v60  ;;  %v7772_v60 = vld [vmem:[%s11311_s1 + $0x1114] ss:$8 sps:$4 sm:$0xff]  }
 0x10f   :  { %5342 = vmatpush1.bf16.msra.mxu1 %v7683_v18  ;;  %v341_v18 = vpack.c.bf16 %v9403_v15, %v9403_v15  ;;  %v320_v15 = vpack.c.bf16 %v97_v13, %v97_v13  ;;  %v7842_v13 = vld [vmem:[%s11311_s1 + $0x11d0] ss:$8 sps:$4 sm:$0xff]  }
 0x110   :  { %5834 = vmatpush1.bf16.msra.mxu0 %v7686_v19  ;;  %5343 = vmatprep.subr.bf16.mxu1 %v7691_v20  ;;  %v7761_v19 = vld [vmem:[%s11311_s1 + $0x500] ss:$8 sps:$4 sm:$0xff]  }
 0x111   :  { %5835 = vmatprep.subr.bf16.mxu0 %v7694_v21  ;;  %v7764_v20 = vld [vmem:[%s11311_s1 + $0x1100] ss:$8 sps:$4 sm:$0xff]   ;;  %v7769_v21 = vld [vmem:[%s11311_s1 + $0x514] ss:$8 sps:$4 sm:$0xff]  }
 0x113   :  { %5344 = vmatpush1.bf16.msra.mxu1 %v7689_v22  ;;  %v344_v22 = vpack.c.bf16 %v199_v16, %v199_v16  ;;  %v7847_v16 = vld [vmem:[%s11311_s1 + $0x5e4] ss:$8 sps:$4 sm:$0xff]  }
 0x114   :  { %5836 = vmatpush1.bf16.msra.mxu0 %v7692_v23  ;;  %5345 = vmatprep.subr.bf16.mxu1 %v7697_v24  ;;  %v7767_v23 = vld [vmem:[%s11311_s1 + $0x510] ss:$8 sps:$4 sm:$0xff]  }
 0x115   :  { %5837 = vmatprep.subr.bf16.mxu0 %v7700_v25  ;;  %v7770_v24 = vld [vmem:[%s11311_s1 + $0x1110] ss:$8 sps:$4 sm:$0xff]   ;;  %v7775_v25 = vld [vmem:[%s11311_s1 + $0x524] ss:$8 sps:$4 sm:$0xff]  }
 0x117   :  { %5346 = vmatpush1.bf16.msra.mxu1 %v7695_v26  ;;  %v7778_v26 = vld [vmem:[%s11311_s1 + $0x1124] ss:$8 sps:$4 sm:$0xff]  }
 0x118   :  { %5838 = vmatpush1.bf16.msra.mxu0 %v7698_v27  ;;  %5347 = vmatprep.subr.bf16.mxu1 %v7703_v28  ;;  %v7773_v27 = vld [vmem:[%s11311_s1 + $0x520] ss:$8 sps:$4 sm:$0xff]  }
 0x119   :  { %5839 = vmatprep.subr.bf16.mxu0 %v7706_v29  ;;  %v7776_v28 = vld [vmem:[%s11311_s1 + $0x1120] ss:$8 sps:$4 sm:$0xff]   ;;  %v7781_v29 = vld [vmem:[%s11311_s1 + $0x534] ss:$8 sps:$4 sm:$0xff]  }
 0x11b   :  { %5348 = vmatpush1.bf16.msra.mxu1 %v7701_v30  ;;  %v7784_v30 = vld [vmem:[%s11311_s1 + $0x1134] ss:$8 sps:$4 sm:$0xff]  }
 0x11c   :  { %5840 = vmatpush1.bf16.msra.mxu0 %v7704_v31  ;;  %5349 = vmatprep.subr.bf16.mxu1 %v7709_v32  ;;  %v7779_v31 = vld [vmem:[%s11311_s1 + $0x530] ss:$8 sps:$4 sm:$0xff]  }
 0x11d   :  { %5841 = vmatprep.subr.bf16.mxu0 %v7712_v33  ;;  %v7782_v32 = vld [vmem:[%s11311_s1 + $0x1130] ss:$8 sps:$4 sm:$0xff]   ;;  %v7787_v33 = vld [vmem:[%s11311_s1 + $0x544] ss:$8 sps:$4 sm:$0xff]  }
 0x11f   :  { %5350 = vmatpush1.bf16.msra.mxu1 %v7707_v34  ;;  %v7790_v34 = vld [vmem:[%s11311_s1 + $0x1144] ss:$8 sps:$4 sm:$0xff]  }
 0x120   :  { %5842 = vmatpush1.bf16.msra.mxu0 %v7710_v35  ;;  %5351 = vmatprep.subr.bf16.mxu1 %v7715_v14  ;;  %v7785_v35 = vld [vmem:[%s11311_s1 + $0x540] ss:$8 sps:$4 sm:$0xff]  }
 0x121   :  { %5843 = vmatprep.subr.bf16.mxu0 %v7718_v39  ;;  %v7788_v14 = vld [vmem:[%s11311_s1 + $0x1140] ss:$8 sps:$4 sm:$0xff]   ;;  %v7793_v39 = vld [vmem:[%s11311_s1 + $0x554] ss:$8 sps:$4 sm:$0xff]  }
 0x123   :  { %5352 = vmatpush1.bf16.msra.mxu1 %v7713_v40  ;;  %v7796_v40 = vld [vmem:[%s11311_s1 + $0x1154] ss:$8 sps:$4 sm:$0xff]  }
 0x124   :  { %5844 = vmatpush1.bf16.msra.mxu0 %v7716_v41  ;;  %5353 = vmatprep.subr.bf16.mxu1 %v7721_v44  ;;  %v7791_v41 = vld [vmem:[%s11311_s1 + $0x550] ss:$8 sps:$4 sm:$0xff]  }
 0x125   :  { %5845 = vmatprep.subr.bf16.mxu0 %v7724_v36  ;;  %v7794_v44 = vld [vmem:[%s11311_s1 + $0x1150] ss:$8 sps:$4 sm:$0xff]   ;;  %v7799_v36 = vld [vmem:[%s11311_s1 + $0x564] ss:$8 sps:$4 sm:$0xff]  }
 0x127   :  { %5354 = vmatpush1.bf16.msra.mxu1 %v7719_v46  ;;  %v7802_v46 = vld [vmem:[%s11311_s1 + $0x1164] ss:$8 sps:$4 sm:$0xff]  }
 0x128   :  { %5846 = vmatpush1.bf16.msra.mxu0 %v7722_v47  ;;  %5355 = vmatprep.subr.bf16.mxu1 %v7727_v48  ;;  %v7797_v47 = vld [vmem:[%s11311_s1 + $0x560] ss:$8 sps:$4 sm:$0xff]  }
 0x129   :  { %5847 = vmatprep.subr.bf16.mxu0 %v7730_v50  ;;  %v7800_v48 = vld [vmem:[%s11311_s1 + $0x1160] ss:$8 sps:$4 sm:$0xff]   ;;  %v7805_v50 = vld [vmem:[%s11311_s1 + $0x574] ss:$8 sps:$4 sm:$0xff]  }
 0x12b   :  { %5356 = vmatpush1.bf16.msra.mxu1 %v7725_v51  ;;  %v7808_v51 = vld [vmem:[%s11311_s1 + $0x1174] ss:$8 sps:$4 sm:$0xff]  }
 0x12c   :  { %5848 = vmatpush1.bf16.msra.mxu0 %v7728_v52  ;;  %5357 = vmatprep.subr.bf16.mxu1 %v7733_v53  ;;  %v7803_v52 = vld [vmem:[%s11311_s1 + $0x570] ss:$8 sps:$4 sm:$0xff]  }
 0x12d   :  { %5849 = vmatprep.subr.bf16.mxu0 %v7736_v56  ;;  %v7806_v53 = vld [vmem:[%s11311_s1 + $0x1170] ss:$8 sps:$4 sm:$0xff]   ;;  %v7811_v56 = vld [vmem:[%s11311_s1 + $0x584] ss:$8 sps:$4 sm:$0xff]  }
 0x12f   :  { %5358 = vmatpush1.bf16.msra.mxu1 %v7731_v57  ;;  %v7814_v57 = vld [vmem:[%s11311_s1 + $0x1184] ss:$8 sps:$4 sm:$0xff]  }
 0x130   :  { %5850 = vmatpush1.bf16.msra.mxu0 %v7734_v58  ;;  %5359 = vmatprep.subr.bf16.mxu1 %v7739_v59  ;;  %v7809_v58 = vld [vmem:[%s11311_s1 + $0x580] ss:$8 sps:$4 sm:$0xff]  }
 0x131   :  { %5851 = vmatprep.subr.bf16.mxu0 %v7742_v42  ;;  %v7812_v59 = vld [vmem:[%s11311_s1 + $0x1180] ss:$8 sps:$4 sm:$0xff]   ;;  %v7817_v42 = vld [vmem:[%s11311_s1 + $0x594] ss:$8 sps:$4 sm:$0xff]  }
 0x133   :  { %5360 = vmatpush1.bf16.msra.mxu1 %v7737_v61  ;;  %v7820_v61 = vld [vmem:[%s11311_s1 + $0x1194] ss:$8 sps:$4 sm:$0xff]  }
 0x134   :  { %5852 = vmatpush1.bf16.msra.mxu0 %v7740_v62  ;;  %5361 = vmatprep.subr.bf16.mxu1 %v7745_v63  ;;  %v7815_v62 = vld [vmem:[%s11311_s1 + $0x590] ss:$8 sps:$4 sm:$0xff]  }
 0x135   :  { %5853 = vmatprep.subr.bf16.mxu0 %v7748_v0  ;;  %v7818_v63 = vld [vmem:[%s11311_s1 + $0x1190] ss:$8 sps:$4 sm:$0xff]   ;;  %v7823_v0 = vld [vmem:[%s11311_s1 + $0x5a4] ss:$8 sps:$4 sm:$0xff]  }
 0x137   :  { %5362 = vmatpush1.bf16.msra.mxu1 %v7743_v1  ;;  %v7826_v1 = vld [vmem:[%s11311_s1 + $0x11a4] ss:$8 sps:$4 sm:$0xff]  }
 0x138   :  { %5854 = vmatpush1.bf16.msra.mxu0 %v7746_v2  ;;  %5363 = vmatprep.subr.bf16.mxu1 %v7751_v3  ;;  %v7821_v2 = vld [vmem:[%s11311_s1 + $0x5a0] ss:$8 sps:$4 sm:$0xff]  }
 0x139   :  { %5855 = vmatprep.subr.bf16.mxu0 %v7754_v4  ;;  %v7824_v3 = vld [vmem:[%s11311_s1 + $0x11a0] ss:$8 sps:$4 sm:$0xff]   ;;  %v7829_v4 = vld [vmem:[%s11311_s1 + $0x5b4] ss:$8 sps:$4 sm:$0xff]  }
 0x13b   :  { %5364 = vmatpush1.bf16.msra.mxu1 %v7749_v37  ;;  %v7830_v37 = vld [vmem:[%s11311_s1 + $0x11b0] ss:$8 sps:$4 sm:$0xff]  }
 0x13c   :  { %5856 = vmatpush1.bf16.msra.mxu0 %v7752_v45  ;;  %5365 = vmatprep.subr.bf16.mxu1 %v7757_v7  ;;  %v7835_v45 = vld [vmem:[%s11311_s1 + $0x5c4] ss:$8 sps:$4 sm:$0xff]  }
 0x13d   :  { %5857 = vmatprep.subr.bf16.mxu0 %v7760_v54  ;;  %v7838_v7 = vld [vmem:[%s11311_s1 + $0x11c4] ss:$8 sps:$4 sm:$0xff]   ;;  %v7833_v54 = vld [vmem:[%s11311_s1 + $0x5c0] ss:$8 sps:$4 sm:$0xff]  }
 0x13f   :  { %5366 = vmatpush1.bf16.msra.mxu1 %v7755_v9  ;;  %v7836_v9 = vld [vmem:[%s11311_s1 + $0x11c0] ss:$8 sps:$4 sm:$0xff]  }
 0x140   :  { %5858 = vmatpush1.bf16.msra.mxu0 %v7758_v10  ;;  %5376 = vmatprep.subr.bf16.mxu1 %v7763_v11  ;;  %v7841_v10 = vld [vmem:[%s11311_s1 + $0x5d4] ss:$8 sps:$4 sm:$0xff]  }
 0x141   :  { %5868 = vmatprep.subr.bf16.mxu0 %v7766_v12  ;;  %v7844_v11 = vld [vmem:[%s11311_s1 + $0x11d4] ss:$8 sps:$4 sm:$0xff]   ;;  %v7839_v12 = vld [vmem:[%s11311_s1 + $0x5d0] ss:$8 sps:$4 sm:$0xff]  }
 0x142   :  { %5368 = vmatmul.mubr.bf16.vlgmr.msra.gmra.mrb[0].mxu1 %v317_v17  ;;  %v7850_v17 = vld [vmem:[%s11311_s1 + $0x11e4] ss:$8 sps:$4 sm:$0xff]  }
 0x143   :  { %5860 = vmatmul.mubr.bf16.vlgmr.msra.gmra.mrb[0].mxu0 %v341_v18  ;;  %5377 = vmatpush1.bf16.msra.mxu1 %v7761_v19  ;;  %v9806_v18 = vld [vmem:[%s11310_s0 + $0x18] sm:$0xff]  ;;  %v9811_v19 = vld [vmem:[%s11310_s0 + $0x48] sm:$0xff] }
 0x144   :  { %5869 = vmatpush1.bf16.msra.mxu0 %v7764_v20  ;;  %5378 = vmatprep.subr.bf16.mxu1 %v7769_v21  ;;  %v7845_v20 = vld [vmem:[%s11311_s1 + $0x5e0] ss:$8 sps:$4 sm:$0xff]  }
 0x145   :  { %5870 = vmatprep.subr.bf16.mxu0 %v7772_v60  ;;  %5408 = vmatprep.mubr.bf16.mxu1 %v320_v15  ;;  %v7848_v21 = vld [vmem:[%s11311_s1 + $0x11e0] ss:$8 sps:$4 sm:$0xff]   ;;  %v7853_v60 = vld [vmem:[%s11311_s1 + $0x5f4] ss:$8 sps:$4 sm:$0xff]  }
 0x146   :  { %5900 = vmatprep.mubr.bf16.mxu0 %v344_v22  ;;  %v7856_v15 = vld [vmem:[%s11311_s1 + $0x11f4] ss:$8 sps:$4 sm:$0xff]   ;;  %v9827_v22 = vrot.slane %v9806_v18, %v8687_v49 }
 0x147   :  { %5379 = vmatpush1.bf16.msra.mxu1 %v7767_v23  ;;  %v9831_v23 = vrot.slane %v9811_v19, %v8687_v49 }
 0x148   :  { %5871 = vmatpush1.bf16.msra.mxu0 %v7770_v24  ;;  %5380 = vmatprep.subr.bf16.mxu1 %v7775_v25  ;;  %v7851_v24 = vld [vmem:[%s11311_s1 + $0x5f0] ss:$8 sps:$4 sm:$0xff]  }
 0x149   :  { %5872 = vmatprep.subr.bf16.mxu0 %v7778_v26  ;;  %v7854_v25 = vld [vmem:[%s11311_s1 + $0x11f0] ss:$8 sps:$4 sm:$0xff]   ;;  %v7860_v26 = vld [vmem:[%s11311_s1 + $0x604] ss:$8 sps:$4 sm:$0xff]  }
 0x14b   :  { %5381 = vmatpush1.bf16.msra.mxu1 %v7773_v27  ;;  %v7864_v27 = vld [vmem:[%s11311_s1 + $0x1204] ss:$8 sps:$4 sm:$0xff]  }
 0x14c   :  { %5873 = vmatpush1.bf16.msra.mxu0 %v7776_v28  ;;  %5382 = vmatprep.subr.bf16.mxu1 %v7781_v29  ;;  %v113_v28 = vcombine.high %v9827_v22, %v9827_v22  ;;  %v215_v29 = vcombine.high %v9831_v23, %v9831_v23 }
 0x14d   :  { %5874 = vmatprep.subr.bf16.mxu0 %v7784_v30  ;;  %v319_v30 = vpack.c.bf16 %v9610_v55, %v9610_v55  ;;  %v7870_v55 = vld [vmem:[%s11311_s1 + $0x1214] ss:$8 sps:$4 sm:$0xff]  }
 0x14f   :  { %5383 = vmatpush1.bf16.msra.mxu1 %v7779_v31  ;;  %v343_v31 = vpack.c.bf16 %v9613_v8, %v9613_v8  ;;  %v322_v8 = vpack.c.bf16 %v113_v28, %v113_v28  ;;  %v7942_v28 = vld [vmem:[%s11311_s1 + $0x12d4] ss:$8 sps:$4 sm:$0xff]  }
 0x150   :  { %5875 = vmatpush1.bf16.msra.mxu0 %v7782_v32  ;;  %5384 = vmatprep.subr.bf16.mxu1 %v7787_v33  ;;  %v7858_v32 = vld [vmem:[%s11311_s1 + $0x600] ss:$8 sps:$4 sm:$0xff]  }
 0x151   :  { %5876 = vmatprep.subr.bf16.mxu0 %v7790_v34  ;;  %v7862_v33 = vld [vmem:[%s11311_s1 + $0x1200] ss:$8 sps:$4 sm:$0xff]   ;;  %v7867_v34 = vld [vmem:[%s11311_s1 + $0x614] ss:$8 sps:$4 sm:$0xff]  }
 0x153   :  { %5385 = vmatpush1.bf16.msra.mxu1 %v7785_v35  ;;  %v346_v35 = vpack.c.bf16 %v215_v29, %v215_v29  ;;  %v7937_v29 = vld [vmem:[%s11311_s1 + $0x6d0] ss:$8 sps:$4 sm:$0xff]  }
 0x154   :  { %5877 = vmatpush1.bf16.msra.mxu0 %v7788_v14  ;;  %5386 = vmatprep.subr.bf16.mxu1 %v7793_v39  ;;  %v7865_v14 = vld [vmem:[%s11311_s1 + $0x610] ss:$8 sps:$4 sm:$0xff]  }
 0x155   :  { %5878 = vmatprep.subr.bf16.mxu0 %v7796_v40  ;;  %v7868_v39 = vld [vmem:[%s11311_s1 + $0x1210] ss:$8 sps:$4 sm:$0xff]   ;;  %v7873_v40 = vld [vmem:[%s11311_s1 + $0x624] ss:$8 sps:$4 sm:$0xff]  }
 0x157   :  { %5387 = vmatpush1.bf16.msra.mxu1 %v7791_v41  ;;  %v7876_v41 = vld [vmem:[%s11311_s1 + $0x1224] ss:$8 sps:$4 sm:$0xff]  }
 0x158   :  { %5879 = vmatpush1.bf16.msra.mxu0 %v7794_v44  ;;  %5388 = vmatprep.subr.bf16.mxu1 %v7799_v36  ;;  %v7871_v44 = vld [vmem:[%s11311_s1 + $0x620] ss:$8 sps:$4 sm:$0xff]  }
 0x159   :  { %5880 = vmatprep.subr.bf16.mxu0 %v7802_v46  ;;  %v7874_v36 = vld [vmem:[%s11311_s1 + $0x1220] ss:$8 sps:$4 sm:$0xff]   ;;  %v7879_v46 = vld [vmem:[%s11311_s1 + $0x634] ss:$8 sps:$4 sm:$0xff]  }
 0x15b   :  { %5389 = vmatpush1.bf16.msra.mxu1 %v7797_v47  ;;  %v7882_v47 = vld [vmem:[%s11311_s1 + $0x1234] ss:$8 sps:$4 sm:$0xff]  }
 0x15c   :  { %5881 = vmatpush1.bf16.msra.mxu0 %v7800_v48  ;;  %5390 = vmatprep.subr.bf16.mxu1 %v7805_v50  ;;  %v7877_v48 = vld [vmem:[%s11311_s1 + $0x630] ss:$8 sps:$4 sm:$0xff]  }
 0x15d   :  { %5882 = vmatprep.subr.bf16.mxu0 %v7808_v51  ;;  %v7880_v50 = vld [vmem:[%s11311_s1 + $0x1230] ss:$8 sps:$4 sm:$0xff]   ;;  %v7885_v51 = vld [vmem:[%s11311_s1 + $0x644] ss:$8 sps:$4 sm:$0xff]  }
 0x15f   :  { %5391 = vmatpush1.bf16.msra.mxu1 %v7803_v52  ;;  %v7888_v52 = vld [vmem:[%s11311_s1 + $0x1244] ss:$8 sps:$4 sm:$0xff]  }
 0x160   :  { %5883 = vmatpush1.bf16.msra.mxu0 %v7806_v53  ;;  %5392 = vmatprep.subr.bf16.mxu1 %v7811_v56  ;;  %v7883_v53 = vld [vmem:[%s11311_s1 + $0x640] ss:$8 sps:$4 sm:$0xff]  }
 0x161   :  { %5884 = vmatprep.subr.bf16.mxu0 %v7814_v57  ;;  %v7886_v56 = vld [vmem:[%s11311_s1 + $0x1240] ss:$8 sps:$4 sm:$0xff]   ;;  %v7891_v57 = vld [vmem:[%s11311_s1 + $0x654] ss:$8 sps:$4 sm:$0xff]  }
 0x163   :  { %5393 = vmatpush1.bf16.msra.mxu1 %v7809_v58  ;;  %v7894_v58 = vld [vmem:[%s11311_s1 + $0x1254] ss:$8 sps:$4 sm:$0xff]  }
 0x164   :  { %5885 = vmatpush1.bf16.msra.mxu0 %v7812_v59  ;;  %5394 = vmatprep.subr.bf16.mxu1 %v7817_v42  ;;  %v7889_v59 = vld [vmem:[%s11311_s1 + $0x650] ss:$8 sps:$4 sm:$0xff]  }
 0x165   :  { %5886 = vmatprep.subr.bf16.mxu0 %v7820_v61  ;;  %v7892_v42 = vld [vmem:[%s11311_s1 + $0x1250] ss:$8 sps:$4 sm:$0xff]   ;;  %v7897_v61 = vld [vmem:[%s11311_s1 + $0x664] ss:$8 sps:$4 sm:$0xff]  }
 0x167   :  { %5395 = vmatpush1.bf16.msra.mxu1 %v7815_v62  ;;  %v7900_v62 = vld [vmem:[%s11311_s1 + $0x1264] ss:$8 sps:$4 sm:$0xff]  }
 0x168   :  { %5887 = vmatpush1.bf16.msra.mxu0 %v7818_v63  ;;  %5396 = vmatprep.subr.bf16.mxu1 %v7823_v0  ;;  %v7895_v63 = vld [vmem:[%s11311_s1 + $0x660] ss:$8 sps:$4 sm:$0xff]  }
 0x169   :  { %5888 = vmatprep.subr.bf16.mxu0 %v7826_v1  ;;  %v7898_v0 = vld [vmem:[%s11311_s1 + $0x1260] ss:$8 sps:$4 sm:$0xff]   ;;  %v7903_v1 = vld [vmem:[%s11311_s1 + $0x674] ss:$8 sps:$4 sm:$0xff]  }
 0x16b   :  { %5397 = vmatpush1.bf16.msra.mxu1 %v7821_v2  ;;  %v7906_v2 = vld [vmem:[%s11311_s1 + $0x1274] ss:$8 sps:$4 sm:$0xff]  }
 0x16c   :  { %5889 = vmatpush1.bf16.msra.mxu0 %v7824_v3  ;;  %5398 = vmatprep.subr.bf16.mxu1 %v7829_v4  ;;  %v7901_v3 = vld [vmem:[%s11311_s1 + $0x670] ss:$8 sps:$4 sm:$0xff]  }
 0x16d   :  { %5890 = vmatprep.subr.bf16.mxu0 %v7832_v5  ;;  %v7904_v4 = vld [vmem:[%s11311_s1 + $0x1270] ss:$8 sps:$4 sm:$0xff]   ;;  %v7909_v5 = vld [vmem:[%s11311_s1 + $0x684] ss:$8 sps:$4 sm:$0xff]  }
 0x16f   :  { %5399 = vmatpush1.bf16.msra.mxu1 %v7827_v6  ;;  %v7912_v6 = vld [vmem:[%s11311_s1 + $0x1284] ss:$8 sps:$4 sm:$0xff]  }
 0x170   :  { %5891 = vmatpush1.bf16.msra.mxu0 %v7830_v37  ;;  %5400 = vmatprep.subr.bf16.mxu1 %v7835_v45  ;;  %v7907_v37 = vld [vmem:[%s11311_s1 + $0x680] ss:$8 sps:$4 sm:$0xff]  }
 0x171   :  { %5892 = vmatprep.subr.bf16.mxu0 %v7838_v7  ;;  %v7910_v45 = vld [vmem:[%s11311_s1 + $0x1280] ss:$8 sps:$4 sm:$0xff]   ;;  %v7915_v7 = vld [vmem:[%s11311_s1 + $0x694] ss:$8 sps:$4 sm:$0xff]  }
 0x173   :  { %5401 = vmatpush1.bf16.msra.mxu1 %v7833_v54  ;;  %v7918_v54 = vld [vmem:[%s11311_s1 + $0x1294] ss:$8 sps:$4 sm:$0xff]  }
 0x174   :  { %5893 = vmatpush1.bf16.msra.mxu0 %v7836_v9  ;;  %5402 = vmatprep.subr.bf16.mxu1 %v7841_v10  ;;  %v7913_v9 = vld [vmem:[%s11311_s1 + $0x690] ss:$8 sps:$4 sm:$0xff]  }
 0x175   :  { %5894 = vmatprep.subr.bf16.mxu0 %v7844_v11  ;;  %v7916_v10 = vld [vmem:[%s11311_s1 + $0x1290] ss:$8 sps:$4 sm:$0xff]   ;;  %v7921_v11 = vld [vmem:[%s11311_s1 + $0x6a4] ss:$8 sps:$4 sm:$0xff]  }
 0x177   :  { %5403 = vmatpush1.bf16.msra.mxu1 %v7839_v12  ;;  %v7924_v12 = vld [vmem:[%s11311_s1 + $0x12a4] ss:$8 sps:$4 sm:$0xff]  }
 0x178   :  { %5895 = vmatpush1.bf16.msra.mxu0 %v7842_v13  ;;  %5404 = vmatprep.subr.bf16.mxu1 %v7847_v16  ;;  %v7919_v13 = vld [vmem:[%s11311_s1 + $0x6a0] ss:$8 sps:$4 sm:$0xff]  }
 0x179   :  { %5896 = vmatprep.subr.bf16.mxu0 %v7850_v17  ;;  %v7922_v16 = vld [vmem:[%s11311_s1 + $0x12a0] ss:$8 sps:$4 sm:$0xff]   ;;  %v7927_v17 = vld [vmem:[%s11311_s1 + $0x6b4] ss:$8 sps:$4 sm:$0xff]  }
 0x17b   :  { %5405 = vmatpush1.bf16.msra.mxu1 %v7845_v20  ;;  %v7930_v20 = vld [vmem:[%s11311_s1 + $0x12b4] ss:$8 sps:$4 sm:$0xff]  }
 0x17c   :  { %5897 = vmatpush1.bf16.msra.mxu0 %v7848_v21  ;;  %5406 = vmatprep.subr.bf16.mxu1 %v7853_v60  ;;  %v7925_v21 = vld [vmem:[%s11311_s1 + $0x6b0] ss:$8 sps:$4 sm:$0xff]  }
 0x17d   :  { %5898 = vmatprep.subr.bf16.mxu0 %v7856_v15  ;;  %v7928_v60 = vld [vmem:[%s11311_s1 + $0x12b0] ss:$8 sps:$4 sm:$0xff]   ;;  %v7933_v15 = vld [vmem:[%s11311_s1 + $0x6c4] ss:$8 sps:$4 sm:$0xff]  }
 0x17f   :  { %5407 = vmatpush1.bf16.msra.mxu1 %v7851_v24  ;;  %v7936_v24 = vld [vmem:[%s11311_s1 + $0x12c4] ss:$8 sps:$4 sm:$0xff]  }
 0x180   :  { %5899 = vmatpush1.bf16.msra.mxu0 %v7854_v25  ;;  %5417 = vmatprep.subr.bf16.mxu1 %v7860_v26  ;;  %v7931_v25 = vld [vmem:[%s11311_s1 + $0x6c0] ss:$8 sps:$4 sm:$0xff]  }
 0x181   :  { %5909 = vmatprep.subr.bf16.mxu0 %v7864_v27  ;;  %v7934_v26 = vld [vmem:[%s11311_s1 + $0x12c0] ss:$8 sps:$4 sm:$0xff]   ;;  %v7939_v27 = vld [vmem:[%s11311_s1 + $0x6d4] ss:$8 sps:$4 sm:$0xff]  }
 0x182   :  { %5409 = vmatmul.mubr.bf16.vlgmr.msra.gmra.mrb[0].mxu1 %v319_v30  ;;  %v7940_v30 = vld [vmem:[%s11311_s1 + $0x12d0] ss:$8 sps:$4 sm:$0xff]  }
 0x183   :  { %5901 = vmatmul.mubr.bf16.vlgmr.msra.gmra.mrb[0].mxu0 %v343_v31  ;;  %5418 = vmatpush1.bf16.msra.mxu1 %v7858_v32  ;;  %v7945_v31 = vld [vmem:[%s11311_s1 + $0x6e4] ss:$8 sps:$4 sm:$0xff]  }
 0x184   :  { %5910 = vmatpush1.bf16.msra.mxu0 %v7862_v33  ;;  %5419 = vmatprep.subr.bf16.mxu1 %v7867_v34  ;;  %v7948_v32 = vld [vmem:[%s11311_s1 + $0x12e4] ss:$8 sps:$4 sm:$0xff]   ;;  %v98_v33 = vcombine.high %v9806_v18, %v9806_v18  ;;  %v200_v34 = vcombine.high %v9811_v19, %v9811_v19  ;;  %v7954_v18 = vld [vmem:[%s11311_s1 + $0x12f4] ss:$8 sps:$4 sm:$0xff]  }
 0x185   :  { %5911 = vmatprep.subr.bf16.mxu0 %v7870_v55  ;;  %5449 = vmatprep.mubr.bf16.mxu1 %v322_v8  ;;  %v7943_v55 = vld [vmem:[%s11311_s1 + $0x6e0] ss:$8 sps:$4 sm:$0xff]  }
 0x186   :  { %5941 = vmatprep.mubr.bf16.mxu0 %v346_v35  ;;  %v7946_v8 = vld [vmem:[%s11311_s1 + $0x12e0] ss:$8 sps:$4 sm:$0xff]   ;;  %v7951_v35 = vld [vmem:[%s11311_s1 + $0x6f4] ss:$8 sps:$4 sm:$0xff]   ;;  %v10038_v19 = vrot.slane %v98_v33, %v8687_v49 }
 0x187   :  { %5420 = vmatpush1.bf16.msra.mxu1 %v7865_v14  ;;  %v10041_v14 = vrot.slane %v200_v34, %v8687_v49 }
 0x188   :  { %5912 = vmatpush1.bf16.msra.mxu0 %v7868_v39  ;;  %5421 = vmatprep.subr.bf16.mxu1 %v7873_v40  ;;  %v7949_v39 = vld [vmem:[%s11311_s1 + $0x6f0] ss:$8 sps:$4 sm:$0xff]  }
 0x189   :  { %5913 = vmatprep.subr.bf16.mxu0 %v7876_v41  ;;  %v7952_v40 = vld [vmem:[%s11311_s1 + $0x12f0] ss:$8 sps:$4 sm:$0xff]   ;;  %v7957_v41 = vld [vmem:[%s11311_s1 + $0x704] ss:$8 sps:$4 sm:$0xff]  }
 0x18b   :  { %5422 = vmatpush1.bf16.msra.mxu1 %v7871_v44  ;;  %v7960_v44 = vld [vmem:[%s11311_s1 + $0x1304] ss:$8 sps:$4 sm:$0xff]  }
 0x18c   :  { %5914 = vmatpush1.bf16.msra.mxu0 %v7874_v36  ;;  %5423 = vmatprep.subr.bf16.mxu1 %v7879_v46  ;;  %v114_v36 = vcombine.high %v10038_v19, %v10038_v19  ;;  %v216_v46 = vcombine.high %v10041_v14, %v10041_v14 }
 0x18d   :  { %5915 = vmatprep.subr.bf16.mxu0 %v7882_v47  ;;  %v321_v47 = vpack.c.bf16 %v9827_v22, %v9827_v22  ;;  %v7966_v22 = vld [vmem:[%s11311_s1 + $0x1314] ss:$8 sps:$4 sm:$0xff]  }
 0x18f   :  { %5424 = vmatpush1.bf16.msra.mxu1 %v7877_v48  ;;  %v345_v48 = vpack.c.bf16 %v9831_v23, %v9831_v23  ;;  %v324_v23 = vpack.c.bf16 %v114_v36, %v114_v36 }
 0x190   :  { %5916 = vmatpush1.bf16.msra.mxu0 %v7880_v50  ;;  %5425 = vmatprep.subr.bf16.mxu1 %v7885_v51  ;;  %v7955_v50 = vld [vmem:[%s11311_s1 + $0x700] ss:$8 sps:$4 sm:$0xff]  }
 0x191   :  { %5917 = vmatprep.subr.bf16.mxu0 %v7888_v52  ;;  %v7958_v51 = vld [vmem:[%s11311_s1 + $0x1300] ss:$8 sps:$4 sm:$0xff]   ;;  %v7963_v52 = vld [vmem:[%s11311_s1 + $0x714] ss:$8 sps:$4 sm:$0xff]  }
 0x193   :  { %5426 = vmatpush1.bf16.msra.mxu1 %v7883_v53  ;;  %v348_v53 = vpack.c.bf16 %v216_v46, %v216_v46 }
 0x194   :  { %5918 = vmatpush1.bf16.msra.mxu0 %v7886_v56  ;;  %5427 = vmatprep.subr.bf16.mxu1 %v7891_v57  ;;  %v7961_v56 = vld [vmem:[%s11311_s1 + $0x710] ss:$8 sps:$4 sm:$0xff]  }
 0x195   :  { %5919 = vmatprep.subr.bf16.mxu0 %v7894_v58  ;;  %v7964_v57 = vld [vmem:[%s11311_s1 + $0x1310] ss:$8 sps:$4 sm:$0xff]   ;;  %v7969_v58 = vld [vmem:[%s11311_s1 + $0x724] ss:$8 sps:$4 sm:$0xff]  }
 0x197   :  { %5428 = vmatpush1.bf16.msra.mxu1 %v7889_v59  ;;  %v7972_v59 = vld [vmem:[%s11311_s1 + $0x1324] ss:$8 sps:$4 sm:$0xff]  }
 0x198   :  { %5920 = vmatpush1.bf16.msra.mxu0 %v7892_v42  ;;  %5429 = vmatprep.subr.bf16.mxu1 %v7897_v61  ;;  %v7967_v42 = vld [vmem:[%s11311_s1 + $0x720] ss:$8 sps:$4 sm:$0xff]  }
 0x199   :  { %5921 = vmatprep.subr.bf16.mxu0 %v7900_v62  ;;  %v7970_v61 = vld [vmem:[%s11311_s1 + $0x1320] ss:$8 sps:$4 sm:$0xff]   ;;  %v7975_v62 = vld [vmem:[%s11311_s1 + $0x734] ss:$8 sps:$4 sm:$0xff]  }
 0x19b   :  { %5430 = vmatpush1.bf16.msra.mxu1 %v7895_v63  ;;  %v7978_v63 = vld [vmem:[%s11311_s1 + $0x1334] ss:$8 sps:$4 sm:$0xff]  }
 0x19c   :  { %5922 = vmatpush1.bf16.msra.mxu0 %v7898_v0  ;;  %5431 = vmatprep.subr.bf16.mxu1 %v7903_v1  ;;  %v7973_v0 = vld [vmem:[%s11311_s1 + $0x730] ss:$8 sps:$4 sm:$0xff]  }
 0x19d   :  { %5923 = vmatprep.subr.bf16.mxu0 %v7906_v2  ;;  %v7976_v1 = vld [vmem:[%s11311_s1 + $0x1330] ss:$8 sps:$4 sm:$0xff]   ;;  %v7981_v2 = vld [vmem:[%s11311_s1 + $0x744] ss:$8 sps:$4 sm:$0xff]  }
 0x19f   :  { %5432 = vmatpush1.bf16.msra.mxu1 %v7901_v3  ;;  %v7984_v3 = vld [vmem:[%s11311_s1 + $0x1344] ss:$8 sps:$4 sm:$0xff]  }
 0x1a0   :  { %5924 = vmatpush1.bf16.msra.mxu0 %v7904_v4  ;;  %5433 = vmatprep.subr.bf16.mxu1 %v7909_v5  ;;  %v7979_v4 = vld [vmem:[%s11311_s1 + $0x740] ss:$8 sps:$4 sm:$0xff]  }
 0x1a1   :  { %5925 = vmatprep.subr.bf16.mxu0 %v7912_v6  ;;  %v7982_v5 = vld [vmem:[%s11311_s1 + $0x1340] ss:$8 sps:$4 sm:$0xff]   ;;  %v7987_v6 = vld [vmem:[%s11311_s1 + $0x754] ss:$8 sps:$4 sm:$0xff]  }
 0x1a3   :  { %5434 = vmatpush1.bf16.msra.mxu1 %v7907_v37  ;;  %v7990_v37 = vld [vmem:[%s11311_s1 + $0x1354] ss:$8 sps:$4 sm:$0xff]  }
 0x1a4   :  { %5926 = vmatpush1.bf16.msra.mxu0 %v7910_v45  ;;  %5435 = vmatprep.subr.bf16.mxu1 %v7915_v7  ;;  %v7985_v45 = vld [vmem:[%s11311_s1 + $0x750] ss:$8 sps:$4 sm:$0xff]  }
 0x1a5   :  { %5927 = vmatprep.subr.bf16.mxu0 %v7918_v54  ;;  %v7988_v7 = vld [vmem:[%s11311_s1 + $0x1350] ss:$8 sps:$4 sm:$0xff]   ;;  %v7993_v54 = vld [vmem:[%s11311_s1 + $0x764] ss:$8 sps:$4 sm:$0xff]  }
 0x1a7   :  { %5436 = vmatpush1.bf16.msra.mxu1 %v7913_v9  ;;  %v7996_v9 = vld [vmem:[%s11311_s1 + $0x1364] ss:$8 sps:$4 sm:$0xff]  }
 0x1a8   :  { %5928 = vmatpush1.bf16.msra.mxu0 %v7916_v10  ;;  %5437 = vmatprep.subr.bf16.mxu1 %v7921_v11 }
 0x1a9   :  { %5929 = vmatprep.subr.bf16.mxu0 %v7924_v12 }
 0x1ab   :  { %5438 = vmatpush1.bf16.msra.mxu1 %v7919_v13 }
 0x1ac   :  { %5930 = vmatpush1.bf16.msra.mxu0 %v7922_v16  ;;  %5439 = vmatprep.subr.bf16.mxu1 %v7927_v17 }
 0x1ad   :  { %5931 = vmatprep.subr.bf16.mxu0 %v7930_v20 }
 0x1af   :  { %5440 = vmatpush1.bf16.msra.mxu1 %v7925_v21 }
 0x1b0   :  { %5932 = vmatpush1.bf16.msra.mxu0 %v7928_v60  ;;  %5441 = vmatprep.subr.bf16.mxu1 %v7933_v15 }
 0x1b1   :  { %5933 = vmatprep.subr.bf16.mxu0 %v7936_v24 }
 0x1b3   :  { %5442 = vmatpush1.bf16.msra.mxu1 %v7931_v25 }
 0x1b4   :  { %5934 = vmatpush1.bf16.msra.mxu0 %v7934_v26  ;;  %5443 = vmatprep.subr.bf16.mxu1 %v7939_v27 }
 0x1b5   :  { %5935 = vmatprep.subr.bf16.mxu0 %v7942_v28 }
 0x1b7   :  { %5444 = vmatpush1.bf16.msra.mxu1 %v7937_v29 }
 0x1b8   :  { %5936 = vmatpush1.bf16.msra.mxu0 %v7940_v30  ;;  %5445 = vmatprep.subr.bf16.mxu1 %v7945_v31 }
 0x1b9   :  { %5937 = vmatprep.subr.bf16.mxu0 %v7948_v32 }
 0x1bb   :  { %5446 = vmatpush1.bf16.msra.mxu1 %v7943_v55 }
 0x1bc   :  { %5938 = vmatpush1.bf16.msra.mxu0 %v7946_v8  ;;  %5447 = vmatprep.subr.bf16.mxu1 %v7951_v35 }
 0x1bd   :  { %5939 = vmatprep.subr.bf16.mxu0 %v7954_v18 }
 0x1bf   :  { %5448 = vmatpush1.bf16.msra.mxu1 %v7949_v39 }
 0x1c0   :  { %5940 = vmatpush1.bf16.msra.mxu0 %v7952_v40  ;;  %5458 = vmatprep.subr.bf16.mxu1 %v7957_v41 }
 0x1c1   :  { %5950 = vmatprep.subr.bf16.mxu0 %v7960_v44 }
 0x1c2   :  { %5450 = vmatmul.mubr.bf16.vlgmr.msra.gmra.mrb[0].mxu1 %v321_v47 }
 0x1c3   :  { %5942 = vmatmul.mubr.bf16.vlgmr.msra.gmra.mrb[0].mxu0 %v345_v48  ;;  %5459 = vmatpush1.bf16.msra.mxu1 %v7955_v50 }
 0x1c4   :  { %5951 = vmatpush1.bf16.msra.mxu0 %v7958_v51  ;;  %5460 = vmatprep.subr.bf16.mxu1 %v7963_v52 }
 0x1c5   :  { %5952 = vmatprep.subr.bf16.mxu0 %v7966_v22  ;;  %5490 = vmatprep.mubr.bf16.mxu1 %v324_v23 }
 0x1c6   :  { %5982 = vmatprep.mubr.bf16.mxu0 %v348_v53 }
 0x1c7   :  { %5461 = vmatpush1.bf16.msra.mxu1 %v7961_v56 }
 0x1c8   :  { %5953 = vmatpush1.bf16.msra.mxu0 %v7964_v57  ;;  %5462 = vmatprep.subr.bf16.mxu1 %v7969_v58 }
 0x1c9   :  { %5954 = vmatprep.subr.bf16.mxu0 %v7972_v59 }
 0x1cb   :  { %5463 = vmatpush1.bf16.msra.mxu1 %v7967_v42 }
 0x1cc   :  { %5955 = vmatpush1.bf16.msra.mxu0 %v7970_v61  ;;  %5464 = vmatprep.subr.bf16.mxu1 %v7975_v62 }
 0x1cd   :  { %5956 = vmatprep.subr.bf16.mxu0 %v7978_v63 }
 0x1cf   :  { %5465 = vmatpush1.bf16.msra.mxu1 %v7973_v0 }
 0x1d0   :  { %5957 = vmatpush1.bf16.msra.mxu0 %v7976_v1  ;;  %5466 = vmatprep.subr.bf16.mxu1 %v7981_v2 }
 0x1d1   :  { %5958 = vmatprep.subr.bf16.mxu0 %v7984_v3 }
 0x1d3   :  { %5467 = vmatpush1.bf16.msra.mxu1 %v7979_v4 }
 0x1d4   :  { %5959 = vmatpush1.bf16.msra.mxu0 %v7982_v5  ;;  %5468 = vmatprep.subr.bf16.mxu1 %v7987_v6 }
 0x1d5   :  { %5960 = vmatprep.subr.bf16.mxu0 %v7990_v37 }
 0x1d6   :  { %10 = vsyncpa [#allocation3], 0  ;;  %v7991_v10 = vld [vmem:[%s11311_s1 + $0x760] ss:$8 sps:$4 sm:$0xff]   ;;  %v7999_v12 = vld [vmem:[%s11311_s1 + $0x774] ss:$8 sps:$4 sm:$0xff]   ;;  %v323_v63 = vpack.c.bf16 %v10038_v19, %v10038_v19  ;;  %v347_v0 = vpack.c.bf16 %v10041_v14, %v10041_v14 }
 0x1d7   :  { %5469 = vmatpush1.bf16.msra.mxu1 %v7985_v45  ;;  %v7994_v11 = vld [vmem:[%s11311_s1 + $0x1360] ss:$8 sps:$4 sm:$0xff]   ;;  %v8002_v13 = vld [vmem:[%s11311_s1 + $0x1374] ss:$8 sps:$4 sm:$0xff]   ;;  %v7997_v16 = vld [vmem:[%s11311_s1 + $0x770] ss:$8 sps:$4 sm:$0xff]  }
 0x1d8   :  { %5961 = vmatpush1.bf16.msra.mxu0 %v7988_v7  ;;  %5470 = vmatprep.subr.bf16.mxu1 %v7993_v54  ;;  %v8000_v17 = vld [vmem:[%s11311_s1 + $0x1370] ss:$8 sps:$4 sm:$0xff]   ;;  %v8005_v20 = vld [vmem:[%s11311_s1 + $0x784] ss:$8 sps:$4 sm:$0xff]   ;;  %v8003_v60 = vld [vmem:[%s11311_s1 + $0x780] ss:$8 sps:$4 sm:$0xff]  }
 0x1d9   :  { %5962 = vmatprep.subr.bf16.mxu0 %v7996_v9  ;;  %v8008_v21 = vld [vmem:[%s11311_s1 + $0x1384] ss:$8 sps:$4 sm:$0xff]   ;;  %v8006_v15 = vld [vmem:[%s11311_s1 + $0x1380] ss:$8 sps:$4 sm:$0xff]   ;;  %v8011_v24 = vld [vmem:[%s11311_s1 + $0x794] ss:$8 sps:$4 sm:$0xff]  }
 0x1da   :  { %v8014_v25 = vld [vmem:[%s11311_s1 + $0x1394] ss:$8 sps:$4 sm:$0xff]   ;;  %v8009_v26 = vld [vmem:[%s11311_s1 + $0x790] ss:$8 sps:$4 sm:$0xff]   ;;  %v8017_v28 = vld [vmem:[%s11311_s1 + $0x7a4] ss:$8 sps:$4 sm:$0xff]  }
 0x1db   :  { %5471 = vmatpush1.bf16.msra.mxu1 %v7991_v10  ;;  %v8012_v27 = vld [vmem:[%s11311_s1 + $0x1390] ss:$8 sps:$4 sm:$0xff]   ;;  %v8020_v29 = vld [vmem:[%s11311_s1 + $0x13a4] ss:$8 sps:$4 sm:$0xff]   ;;  %v8015_v30 = vld [vmem:[%s11311_s1 + $0x7a0] ss:$8 sps:$4 sm:$0xff]  }
 0x1dc   :  { %5963 = vmatpush1.bf16.msra.mxu0 %v7994_v11  ;;  %5472 = vmatprep.subr.bf16.mxu1 %v7999_v12  ;;  %v8018_v31 = vld [vmem:[%s11311_s1 + $0x13a0] ss:$8 sps:$4 sm:$0xff]   ;;  %v8023_v32 = vld [vmem:[%s11311_s1 + $0x7b4] ss:$8 sps:$4 sm:$0xff]   ;;  %v8021_v34 = vld [vmem:[%s11311_s1 + $0x7b0] ss:$8 sps:$4 sm:$0xff]  }
 0x1dd   :  { %5964 = vmatprep.subr.bf16.mxu0 %v8002_v13  ;;  %v8026_v33 = vld [vmem:[%s11311_s1 + $0x13b4] ss:$8 sps:$4 sm:$0xff]   ;;  %v8024_v55 = vld [vmem:[%s11311_s1 + $0x13b0] ss:$8 sps:$4 sm:$0xff]   ;;  %v8029_v8 = vld [vmem:[%s11311_s1 + $0x7c4] ss:$8 sps:$4 sm:$0xff]  }
 0x1de   :  { %v8032_v35 = vld [vmem:[%s11311_s1 + $0x13c4] ss:$8 sps:$4 sm:$0xff]   ;;  %v8027_v18 = vld [vmem:[%s11311_s1 + $0x7c0] ss:$8 sps:$4 sm:$0xff]   ;;  %v8035_v40 = vld [vmem:[%s11311_s1 + $0x7d4] ss:$8 sps:$4 sm:$0xff]  }
 0x1df   :  { %5473 = vmatpush1.bf16.msra.mxu1 %v7997_v16  ;;  %v8030_v39 = vld [vmem:[%s11311_s1 + $0x13c0] ss:$8 sps:$4 sm:$0xff]   ;;  %v8038_v41 = vld [vmem:[%s11311_s1 + $0x13d4] ss:$8 sps:$4 sm:$0xff]   ;;  %v8033_v44 = vld [vmem:[%s11311_s1 + $0x7d0] ss:$8 sps:$4 sm:$0xff]  }
 0x1e0   :  { %5965 = vmatpush1.bf16.msra.mxu0 %v8000_v17  ;;  %5474 = vmatprep.subr.bf16.mxu1 %v8005_v20  ;;  %v8036_v36 = vld [vmem:[%s11311_s1 + $0x13d0] ss:$8 sps:$4 sm:$0xff]   ;;  %v8041_v46 = vld [vmem:[%s11311_s1 + $0x7e4] ss:$8 sps:$4 sm:$0xff]   ;;  %v8039_v51 = vld [vmem:[%s11311_s1 + $0x7e0] ss:$8 sps:$4 sm:$0xff]  }
 0x1e1   :  { %5966 = vmatprep.subr.bf16.mxu0 %v8008_v21  ;;  %v8044_v47 = vld [vmem:[%s11311_s1 + $0x13e4] ss:$8 sps:$4 sm:$0xff]   ;;  %v10239_v50 = vld [vmem:[%s11310_s0 + $0x50] sm:$0xff]  ;;  %v8042_v52 = vld [vmem:[%s11311_s1 + $0x13e0] ss:$8 sps:$4 sm:$0xff]   ;;  %vm6230_vm0 = vcmask 588800  }
 0x1e2   :  { %v10234_v48 = vld [vmem:[%s11310_s0 + $0x20] sm:$0xff]  ;;  %v8047_v22 = vld [vmem:[%s11311_s1 + $0x7f4] ss:$8 sps:$4 sm:$0xff]   ;;  %v10259_v56 = vrot.slane %v10239_v50, %v8687_v49  ;;  %v8045_v57 = vld [vmem:[%s11311_s1 + $0x7f0] ss:$8 sps:$4 sm:$0xff]   ;;  %vm6308_vm2 = vcmask 1041408  }
 0x1e3   :  { %5475 = vmatpush1.bf16.msra.mxu1 %v8003_v60  ;;  %v8050_v23 = vld [vmem:[%s11311_s1 + $0x13f4] ss:$8 sps:$4 sm:$0xff]   ;;  %v10255_v53 = vrot.slane %v10234_v48, %v8687_v49  ;;  %v8048_v58 = vld [vmem:[%s11311_s1 + $0x13f0] ss:$8 sps:$4 sm:$0xff]   ;;  %v8054_v59 = vld [vmem:[%s11311_s1 + $0x804] ss:$8 sps:$4 sm:$0xff]  }
 0x1e4   :  { %5967 = vmatpush1.bf16.msra.mxu0 %v8006_v15  ;;  %5476 = vmatprep.subr.bf16.mxu1 %v8011_v24  ;;  %v8058_v42 = vld [vmem:[%s11311_s1 + $0x1404] ss:$8 sps:$4 sm:$0xff]   ;;  %v232_v62 = vcombine.high %v10259_v56, %v10259_v56  ;;  %v8052_v1 = vld [vmem:[%s11311_s1 + $0x800] ss:$8 sps:$4 sm:$0xff]   ;;  %v8061_v3 = vld [vmem:[%s11311_s1 + $0x814] ss:$8 sps:$4 sm:$0xff]  }
 0x1e5   :  { %5968 = vmatprep.subr.bf16.mxu0 %v8014_v25  ;;  %v130_v61 = vcombine.high %v10255_v53, %v10255_v53  ;;  %v8056_v2 = vld [vmem:[%s11311_s1 + $0x1400] ss:$8 sps:$4 sm:$0xff]   ;;  %v8064_v19 = vld [vmem:[%s11311_s1 + $0x1414] ss:$8 sps:$4 sm:$0xff]   ;;  %v8059_v5 = vld [vmem:[%s11311_s1 + $0x810] ss:$8 sps:$4 sm:$0xff]  }
 0x1e6   :  { %v350_v4 = vpack.c.bf16 %v232_v62, %v232_v62  ;;  %v8062_v6 = vld [vmem:[%s11311_s1 + $0x1410] ss:$8 sps:$4 sm:$0xff]   ;;  %v8067_v37 = vld [vmem:[%s11311_s1 + $0x824] ss:$8 sps:$4 sm:$0xff]   ;;  %v8065_v7 = vld [vmem:[%s11311_s1 + $0x820] ss:$8 sps:$4 sm:$0xff]  }
 0x1e7   :  { %5477 = vmatpush1.bf16.msra.mxu1 %v8009_v26  ;;  %v326_v14 = vpack.c.bf16 %v130_v61, %v130_v61  ;;  %v8070_v45 = vld [vmem:[%s11311_s1 + $0x1424] ss:$8 sps:$4 sm:$0xff]   ;;  %v8068_v54 = vld [vmem:[%s11311_s1 + $0x1420] ss:$8 sps:$4 sm:$0xff]   ;;  %v8073_v9 = vld [vmem:[%s11311_s1 + $0x834] ss:$8 sps:$4 sm:$0xff]  }
 0x1e8   :  { %5969 = vmatpush1.bf16.msra.mxu0 %v8012_v27  ;;  %5478 = vmatprep.subr.bf16.mxu1 %v8017_v28  ;;  %v8076_v10 = vld [vmem:[%s11311_s1 + $0x1434] ss:$8 sps:$4 sm:$0xff]   ;;  %v8071_v11 = vld [vmem:[%s11311_s1 + $0x830] ss:$8 sps:$4 sm:$0xff]   ;;  %v8079_v13 = vld [vmem:[%s11311_s1 + $0x844] ss:$8 sps:$4 sm:$0xff]  }
 0x1e9   :  { %5970 = vmatprep.subr.bf16.mxu0 %v8020_v29  ;;  %v8074_v12 = vld [vmem:[%s11311_s1 + $0x1430] ss:$8 sps:$4 sm:$0xff]   ;;  %v8082_v16 = vld [vmem:[%s11311_s1 + $0x1444] ss:$8 sps:$4 sm:$0xff]   ;;  %v8077_v17 = vld [vmem:[%s11311_s1 + $0x840] ss:$8 sps:$4 sm:$0xff]  }
 0x1ea   :  { %v8080_v20 = vld [vmem:[%s11311_s1 + $0x1440] ss:$8 sps:$4 sm:$0xff]   ;;  %v8085_v21 = vld [vmem:[%s11311_s1 + $0x854] ss:$8 sps:$4 sm:$0xff]   ;;  %v8083_v15 = vld [vmem:[%s11311_s1 + $0x850] ss:$8 sps:$4 sm:$0xff]  }
 0x1eb   :  { %5479 = vmatpush1.bf16.msra.mxu1 %v8015_v30  ;;  %v8088_v60 = vld [vmem:[%s11311_s1 + $0x1454] ss:$8 sps:$4 sm:$0xff]   ;;  %v8086_v24 = vld [vmem:[%s11311_s1 + $0x1450] ss:$8 sps:$4 sm:$0xff]   ;;  %v8091_v25 = vld [vmem:[%s11311_s1 + $0x864] ss:$8 sps:$4 sm:$0xff]  }
 0x1ec   :  { %5971 = vmatpush1.bf16.msra.mxu0 %v8018_v31  ;;  %5480 = vmatprep.subr.bf16.mxu1 %v8023_v32  ;;  %v8094_v26 = vld [vmem:[%s11311_s1 + $0x1464] ss:$8 sps:$4 sm:$0xff]   ;;  %v8089_v27 = vld [vmem:[%s11311_s1 + $0x860] ss:$8 sps:$4 sm:$0xff]   ;;  %v8097_v29 = vld [vmem:[%s11311_s1 + $0x874] ss:$8 sps:$4 sm:$0xff]  }
 0x1ed   :  { %5972 = vmatprep.subr.bf16.mxu0 %v8026_v33  ;;  %v8092_v28 = vld [vmem:[%s11311_s1 + $0x1460] ss:$8 sps:$4 sm:$0xff]   ;;  %v8100_v30 = vld [vmem:[%s11311_s1 + $0x1474] ss:$8 sps:$4 sm:$0xff]   ;;  %v8095_v31 = vld [vmem:[%s11311_s1 + $0x870] ss:$8 sps:$4 sm:$0xff]  }
 0x1ee   :  { %v8098_v32 = vld [vmem:[%s11311_s1 + $0x1470] ss:$8 sps:$4 sm:$0xff]   ;;  %v8103_v33 = vld [vmem:[%s11311_s1 + $0x884] ss:$8 sps:$4 sm:$0xff]   ;;  %v8136_v61 = vld [vmem:[%s11311_s1 + $0x14d4] ss:$8 sps:$4 sm:$0xff]  }
 0x1ef   :  { %5481 = vmatpush1.bf16.msra.mxu1 %v8021_v34  ;;  %v8106_v34 = vld [vmem:[%s11311_s1 + $0x1484] ss:$8 sps:$4 sm:$0xff]   ;;  %v8131_v62 = vld [vmem:[%s11311_s1 + $0x8d0] ss:$8 sps:$4 sm:$0xff]   ;;  %s8520_s14 = smov [#allocation2]  }
 0x1f0   :  { %5973 = vmatpush1.bf16.msra.mxu0 %v8024_v55  ;;  %5482 = vmatprep.subr.bf16.mxu1 %v8029_v8  ;;  %v8101_v55 = vld [vmem:[%s11311_s1 + $0x880] ss:$8 sps:$4 sm:$0xff]  }
 0x1f1   :  { %5974 = vmatprep.subr.bf16.mxu0 %v8032_v35  ;;  %v8104_v8 = vld [vmem:[%s11311_s1 + $0x1480] ss:$8 sps:$4 sm:$0xff]   ;;  %v8109_v35 = vld [vmem:[%s11311_s1 + $0x894] ss:$8 sps:$4 sm:$0xff]  }
 0x1f3   :  { %5483 = vmatpush1.bf16.msra.mxu1 %v8027_v18  ;;  %v8112_v18 = vld [vmem:[%s11311_s1 + $0x1494] ss:$8 sps:$4 sm:$0xff]  }
 0x1f4   :  { %5975 = vmatpush1.bf16.msra.mxu0 %v8030_v39  ;;  %5484 = vmatprep.subr.bf16.mxu1 %v8035_v40  ;;  %v8107_v39 = vld [vmem:[%s11311_s1 + $0x890] ss:$8 sps:$4 sm:$0xff]  }
 0x1f5   :  { %5976 = vmatprep.subr.bf16.mxu0 %v8038_v41  ;;  %v8110_v40 = vld [vmem:[%s11311_s1 + $0x1490] ss:$8 sps:$4 sm:$0xff]   ;;  %v8115_v41 = vld [vmem:[%s11311_s1 + $0x8a4] ss:$8 sps:$4 sm:$0xff]  }
 0x1f7   :  { %5485 = vmatpush1.bf16.msra.mxu1 %v8033_v44  ;;  %v8118_v44 = vld [vmem:[%s11311_s1 + $0x14a4] ss:$8 sps:$4 sm:$0xff]  }
 0x1f8   :  { %5977 = vmatpush1.bf16.msra.mxu0 %v8036_v36  ;;  %5486 = vmatprep.subr.bf16.mxu1 %v8041_v46  ;;  %v8113_v36 = vld [vmem:[%s11311_s1 + $0x8a0] ss:$8 sps:$4 sm:$0xff]  }
 0x1f9   :  { %5978 = vmatprep.subr.bf16.mxu0 %v8044_v47  ;;  %v8116_v46 = vld [vmem:[%s11311_s1 + $0x14a0] ss:$8 sps:$4 sm:$0xff]   ;;  %v8121_v47 = vld [vmem:[%s11311_s1 + $0x8b4] ss:$8 sps:$4 sm:$0xff]  }
 0x1fb   :  { %5487 = vmatpush1.bf16.msra.mxu1 %v8039_v51  ;;  %v8124_v51 = vld [vmem:[%s11311_s1 + $0x14b4] ss:$8 sps:$4 sm:$0xff]  }
 0x1fc   :  { %5979 = vmatpush1.bf16.msra.mxu0 %v8042_v52  ;;  %5488 = vmatprep.subr.bf16.mxu1 %v8047_v22  ;;  %v8119_v52 = vld [vmem:[%s11311_s1 + $0x8b0] ss:$8 sps:$4 sm:$0xff]  }
 0x1fd   :  { %5980 = vmatprep.subr.bf16.mxu0 %v8050_v23  ;;  %v8122_v22 = vld [vmem:[%s11311_s1 + $0x14b0] ss:$8 sps:$4 sm:$0xff]   ;;  %v8127_v23 = vld [vmem:[%s11311_s1 + $0x8c4] ss:$8 sps:$4 sm:$0xff]  }
 0x1ff   :  { %5489 = vmatpush1.bf16.msra.mxu1 %v8045_v57  ;;  %v8130_v57 = vld [vmem:[%s11311_s1 + $0x14c4] ss:$8 sps:$4 sm:$0xff]  }
 0x200   :  { %5981 = vmatpush1.bf16.msra.mxu0 %v8048_v58  ;;  %5499 = vmatprep.subr.bf16.mxu1 %v8054_v59  ;;  %v8125_v58 = vld [vmem:[%s11311_s1 + $0x8c0] ss:$8 sps:$4 sm:$0xff]  }
 0x201   :  { %5991 = vmatprep.subr.bf16.mxu0 %v8058_v42  ;;  %v8128_v59 = vld [vmem:[%s11311_s1 + $0x14c0] ss:$8 sps:$4 sm:$0xff]   ;;  %v8133_v42 = vld [vmem:[%s11311_s1 + $0x8d4] ss:$8 sps:$4 sm:$0xff]  }
 0x202   :  { %5491 = vmatmul.mubr.bf16.vlgmr.msra.gmra.mrb[0].mxu1 %v323_v63  ;;  %v8134_v63 = vld [vmem:[%s11311_s1 + $0x14d0] ss:$8 sps:$4 sm:$0xff]  }
 0x203   :  { %5983 = vmatmul.mubr.bf16.vlgmr.msra.gmra.mrb[0].mxu0 %v347_v0  ;;  %5500 = vmatpush1.bf16.msra.mxu1 %v8052_v1  ;;  %v8139_v0 = vld [vmem:[%s11311_s1 + $0x8e4] ss:$8 sps:$4 sm:$0xff]  }
 0x204   :  { %5992 = vmatpush1.bf16.msra.mxu0 %v8056_v2  ;;  %5501 = vmatprep.subr.bf16.mxu1 %v8061_v3  ;;  %v8142_v1 = vld [vmem:[%s11311_s1 + $0x14e4] ss:$8 sps:$4 sm:$0xff]   ;;  %v115_v2 = vcombine.high %v10234_v48, %v10234_v48  ;;  %v217_v3 = vcombine.high %v10239_v50, %v10239_v50  ;;  %v8148_v48 = vld [vmem:[%s11311_s1 + $0x14f4] ss:$8 sps:$4 sm:$0xff]  }
 0x205   :  { %5993 = vmatprep.subr.bf16.mxu0 %v8064_v19  ;;  %5531 = vmatprep.mubr.bf16.mxu1 %v326_v14  ;;  %v8137_v19 = vld [vmem:[%s11311_s1 + $0x8e0] ss:$8 sps:$4 sm:$0xff]  }
 0x206   :  { %6023 = vmatprep.mubr.bf16.mxu0 %v350_v4  ;;  %v8140_v14 = vld [vmem:[%s11311_s1 + $0x14e0] ss:$8 sps:$4 sm:$0xff]   ;;  %v8145_v4 = vld [vmem:[%s11311_s1 + $0x8f4] ss:$8 sps:$4 sm:$0xff]   ;;  %v10466_v50 = vrot.slane %v115_v2, %v8687_v49 }
 0x207   :  { %5502 = vmatpush1.bf16.msra.mxu1 %v8059_v5  ;;  %v10469_v5 = vrot.slane %v217_v3, %v8687_v49  ;;  %v8220_v2 = vld [vmem:[%s11311_s1 + $0x15b4] ss:$8 sps:$4 sm:$0xff]   ;;  %v8215_v3 = vld [vmem:[%s11311_s1 + $0x9b0] ss:$8 sps:$4 sm:$0xff]  }
 0x208   :  { %5994 = vmatpush1.bf16.msra.mxu0 %v8062_v6  ;;  %5503 = vmatprep.subr.bf16.mxu1 %v8067_v37  ;;  %v8143_v6 = vld [vmem:[%s11311_s1 + $0x8f0] ss:$8 sps:$4 sm:$0xff]  }
 0x209   :  { %5995 = vmatprep.subr.bf16.mxu0 %v8070_v45  ;;  %v8146_v37 = vld [vmem:[%s11311_s1 + $0x14f0] ss:$8 sps:$4 sm:$0xff]   ;;  %v8151_v45 = vld [vmem:[%s11311_s1 + $0x904] ss:$8 sps:$4 sm:$0xff]  }
 0x20b   :  { %5504 = vmatpush1.bf16.msra.mxu1 %v8065_v7  ;;  %v8154_v7 = vld [vmem:[%s11311_s1 + $0x1504] ss:$8 sps:$4 sm:$0xff]  }
 0x20c   :  { %5996 = vmatpush1.bf16.msra.mxu0 %v8068_v54  ;;  %5505 = vmatprep.subr.bf16.mxu1 %v8073_v9  ;;  %v131_v54 = vcombine.high %v10466_v50, %v10466_v50  ;;  %v233_v9 = vcombine.high %v10469_v5, %v10469_v5 }
 0x20d   :  { %5997 = vmatprep.subr.bf16.mxu0 %v8076_v10  ;;  %v325_v10 = vpack.c.bf16 %v10255_v53, %v10255_v53  ;;  %v8160_v53 = vld [vmem:[%s11311_s1 + $0x1514] ss:$8 sps:$4 sm:$0xff]  }
 0x20f   :  { %5506 = vmatpush1.bf16.msra.mxu1 %v8071_v11  ;;  %v349_v11 = vpack.c.bf16 %v10259_v56, %v10259_v56  ;;  %v328_v56 = vpack.c.bf16 %v131_v54, %v131_v54  ;;  %v8230_v54 = vld [vmem:[%s11311_s1 + $0x15d0] ss:$8 sps:$4 sm:$0xff]  }
 0x210   :  { %5998 = vmatpush1.bf16.msra.mxu0 %v8074_v12  ;;  %5507 = vmatprep.subr.bf16.mxu1 %v8079_v13  ;;  %v8149_v12 = vld [vmem:[%s11311_s1 + $0x900] ss:$8 sps:$4 sm:$0xff]  }
 0x211   :  { %5999 = vmatprep.subr.bf16.mxu0 %v8082_v16  ;;  %v8152_v13 = vld [vmem:[%s11311_s1 + $0x1500] ss:$8 sps:$4 sm:$0xff]   ;;  %v8157_v16 = vld [vmem:[%s11311_s1 + $0x914] ss:$8 sps:$4 sm:$0xff]  }
 0x213   :  { %5508 = vmatpush1.bf16.msra.mxu1 %v8077_v17  ;;  %v352_v17 = vpack.c.bf16 %v233_v9, %v233_v9  ;;  %v8235_v9 = vld [vmem:[%s11311_s1 + $0x9e4] ss:$8 sps:$4 sm:$0xff]  }
 0x214   :  { %6000 = vmatpush1.bf16.msra.mxu0 %v8080_v20  ;;  %5509 = vmatprep.subr.bf16.mxu1 %v8085_v21  ;;  %v8155_v20 = vld [vmem:[%s11311_s1 + $0x910] ss:$8 sps:$4 sm:$0xff]  }
 0x215   :  { %6001 = vmatprep.subr.bf16.mxu0 %v8088_v60  ;;  %v8158_v21 = vld [vmem:[%s11311_s1 + $0x1510] ss:$8 sps:$4 sm:$0xff]   ;;  %v8163_v60 = vld [vmem:[%s11311_s1 + $0x924] ss:$8 sps:$4 sm:$0xff]  }
 0x217   :  { %5510 = vmatpush1.bf16.msra.mxu1 %v8083_v15  ;;  %v8166_v15 = vld [vmem:[%s11311_s1 + $0x1524] ss:$8 sps:$4 sm:$0xff]  }
 0x218   :  { %6002 = vmatpush1.bf16.msra.mxu0 %v8086_v24  ;;  %5511 = vmatprep.subr.bf16.mxu1 %v8091_v25  ;;  %v8161_v24 = vld [vmem:[%s11311_s1 + $0x920] ss:$8 sps:$4 sm:$0xff]  }
 0x219   :  { %6003 = vmatprep.subr.bf16.mxu0 %v8094_v26  ;;  %v8164_v25 = vld [vmem:[%s11311_s1 + $0x1520] ss:$8 sps:$4 sm:$0xff]   ;;  %v8169_v26 = vld [vmem:[%s11311_s1 + $0x934] ss:$8 sps:$4 sm:$0xff]  }
 0x21b   :  { %5512 = vmatpush1.bf16.msra.mxu1 %v8089_v27  ;;  %v8172_v27 = vld [vmem:[%s11311_s1 + $0x1534] ss:$8 sps:$4 sm:$0xff]  }
 0x21c   :  { %6004 = vmatpush1.bf16.msra.mxu0 %v8092_v28  ;;  %5513 = vmatprep.subr.bf16.mxu1 %v8097_v29  ;;  %v8167_v28 = vld [vmem:[%s11311_s1 + $0x930] ss:$8 sps:$4 sm:$0xff]  }
 0x21d   :  { %6005 = vmatprep.subr.bf16.mxu0 %v8100_v30  ;;  %v8170_v29 = vld [vmem:[%s11311_s1 + $0x1530] ss:$8 sps:$4 sm:$0xff]   ;;  %v8175_v30 = vld [vmem:[%s11311_s1 + $0x944] ss:$8 sps:$4 sm:$0xff]  }
 0x21f   :  { %5514 = vmatpush1.bf16.msra.mxu1 %v8095_v31  ;;  %v8178_v31 = vld [vmem:[%s11311_s1 + $0x1544] ss:$8 sps:$4 sm:$0xff]  }
 0x220   :  { %6006 = vmatpush1.bf16.msra.mxu0 %v8098_v32  ;;  %5515 = vmatprep.subr.bf16.mxu1 %v8103_v33  ;;  %v8173_v32 = vld [vmem:[%s11311_s1 + $0x940] ss:$8 sps:$4 sm:$0xff]  }
 0x221   :  { %6007 = vmatprep.subr.bf16.mxu0 %v8106_v34  ;;  %v8176_v33 = vld [vmem:[%s11311_s1 + $0x1540] ss:$8 sps:$4 sm:$0xff]   ;;  %v8181_v34 = vld [vmem:[%s11311_s1 + $0x954] ss:$8 sps:$4 sm:$0xff]  }
 0x223   :  { %5516 = vmatpush1.bf16.msra.mxu1 %v8101_v55  ;;  %v8184_v55 = vld [vmem:[%s11311_s1 + $0x1554] ss:$8 sps:$4 sm:$0xff]  }
 0x224   :  { %6008 = vmatpush1.bf16.msra.mxu0 %v8104_v8  ;;  %5517 = vmatprep.subr.bf16.mxu1 %v8109_v35  ;;  %v8179_v8 = vld [vmem:[%s11311_s1 + $0x950] ss:$8 sps:$4 sm:$0xff]  }
 0x225   :  { %6009 = vmatprep.subr.bf16.mxu0 %v8112_v18  ;;  %v8182_v35 = vld [vmem:[%s11311_s1 + $0x1550] ss:$8 sps:$4 sm:$0xff]   ;;  %v8187_v18 = vld [vmem:[%s11311_s1 + $0x964] ss:$8 sps:$4 sm:$0xff]  }
 0x227   :  { %5518 = vmatpush1.bf16.msra.mxu1 %v8107_v39  ;;  %v8190_v39 = vld [vmem:[%s11311_s1 + $0x1564] ss:$8 sps:$4 sm:$0xff]  }
 0x228   :  { %6010 = vmatpush1.bf16.msra.mxu0 %v8110_v40  ;;  %5519 = vmatprep.subr.bf16.mxu1 %v8115_v41  ;;  %v8185_v40 = vld [vmem:[%s11311_s1 + $0x960] ss:$8 sps:$4 sm:$0xff]  }
 0x229   :  { %6011 = vmatprep.subr.bf16.mxu0 %v8118_v44  ;;  %v8188_v41 = vld [vmem:[%s11311_s1 + $0x1560] ss:$8 sps:$4 sm:$0xff]   ;;  %v8193_v44 = vld [vmem:[%s11311_s1 + $0x974] ss:$8 sps:$4 sm:$0xff]  }
 0x22b   :  { %5520 = vmatpush1.bf16.msra.mxu1 %v8113_v36  ;;  %v8196_v36 = vld [vmem:[%s11311_s1 + $0x1574] ss:$8 sps:$4 sm:$0xff]  }
 0x22c   :  { %6012 = vmatpush1.bf16.msra.mxu0 %v8116_v46  ;;  %5521 = vmatprep.subr.bf16.mxu1 %v8121_v47  ;;  %v8191_v46 = vld [vmem:[%s11311_s1 + $0x970] ss:$8 sps:$4 sm:$0xff]  }
 0x22d   :  { %6013 = vmatprep.subr.bf16.mxu0 %v8124_v51  ;;  %v8194_v47 = vld [vmem:[%s11311_s1 + $0x1570] ss:$8 sps:$4 sm:$0xff]   ;;  %v8199_v51 = vld [vmem:[%s11311_s1 + $0x984] ss:$8 sps:$4 sm:$0xff]  }
 0x22f   :  { %5522 = vmatpush1.bf16.msra.mxu1 %v8119_v52  ;;  %v8202_v52 = vld [vmem:[%s11311_s1 + $0x1584] ss:$8 sps:$4 sm:$0xff]  }
 0x230   :  { %6014 = vmatpush1.bf16.msra.mxu0 %v8122_v22  ;;  %5523 = vmatprep.subr.bf16.mxu1 %v8127_v23  ;;  %v8197_v22 = vld [vmem:[%s11311_s1 + $0x980] ss:$8 sps:$4 sm:$0xff]  }
 0x231   :  { %6015 = vmatprep.subr.bf16.mxu0 %v8130_v57  ;;  %v8200_v23 = vld [vmem:[%s11311_s1 + $0x1580] ss:$8 sps:$4 sm:$0xff]   ;;  %v8205_v57 = vld [vmem:[%s11311_s1 + $0x994] ss:$8 sps:$4 sm:$0xff]  }
 0x233   :  { %5524 = vmatpush1.bf16.msra.mxu1 %v8125_v58  ;;  %v8208_v58 = vld [vmem:[%s11311_s1 + $0x1594] ss:$8 sps:$4 sm:$0xff]  }
 0x234   :  { %6016 = vmatpush1.bf16.msra.mxu0 %v8128_v59  ;;  %5525 = vmatprep.subr.bf16.mxu1 %v8133_v42  ;;  %v8203_v59 = vld [vmem:[%s11311_s1 + $0x990] ss:$8 sps:$4 sm:$0xff]  }
 0x235   :  { %6017 = vmatprep.subr.bf16.mxu0 %v8136_v61  ;;  %v8206_v42 = vld [vmem:[%s11311_s1 + $0x1590] ss:$8 sps:$4 sm:$0xff]   ;;  %v8211_v61 = vld [vmem:[%s11311_s1 + $0x9a4] ss:$8 sps:$4 sm:$0xff]  }
 0x237   :  { %5526 = vmatpush1.bf16.msra.mxu1 %v8131_v62  ;;  %v8214_v62 = vld [vmem:[%s11311_s1 + $0x15a4] ss:$8 sps:$4 sm:$0xff]  }
 0x238   :  { %6018 = vmatpush1.bf16.msra.mxu0 %v8134_v63  ;;  %5527 = vmatprep.subr.bf16.mxu1 %v8139_v0  ;;  %v8209_v63 = vld [vmem:[%s11311_s1 + $0x9a0] ss:$8 sps:$4 sm:$0xff]  }
 0x239   :  { %6019 = vmatprep.subr.bf16.mxu0 %v8142_v1  ;;  %v8212_v0 = vld [vmem:[%s11311_s1 + $0x15a0] ss:$8 sps:$4 sm:$0xff]   ;;  %v8217_v1 = vld [vmem:[%s11311_s1 + $0x9b4] ss:$8 sps:$4 sm:$0xff]  }
 0x23b   :  { %5528 = vmatpush1.bf16.msra.mxu1 %v8137_v19  ;;  %v8218_v19 = vld [vmem:[%s11311_s1 + $0x15b0] ss:$8 sps:$4 sm:$0xff]  }
 0x23c   :  { %6020 = vmatpush1.bf16.msra.mxu0 %v8140_v14  ;;  %5529 = vmatprep.subr.bf16.mxu1 %v8145_v4  ;;  %v8223_v14 = vld [vmem:[%s11311_s1 + $0x9c4] ss:$8 sps:$4 sm:$0xff]  }
 0x23d   :  { %6021 = vmatprep.subr.bf16.mxu0 %v8148_v48  ;;  %v8226_v4 = vld [vmem:[%s11311_s1 + $0x15c4] ss:$8 sps:$4 sm:$0xff]   ;;  %v8221_v48 = vld [vmem:[%s11311_s1 + $0x9c0] ss:$8 sps:$4 sm:$0xff]  }
 0x23f   :  { %5530 = vmatpush1.bf16.msra.mxu1 %v8143_v6  ;;  %v8224_v6 = vld [vmem:[%s11311_s1 + $0x15c0] ss:$8 sps:$4 sm:$0xff]  }
 0x240   :  { %6022 = vmatpush1.bf16.msra.mxu0 %v8146_v37  ;;  %5540 = vmatprep.subr.bf16.mxu1 %v8151_v45  ;;  %v8229_v37 = vld [vmem:[%s11311_s1 + $0x9d4] ss:$8 sps:$4 sm:$0xff]  }
 0x241   :  { %6032 = vmatprep.subr.bf16.mxu0 %v8154_v7  ;;  %v8232_v45 = vld [vmem:[%s11311_s1 + $0x15d4] ss:$8 sps:$4 sm:$0xff]   ;;  %v8227_v7 = vld [vmem:[%s11311_s1 + $0x9d0] ss:$8 sps:$4 sm:$0xff]  }
 0x242   :  { %5532 = vmatmul.mubr.bf16.vlgmr.msra.gmra.mrb[0].mxu1 %v325_v10  ;;  %v8238_v10 = vld [vmem:[%s11311_s1 + $0x15e4] ss:$8 sps:$4 sm:$0xff]  }
 0x243   :  { %6024 = vmatmul.mubr.bf16.vlgmr.msra.gmra.mrb[0].mxu0 %v349_v11  ;;  %5541 = vmatpush1.bf16.msra.mxu1 %v8149_v12  ;;  %v10662_v11 = vld [vmem:[%s11310_s0 + $0x28] sm:$0xff]  ;;  %v10667_v12 = vld [vmem:[%s11310_s0 + $0x58] sm:$0xff] }
 0x244   :  { %6033 = vmatpush1.bf16.msra.mxu0 %v8152_v13  ;;  %5542 = vmatprep.subr.bf16.mxu1 %v8157_v16  ;;  %v8233_v13 = vld [vmem:[%s11311_s1 + $0x9e0] ss:$8 sps:$4 sm:$0xff]  }
 0x245   :  { %6034 = vmatprep.subr.bf16.mxu0 %v8160_v53  ;;  %5572 = vmatprep.mubr.bf16.mxu1 %v328_v56  ;;  %v8236_v16 = vld [vmem:[%s11311_s1 + $0x15e0] ss:$8 sps:$4 sm:$0xff]   ;;  %v8241_v53 = vld [vmem:[%s11311_s1 + $0x9f4] ss:$8 sps:$4 sm:$0xff]  }
 0x246   :  { %6064 = vmatprep.mubr.bf16.mxu0 %v352_v17  ;;  %v8244_v56 = vld [vmem:[%s11311_s1 + $0x15f4] ss:$8 sps:$4 sm:$0xff]   ;;  %v10683_v17 = vrot.slane %v10662_v11, %v8687_v49 }
 0x247   :  { %5543 = vmatpush1.bf16.msra.mxu1 %v8155_v20  ;;  %v10687_v20 = vrot.slane %v10667_v12, %v8687_v49 }
 0x248   :  { %6035 = vmatpush1.bf16.msra.mxu0 %v8158_v21  ;;  %5544 = vmatprep.subr.bf16.mxu1 %v8163_v60  ;;  %v8239_v21 = vld [vmem:[%s11311_s1 + $0x9f0] ss:$8 sps:$4 sm:$0xff]  }
 0x249   :  { %6036 = vmatprep.subr.bf16.mxu0 %v8166_v15  ;;  %v8242_v60 = vld [vmem:[%s11311_s1 + $0x15f0] ss:$8 sps:$4 sm:$0xff]   ;;  %v8248_v15 = vld [vmem:[%s11311_s1 + $0xa04] ss:$8 sps:$4 sm:$0xff]  }
 0x24b   :  { %5545 = vmatpush1.bf16.msra.mxu1 %v8161_v24  ;;  %v8252_v24 = vld [vmem:[%s11311_s1 + $0x1604] ss:$8 sps:$4 sm:$0xff]  }
 0x24c   :  { %6037 = vmatpush1.bf16.msra.mxu0 %v8164_v25  ;;  %5546 = vmatprep.subr.bf16.mxu1 %v8169_v26  ;;  %v147_v25 = vcombine.high %v10683_v17, %v10683_v17  ;;  %v249_v26 = vcombine.high %v10687_v20, %v10687_v20 }
 0x24d   :  { %6038 = vmatprep.subr.bf16.mxu0 %v8172_v27  ;;  %v327_v27 = vpack.c.bf16 %v10466_v50, %v10466_v50  ;;  %v8258_v50 = vld [vmem:[%s11311_s1 + $0x1614] ss:$8 sps:$4 sm:$0xff]  }
 0x24f   :  { %5547 = vmatpush1.bf16.msra.mxu1 %v8167_v28  ;;  %v351_v28 = vpack.c.bf16 %v10469_v5, %v10469_v5  ;;  %v330_v5 = vpack.c.bf16 %v147_v25, %v147_v25  ;;  %v8330_v25 = vld [vmem:[%s11311_s1 + $0x16d4] ss:$8 sps:$4 sm:$0xff]  }
 0x250   :  { %6039 = vmatpush1.bf16.msra.mxu0 %v8170_v29  ;;  %5548 = vmatprep.subr.bf16.mxu1 %v8175_v30  ;;  %v8246_v29 = vld [vmem:[%s11311_s1 + $0xa00] ss:$8 sps:$4 sm:$0xff]  }
 0x251   :  { %6040 = vmatprep.subr.bf16.mxu0 %v8178_v31  ;;  %v8250_v30 = vld [vmem:[%s11311_s1 + $0x1600] ss:$8 sps:$4 sm:$0xff]   ;;  %v8255_v31 = vld [vmem:[%s11311_s1 + $0xa14] ss:$8 sps:$4 sm:$0xff]  }
 0x253   :  { %5549 = vmatpush1.bf16.msra.mxu1 %v8173_v32  ;;  %v354_v32 = vpack.c.bf16 %v249_v26, %v249_v26  ;;  %v8325_v26 = vld [vmem:[%s11311_s1 + $0xad0] ss:$8 sps:$4 sm:$0xff]  }
 0x254   :  { %6041 = vmatpush1.bf16.msra.mxu0 %v8176_v33  ;;  %5550 = vmatprep.subr.bf16.mxu1 %v8181_v34  ;;  %v8253_v33 = vld [vmem:[%s11311_s1 + $0xa10] ss:$8 sps:$4 sm:$0xff]  }
 0x255   :  { %6042 = vmatprep.subr.bf16.mxu0 %v8184_v55  ;;  %v8256_v34 = vld [vmem:[%s11311_s1 + $0x1610] ss:$8 sps:$4 sm:$0xff]   ;;  %v8261_v55 = vld [vmem:[%s11311_s1 + $0xa24] ss:$8 sps:$4 sm:$0xff]  }
 0x257   :  { %5551 = vmatpush1.bf16.msra.mxu1 %v8179_v8  ;;  %v8264_v8 = vld [vmem:[%s11311_s1 + $0x1624] ss:$8 sps:$4 sm:$0xff]  }
 0x258   :  { %6043 = vmatpush1.bf16.msra.mxu0 %v8182_v35  ;;  %5552 = vmatprep.subr.bf16.mxu1 %v8187_v18  ;;  %v8259_v35 = vld [vmem:[%s11311_s1 + $0xa20] ss:$8 sps:$4 sm:$0xff]  }
 0x259   :  { %6044 = vmatprep.subr.bf16.mxu0 %v8190_v39  ;;  %v8262_v18 = vld [vmem:[%s11311_s1 + $0x1620] ss:$8 sps:$4 sm:$0xff]   ;;  %v8267_v39 = vld [vmem:[%s11311_s1 + $0xa34] ss:$8 sps:$4 sm:$0xff]  }
 0x25b   :  { %5553 = vmatpush1.bf16.msra.mxu1 %v8185_v40  ;;  %v8270_v40 = vld [vmem:[%s11311_s1 + $0x1634] ss:$8 sps:$4 sm:$0xff]  }
 0x25c   :  { %6045 = vmatpush1.bf16.msra.mxu0 %v8188_v41  ;;  %5554 = vmatprep.subr.bf16.mxu1 %v8193_v44  ;;  %v8265_v41 = vld [vmem:[%s11311_s1 + $0xa30] ss:$8 sps:$4 sm:$0xff]  }
 0x25d   :  { %6046 = vmatprep.subr.bf16.mxu0 %v8196_v36  ;;  %v8268_v44 = vld [vmem:[%s11311_s1 + $0x1630] ss:$8 sps:$4 sm:$0xff]   ;;  %v8273_v36 = vld [vmem:[%s11311_s1 + $0xa44] ss:$8 sps:$4 sm:$0xff]  }
 0x25f   :  { %5555 = vmatpush1.bf16.msra.mxu1 %v8191_v46  ;;  %v8276_v46 = vld [vmem:[%s11311_s1 + $0x1644] ss:$8 sps:$4 sm:$0xff]  }
 0x260   :  { %6047 = vmatpush1.bf16.msra.mxu0 %v8194_v47  ;;  %5556 = vmatprep.subr.bf16.mxu1 %v8199_v51  ;;  %v8271_v47 = vld [vmem:[%s11311_s1 + $0xa40] ss:$8 sps:$4 sm:$0xff]  }
 0x261   :  { %6048 = vmatprep.subr.bf16.mxu0 %v8202_v52  ;;  %v8274_v51 = vld [vmem:[%s11311_s1 + $0x1640] ss:$8 sps:$4 sm:$0xff]   ;;  %v8279_v52 = vld [vmem:[%s11311_s1 + $0xa54] ss:$8 sps:$4 sm:$0xff]  }
 0x263   :  { %5557 = vmatpush1.bf16.msra.mxu1 %v8197_v22  ;;  %v8282_v22 = vld [vmem:[%s11311_s1 + $0x1654] ss:$8 sps:$4 sm:$0xff]  }
 0x264   :  { %6049 = vmatpush1.bf16.msra.mxu0 %v8200_v23  ;;  %5558 = vmatprep.subr.bf16.mxu1 %v8205_v57  ;;  %v8277_v23 = vld [vmem:[%s11311_s1 + $0xa50] ss:$8 sps:$4 sm:$0xff]  }
 0x265   :  { %6050 = vmatprep.subr.bf16.mxu0 %v8208_v58  ;;  %v8280_v57 = vld [vmem:[%s11311_s1 + $0x1650] ss:$8 sps:$4 sm:$0xff]   ;;  %v8285_v58 = vld [vmem:[%s11311_s1 + $0xa64] ss:$8 sps:$4 sm:$0xff]  }
 0x267   :  { %5559 = vmatpush1.bf16.msra.mxu1 %v8203_v59  ;;  %v8288_v59 = vld [vmem:[%s11311_s1 + $0x1664] ss:$8 sps:$4 sm:$0xff]  }
 0x268   :  { %6051 = vmatpush1.bf16.msra.mxu0 %v8206_v42  ;;  %5560 = vmatprep.subr.bf16.mxu1 %v8211_v61  ;;  %v8283_v42 = vld [vmem:[%s11311_s1 + $0xa60] ss:$8 sps:$4 sm:$0xff]  }
 0x269   :  { %6052 = vmatprep.subr.bf16.mxu0 %v8214_v62  ;;  %v8286_v61 = vld [vmem:[%s11311_s1 + $0x1660] ss:$8 sps:$4 sm:$0xff]   ;;  %v8291_v62 = vld [vmem:[%s11311_s1 + $0xa74] ss:$8 sps:$4 sm:$0xff]  }
 0x26b   :  { %5561 = vmatpush1.bf16.msra.mxu1 %v8209_v63  ;;  %v8294_v63 = vld [vmem:[%s11311_s1 + $0x1674] ss:$8 sps:$4 sm:$0xff]  }
 0x26c   :  { %6053 = vmatpush1.bf16.msra.mxu0 %v8212_v0  ;;  %5562 = vmatprep.subr.bf16.mxu1 %v8217_v1  ;;  %v8289_v0 = vld [vmem:[%s11311_s1 + $0xa70] ss:$8 sps:$4 sm:$0xff]  }
 0x26d   :  { %6054 = vmatprep.subr.bf16.mxu0 %v8220_v2  ;;  %v8292_v1 = vld [vmem:[%s11311_s1 + $0x1670] ss:$8 sps:$4 sm:$0xff]   ;;  %v8297_v2 = vld [vmem:[%s11311_s1 + $0xa84] ss:$8 sps:$4 sm:$0xff]  }
 0x26f   :  { %5563 = vmatpush1.bf16.msra.mxu1 %v8215_v3  ;;  %v8300_v3 = vld [vmem:[%s11311_s1 + $0x1684] ss:$8 sps:$4 sm:$0xff]  }
 0x270   :  { %6055 = vmatpush1.bf16.msra.mxu0 %v8218_v19  ;;  %5564 = vmatprep.subr.bf16.mxu1 %v8223_v14  ;;  %v8295_v19 = vld [vmem:[%s11311_s1 + $0xa80] ss:$8 sps:$4 sm:$0xff]  }
 0x271   :  { %6056 = vmatprep.subr.bf16.mxu0 %v8226_v4  ;;  %v8298_v14 = vld [vmem:[%s11311_s1 + $0x1680] ss:$8 sps:$4 sm:$0xff]   ;;  %v8303_v4 = vld [vmem:[%s11311_s1 + $0xa94] ss:$8 sps:$4 sm:$0xff]  }
 0x273   :  { %5565 = vmatpush1.bf16.msra.mxu1 %v8221_v48  ;;  %v8306_v48 = vld [vmem:[%s11311_s1 + $0x1694] ss:$8 sps:$4 sm:$0xff]  }
 0x274   :  { %6057 = vmatpush1.bf16.msra.mxu0 %v8224_v6  ;;  %5566 = vmatprep.subr.bf16.mxu1 %v8229_v37  ;;  %v8301_v6 = vld [vmem:[%s11311_s1 + $0xa90] ss:$8 sps:$4 sm:$0xff]  }
 0x275   :  { %6058 = vmatprep.subr.bf16.mxu0 %v8232_v45  ;;  %v8304_v37 = vld [vmem:[%s11311_s1 + $0x1690] ss:$8 sps:$4 sm:$0xff]   ;;  %v8309_v45 = vld [vmem:[%s11311_s1 + $0xaa4] ss:$8 sps:$4 sm:$0xff]  }
 0x277   :  { %5567 = vmatpush1.bf16.msra.mxu1 %v8227_v7  ;;  %v8312_v7 = vld [vmem:[%s11311_s1 + $0x16a4] ss:$8 sps:$4 sm:$0xff]  }
 0x278   :  { %6059 = vmatpush1.bf16.msra.mxu0 %v8230_v54  ;;  %5568 = vmatprep.subr.bf16.mxu1 %v8235_v9  ;;  %v8307_v54 = vld [vmem:[%s11311_s1 + $0xaa0] ss:$8 sps:$4 sm:$0xff]  }
 0x279   :  { %6060 = vmatprep.subr.bf16.mxu0 %v8238_v10  ;;  %v8310_v9 = vld [vmem:[%s11311_s1 + $0x16a0] ss:$8 sps:$4 sm:$0xff]   ;;  %v8315_v10 = vld [vmem:[%s11311_s1 + $0xab4] ss:$8 sps:$4 sm:$0xff]  }
 0x27b   :  { %5569 = vmatpush1.bf16.msra.mxu1 %v8233_v13  ;;  %v8318_v13 = vld [vmem:[%s11311_s1 + $0x16b4] ss:$8 sps:$4 sm:$0xff]  }
 0x27c   :  { %6061 = vmatpush1.bf16.msra.mxu0 %v8236_v16  ;;  %5570 = vmatprep.subr.bf16.mxu1 %v8241_v53  ;;  %v8313_v16 = vld [vmem:[%s11311_s1 + $0xab0] ss:$8 sps:$4 sm:$0xff]  }
 0x27d   :  { %6062 = vmatprep.subr.bf16.mxu0 %v8244_v56  ;;  %v8316_v53 = vld [vmem:[%s11311_s1 + $0x16b0] ss:$8 sps:$4 sm:$0xff]   ;;  %v8321_v56 = vld [vmem:[%s11311_s1 + $0xac4] ss:$8 sps:$4 sm:$0xff]  }
 0x27f   :  { %5571 = vmatpush1.bf16.msra.mxu1 %v8239_v21  ;;  %v8324_v21 = vld [vmem:[%s11311_s1 + $0x16c4] ss:$8 sps:$4 sm:$0xff]  }
 0x280   :  { %6063 = vmatpush1.bf16.msra.mxu0 %v8242_v60  ;;  %5581 = vmatprep.subr.bf16.mxu1 %v8248_v15  ;;  %v8319_v60 = vld [vmem:[%s11311_s1 + $0xac0] ss:$8 sps:$4 sm:$0xff]  }
 0x281   :  { %6073 = vmatprep.subr.bf16.mxu0 %v8252_v24  ;;  %v8322_v15 = vld [vmem:[%s11311_s1 + $0x16c0] ss:$8 sps:$4 sm:$0xff]   ;;  %v8327_v24 = vld [vmem:[%s11311_s1 + $0xad4] ss:$8 sps:$4 sm:$0xff]  }
 0x282   :  { %5573 = vmatmul.mubr.bf16.vlgmr.msra.gmra.mrb[0].mxu1 %v327_v27  ;;  %v8328_v27 = vld [vmem:[%s11311_s1 + $0x16d0] ss:$8 sps:$4 sm:$0xff]  }
 0x283   :  { %6065 = vmatmul.mubr.bf16.vlgmr.msra.gmra.mrb[0].mxu0 %v351_v28  ;;  %5582 = vmatpush1.bf16.msra.mxu1 %v8246_v29  ;;  %v8333_v28 = vld [vmem:[%s11311_s1 + $0xae4] ss:$8 sps:$4 sm:$0xff]  }
 0x284   :  { %6074 = vmatpush1.bf16.msra.mxu0 %v8250_v30  ;;  %5583 = vmatprep.subr.bf16.mxu1 %v8255_v31  ;;  %v8336_v29 = vld [vmem:[%s11311_s1 + $0x16e4] ss:$8 sps:$4 sm:$0xff]   ;;  %v132_v30 = vcombine.high %v10662_v11, %v10662_v11  ;;  %v234_v31 = vcombine.high %v10667_v12, %v10667_v12  ;;  %v8342_v11 = vld [vmem:[%s11311_s1 + $0x16f4] ss:$8 sps:$4 sm:$0xff]  }
 0x285   :  { %6075 = vmatprep.subr.bf16.mxu0 %v8258_v50  ;;  %5613 = vmatprep.mubr.bf16.mxu1 %v330_v5  ;;  %v8331_v50 = vld [vmem:[%s11311_s1 + $0xae0] ss:$8 sps:$4 sm:$0xff]  }
 0x286   :  { %6105 = vmatprep.mubr.bf16.mxu0 %v354_v32  ;;  %v8334_v5 = vld [vmem:[%s11311_s1 + $0x16e0] ss:$8 sps:$4 sm:$0xff]   ;;  %v8339_v32 = vld [vmem:[%s11311_s1 + $0xaf4] ss:$8 sps:$4 sm:$0xff]   ;;  %v10894_v12 = vrot.slane %v132_v30, %v8687_v49  ;;  %v8409_v30 = vld [vmem:[%s11311_s1 + $0xbb0] ss:$8 sps:$4 sm:$0xff]  }
 0x287   :  { %5584 = vmatpush1.bf16.msra.mxu1 %v8253_v33  ;;  %v10897_v33 = vrot.slane %v234_v31, %v8687_v49  ;;  %v8348_v49 = vld [vmem:[%s11311_s1 + $0x1704] ss:$8 sps:$4 sm:$0xff]   ;;  %v8412_v31 = vld [vmem:[%s11311_s1 + $0x17b0] ss:$8 sps:$4 sm:$0xff]  }
 0x288   :  { %6076 = vmatpush1.bf16.msra.mxu0 %v8256_v34  ;;  %5585 = vmatprep.subr.bf16.mxu1 %v8261_v55  ;;  %v8337_v34 = vld [vmem:[%s11311_s1 + $0xaf0] ss:$8 sps:$4 sm:$0xff]  }
 0x289   :  { %6077 = vmatprep.subr.bf16.mxu0 %v8264_v8  ;;  %v8340_v55 = vld [vmem:[%s11311_s1 + $0x16f0] ss:$8 sps:$4 sm:$0xff]   ;;  %v8345_v8 = vld [vmem:[%s11311_s1 + $0xb04] ss:$8 sps:$4 sm:$0xff]  }
 0x28b   :  { %5586 = vmatpush1.bf16.msra.mxu1 %v8259_v35  ;;  %v148_v35 = vcombine.high %v10894_v12, %v10894_v12 }
 0x28c   :  { %6078 = vmatpush1.bf16.msra.mxu0 %v8262_v18  ;;  %5587 = vmatprep.subr.bf16.mxu1 %v8267_v39  ;;  %v250_v18 = vcombine.high %v10897_v33, %v10897_v33  ;;  %v329_v39 = vpack.c.bf16 %v10683_v17, %v10683_v17  ;;  %v8354_v17 = vld [vmem:[%s11311_s1 + $0x1714] ss:$8 sps:$4 sm:$0xff]  }
 0x28d   :  { %6079 = vmatprep.subr.bf16.mxu0 %v8270_v40  ;;  %v353_v40 = vpack.c.bf16 %v10687_v20, %v10687_v20  ;;  %v332_v20 = vpack.c.bf16 %v148_v35, %v148_v35  ;;  %v8429_v35 = vld [vmem:[%s11311_s1 + $0xbe4] ss:$8 sps:$4 sm:$0xff]  }
 0x28f   :  { %5588 = vmatpush1.bf16.msra.mxu1 %v8265_v41  ;;  %v8343_v41 = vld [vmem:[%s11311_s1 + $0xb00] ss:$8 sps:$4 sm:$0xff]  }
 0x290   :  { %6080 = vmatpush1.bf16.msra.mxu0 %v8268_v44  ;;  %5589 = vmatprep.subr.bf16.mxu1 %v8273_v36  ;;  %v8346_v44 = vld [vmem:[%s11311_s1 + $0x1700] ss:$8 sps:$4 sm:$0xff]   ;;  %v8351_v36 = vld [vmem:[%s11311_s1 + $0xb14] ss:$8 sps:$4 sm:$0xff]  }
 0x291   :  { %6081 = vmatprep.subr.bf16.mxu0 %v8276_v46  ;;  %v356_v46 = vpack.c.bf16 %v250_v18, %v250_v18  ;;  %v8432_v18 = vld [vmem:[%s11311_s1 + $0x17e4] ss:$8 sps:$4 sm:$0xff]  }
 0x293   :  { %5590 = vmatpush1.bf16.msra.mxu1 %v8271_v47  ;;  %v8349_v47 = vld [vmem:[%s11311_s1 + $0xb10] ss:$8 sps:$4 sm:$0xff]  }
 0x294   :  { %6082 = vmatpush1.bf16.msra.mxu0 %v8274_v51  ;;  %5591 = vmatprep.subr.bf16.mxu1 %v8279_v52  ;;  %v8352_v51 = vld [vmem:[%s11311_s1 + $0x1710] ss:$8 sps:$4 sm:$0xff]   ;;  %v8357_v52 = vld [vmem:[%s11311_s1 + $0xb24] ss:$8 sps:$4 sm:$0xff]  }
 0x295   :  { %6083 = vmatprep.subr.bf16.mxu0 %v8282_v22  ;;  %v8360_v22 = vld [vmem:[%s11311_s1 + $0x1724] ss:$8 sps:$4 sm:$0xff]  }
 0x297   :  { %5592 = vmatpush1.bf16.msra.mxu1 %v8277_v23  ;;  %v8355_v23 = vld [vmem:[%s11311_s1 + $0xb20] ss:$8 sps:$4 sm:$0xff]  }
 0x298   :  { %6084 = vmatpush1.bf16.msra.mxu0 %v8280_v57  ;;  %5593 = vmatprep.subr.bf16.mxu1 %v8285_v58  ;;  %v8358_v57 = vld [vmem:[%s11311_s1 + $0x1720] ss:$8 sps:$4 sm:$0xff]   ;;  %v8363_v58 = vld [vmem:[%s11311_s1 + $0xb34] ss:$8 sps:$4 sm:$0xff]  }
 0x299   :  { %6085 = vmatprep.subr.bf16.mxu0 %v8288_v59  ;;  %v8366_v59 = vld [vmem:[%s11311_s1 + $0x1734] ss:$8 sps:$4 sm:$0xff]  }
 0x29b   :  { %5594 = vmatpush1.bf16.msra.mxu1 %v8283_v42  ;;  %v8361_v42 = vld [vmem:[%s11311_s1 + $0xb30] ss:$8 sps:$4 sm:$0xff]  }
 0x29c   :  { %6086 = vmatpush1.bf16.msra.mxu0 %v8286_v61  ;;  %5595 = vmatprep.subr.bf16.mxu1 %v8291_v62  ;;  %v8364_v61 = vld [vmem:[%s11311_s1 + $0x1730] ss:$8 sps:$4 sm:$0xff]   ;;  %v8369_v62 = vld [vmem:[%s11311_s1 + $0xb44] ss:$8 sps:$4 sm:$0xff]  }
 0x29d   :  { %6087 = vmatprep.subr.bf16.mxu0 %v8294_v63  ;;  %v8372_v63 = vld [vmem:[%s11311_s1 + $0x1744] ss:$8 sps:$4 sm:$0xff]  }
 0x29f   :  { %5596 = vmatpush1.bf16.msra.mxu1 %v8289_v0  ;;  %v8367_v0 = vld [vmem:[%s11311_s1 + $0xb40] ss:$8 sps:$4 sm:$0xff]  }
 0x2a0   :  { %6088 = vmatpush1.bf16.msra.mxu0 %v8292_v1  ;;  %5597 = vmatprep.subr.bf16.mxu1 %v8297_v2  ;;  %v8370_v1 = vld [vmem:[%s11311_s1 + $0x1740] ss:$8 sps:$4 sm:$0xff]   ;;  %v8375_v2 = vld [vmem:[%s11311_s1 + $0xb54] ss:$8 sps:$4 sm:$0xff]  }
 0x2a1   :  { %6089 = vmatprep.subr.bf16.mxu0 %v8300_v3  ;;  %v8378_v3 = vld [vmem:[%s11311_s1 + $0x1754] ss:$8 sps:$4 sm:$0xff]  }
 0x2a3   :  { %5598 = vmatpush1.bf16.msra.mxu1 %v8295_v19  ;;  %v8373_v19 = vld [vmem:[%s11311_s1 + $0xb50] ss:$8 sps:$4 sm:$0xff]  }
 0x2a4   :  { %6090 = vmatpush1.bf16.msra.mxu0 %v8298_v14  ;;  %5599 = vmatprep.subr.bf16.mxu1 %v8303_v4  ;;  %v8376_v14 = vld [vmem:[%s11311_s1 + $0x1750] ss:$8 sps:$4 sm:$0xff]   ;;  %v8381_v4 = vld [vmem:[%s11311_s1 + $0xb64] ss:$8 sps:$4 sm:$0xff]  }
 0x2a5   :  { %6091 = vmatprep.subr.bf16.mxu0 %v8306_v48  ;;  %v8384_v48 = vld [vmem:[%s11311_s1 + $0x1764] ss:$8 sps:$4 sm:$0xff]  }
 0x2a7   :  { %5600 = vmatpush1.bf16.msra.mxu1 %v8301_v6  ;;  %v8379_v6 = vld [vmem:[%s11311_s1 + $0xb60] ss:$8 sps:$4 sm:$0xff]  }
 0x2a8   :  { %6092 = vmatpush1.bf16.msra.mxu0 %v8304_v37  ;;  %5601 = vmatprep.subr.bf16.mxu1 %v8309_v45  ;;  %v8382_v37 = vld [vmem:[%s11311_s1 + $0x1760] ss:$8 sps:$4 sm:$0xff]   ;;  %v8387_v45 = vld [vmem:[%s11311_s1 + $0xb74] ss:$8 sps:$4 sm:$0xff]  }
 0x2a9   :  { %6093 = vmatprep.subr.bf16.mxu0 %v8312_v7  ;;  %v8390_v7 = vld [vmem:[%s11311_s1 + $0x1774] ss:$8 sps:$4 sm:$0xff]  }
 0x2ab   :  { %5602 = vmatpush1.bf16.msra.mxu1 %v8307_v54  ;;  %v8385_v54 = vld [vmem:[%s11311_s1 + $0xb70] ss:$8 sps:$4 sm:$0xff]  }
 0x2ac   :  { %6094 = vmatpush1.bf16.msra.mxu0 %v8310_v9  ;;  %5603 = vmatprep.subr.bf16.mxu1 %v8315_v10  ;;  %v8388_v9 = vld [vmem:[%s11311_s1 + $0x1770] ss:$8 sps:$4 sm:$0xff]   ;;  %v8393_v10 = vld [vmem:[%s11311_s1 + $0xb84] ss:$8 sps:$4 sm:$0xff]  }
 0x2ad   :  { %6095 = vmatprep.subr.bf16.mxu0 %v8318_v13  ;;  %v8396_v13 = vld [vmem:[%s11311_s1 + $0x1784] ss:$8 sps:$4 sm:$0xff]  }
 0x2af   :  { %5604 = vmatpush1.bf16.msra.mxu1 %v8313_v16  ;;  %v8391_v16 = vld [vmem:[%s11311_s1 + $0xb80] ss:$8 sps:$4 sm:$0xff]  }
 0x2b0   :  { %6096 = vmatpush1.bf16.msra.mxu0 %v8316_v53  ;;  %5605 = vmatprep.subr.bf16.mxu1 %v8321_v56  ;;  %v8394_v53 = vld [vmem:[%s11311_s1 + $0x1780] ss:$8 sps:$4 sm:$0xff]   ;;  %v8399_v56 = vld [vmem:[%s11311_s1 + $0xb94] ss:$8 sps:$4 sm:$0xff]  }
 0x2b1   :  { %6097 = vmatprep.subr.bf16.mxu0 %v8324_v21  ;;  %v8402_v21 = vld [vmem:[%s11311_s1 + $0x1794] ss:$8 sps:$4 sm:$0xff]  }
 0x2b3   :  { %5606 = vmatpush1.bf16.msra.mxu1 %v8319_v60  ;;  %v8397_v60 = vld [vmem:[%s11311_s1 + $0xb90] ss:$8 sps:$4 sm:$0xff]  }
 0x2b4   :  { %6098 = vmatpush1.bf16.msra.mxu0 %v8322_v15  ;;  %5607 = vmatprep.subr.bf16.mxu1 %v8327_v24  ;;  %v8400_v15 = vld [vmem:[%s11311_s1 + $0x1790] ss:$8 sps:$4 sm:$0xff]   ;;  %v8405_v24 = vld [vmem:[%s11311_s1 + $0xba4] ss:$8 sps:$4 sm:$0xff]  }
 0x2b5   :  { %6099 = vmatprep.subr.bf16.mxu0 %v8330_v25  ;;  %v8408_v25 = vld [vmem:[%s11311_s1 + $0x17a4] ss:$8 sps:$4 sm:$0xff]  }
 0x2b7   :  { %5608 = vmatpush1.bf16.msra.mxu1 %v8325_v26  ;;  %v8403_v26 = vld [vmem:[%s11311_s1 + $0xba0] ss:$8 sps:$4 sm:$0xff]  }
 0x2b8   :  { %6100 = vmatpush1.bf16.msra.mxu0 %v8328_v27  ;;  %5609 = vmatprep.subr.bf16.mxu1 %v8333_v28  ;;  %v8406_v27 = vld [vmem:[%s11311_s1 + $0x17a0] ss:$8 sps:$4 sm:$0xff]   ;;  %v8411_v28 = vld [vmem:[%s11311_s1 + $0xbb4] ss:$8 sps:$4 sm:$0xff]  }
 0x2b9   :  { %6101 = vmatprep.subr.bf16.mxu0 %v8336_v29  ;;  %v8414_v29 = vld [vmem:[%s11311_s1 + $0x17b4] ss:$8 sps:$4 sm:$0xff]  }
 0x2bb   :  { %5610 = vmatpush1.bf16.msra.mxu1 %v8331_v50  ;;  %v8417_v50 = vld [vmem:[%s11311_s1 + $0xbc4] ss:$8 sps:$4 sm:$0xff]  }
 0x2bc   :  { %6102 = vmatpush1.bf16.msra.mxu0 %v8334_v5  ;;  %5611 = vmatprep.subr.bf16.mxu1 %v8339_v32  ;;  %v8420_v5 = vld [vmem:[%s11311_s1 + $0x17c4] ss:$8 sps:$4 sm:$0xff]   ;;  %v8415_v32 = vld [vmem:[%s11311_s1 + $0xbc0] ss:$8 sps:$4 sm:$0xff]  }
 0x2bd   :  { %6103 = vmatprep.subr.bf16.mxu0 %v8342_v11  ;;  %v8418_v11 = vld [vmem:[%s11311_s1 + $0x17c0] ss:$8 sps:$4 sm:$0xff]  }
 0x2bf   :  { %5612 = vmatpush1.bf16.msra.mxu1 %v8337_v34  ;;  %v8423_v34 = vld [vmem:[%s11311_s1 + $0xbd4] ss:$8 sps:$4 sm:$0xff]  }
 0x2c0   :  { %6104 = vmatpush1.bf16.msra.mxu0 %v8340_v55  ;;  %5622 = vmatprep.subr.bf16.mxu1 %v8345_v8  ;;  %v8426_v55 = vld [vmem:[%s11311_s1 + $0x17d4] ss:$8 sps:$4 sm:$0xff]   ;;  %v8421_v8 = vld [vmem:[%s11311_s1 + $0xbd0] ss:$8 sps:$4 sm:$0xff]  }
 0x2c1   :  { %6114 = vmatprep.subr.bf16.mxu0 %v8348_v49  ;;  %v8424_v49 = vld [vmem:[%s11311_s1 + $0x17d0] ss:$8 sps:$4 sm:$0xff]  }
 0x2c2   :  { %5614 = vmatmul.mubr.bf16.vlgmr.msra.gmra.mrb[0].mxu1 %v329_v39  ;;  %v8427_v39 = vld [vmem:[%s11311_s1 + $0xbe0] ss:$8 sps:$4 sm:$0xff]  }
 0x2c3   :  { %6106 = vmatmul.mubr.bf16.vlgmr.msra.gmra.mrb[0].mxu0 %v353_v40  ;;  %5623 = vmatpush1.bf16.msra.mxu1 %v8343_v41  ;;  %v8430_v40 = vld [vmem:[%s11311_s1 + $0x17e0] ss:$8 sps:$4 sm:$0xff]   ;;  %v8435_v41 = vld [vmem:[%s11311_s1 + $0xbf4] ss:$8 sps:$4 sm:$0xff]  }
 0x2c4   :  { %6115 = vmatpush1.bf16.msra.mxu0 %v8346_v44  ;;  %5624 = vmatprep.subr.bf16.mxu1 %v8351_v36  ;;  %v8438_v44 = vld [vmem:[%s11311_s1 + $0x17f4] ss:$8 sps:$4 sm:$0xff]   ;;  %v11102_v36 = vld.sshfl [vmem:[%s11310_s0 + $0x60] sm:$0x33 pattern:$0x76325410] }
 0x2c5   :  { %6116 = vmatprep.subr.bf16.mxu0 %v8354_v17  ;;  %5654 = vmatprep.mubr.bf16.mxu1 %v332_v20  ;;  %v8433_v17 = vld [vmem:[%s11311_s1 + $0xbf0] ss:$8 sps:$4 sm:$0xff]  }
 0x2c6   :  { %6146 = vmatprep.mubr.bf16.mxu0 %v356_v46  ;;  %v8436_v20 = vld [vmem:[%s11311_s1 + $0x17f0] ss:$8 sps:$4 sm:$0xff]   ;;  %v258_v46 = vcombine.high %v11102_v36, %v11102_v36 }
 0x2c7   :  { %5625 = vmatpush1.bf16.msra.mxu1 %v8349_v47  ;;  %v8443_v47 = vld [vmem:[%s11311_s1 + $0x1804] ss:$8 sps:$4 sm:$0xff]  }
 0x2c8   :  { %6117 = vmatpush1.bf16.msra.mxu0 %v8352_v51  ;;  %5626 = vmatprep.subr.bf16.mxu1 %v8357_v52  ;;  %v331_v51 = vpack.c.bf16 %v10894_v12, %v10894_v12  ;;  %v355_v52 = vpack.c.bf16 %v10897_v33, %v10897_v33  ;;  %v8444_v12 = vld [vmem:[%s11311_s1 + $0x1810] ss:$8 sps:$4 sm:$0xff]   ;;  %v8449_v33 = vld [vmem:[%s11311_s1 + $0x1824] ss:$8 sps:$4 sm:$0xff]  }
 0x2c9   :  { %6118 = vmatprep.subr.bf16.mxu0 %v8360_v22  ;;  %v8441_v22 = vld [vmem:[%s11311_s1 + $0x1800] ss:$8 sps:$4 sm:$0xff]  }
 0x2cb   :  { %5627 = vmatpush1.bf16.msra.mxu1 %v8355_v23  ;;  %v358_v23 = vpack.c.bf16 %v258_v46, %v258_v46  ;;  %v6214_v46 = vld [vmem:[%s11313_s3 + $0x80] sm:$0xff] }
 0x2cc   :  { %6119 = vmatpush1.bf16.msra.mxu0 %v8358_v57  ;;  %5628 = vmatprep.subr.bf16.mxu1 %v8363_v58  ;;  %v8446_v57 = vld [vmem:[%s11311_s1 + $0x1814] ss:$8 sps:$4 sm:$0xff]   ;;  %v8447_v58 = vld [vmem:[%s11311_s1 + $0x1820] ss:$8 sps:$4 sm:$0xff]  }
 0x2cd   :  { %6120 = vmatprep.subr.bf16.mxu0 %v8366_v59  ;;  %v8452_v59 = vld [vmem:[%s11311_s1 + $0x1834] ss:$8 sps:$4 sm:$0xff]  }
 0x2cf   :  { %5629 = vmatpush1.bf16.msra.mxu1 %v8361_v42  ;;  %v8450_v42 = vld [vmem:[%s11311_s1 + $0x1830] ss:$8 sps:$4 sm:$0xff]  }
 0x2d0   :  { %6121 = vmatpush1.bf16.msra.mxu0 %v8364_v61  ;;  %5630 = vmatprep.subr.bf16.mxu1 %v8369_v62  ;;  %v8455_v61 = vld [vmem:[%s11311_s1 + $0x1844] ss:$8 sps:$4 sm:$0xff]   ;;  %v8453_v62 = vld [vmem:[%s11311_s1 + $0x1840] ss:$8 sps:$4 sm:$0xff]  }
 0x2d1   :  { %6122 = vmatprep.subr.bf16.mxu0 %v8372_v63  ;;  %v8458_v63 = vld [vmem:[%s11311_s1 + $0x1854] ss:$8 sps:$4 sm:$0xff]  }
 0x2d3   :  { %5631 = vmatpush1.bf16.msra.mxu1 %v8367_v0  ;;  %v8456_v0 = vld [vmem:[%s11311_s1 + $0x1850] ss:$8 sps:$4 sm:$0xff]  }
 0x2d4   :  { %6123 = vmatpush1.bf16.msra.mxu0 %v8370_v1  ;;  %5632 = vmatprep.subr.bf16.mxu1 %v8375_v2  ;;  %v8461_v1 = vld [vmem:[%s11311_s1 + $0x1864] ss:$8 sps:$4 sm:$0xff]   ;;  %v8459_v2 = vld [vmem:[%s11311_s1 + $0x1860] ss:$8 sps:$4 sm:$0xff]  }
 0x2d5   :  { %6124 = vmatprep.subr.bf16.mxu0 %v8378_v3  ;;  %v8464_v3 = vld [vmem:[%s11311_s1 + $0x1874] ss:$8 sps:$4 sm:$0xff]  }
 0x2d7   :  { %5633 = vmatpush1.bf16.msra.mxu1 %v8373_v19  ;;  %v8462_v19 = vld [vmem:[%s11311_s1 + $0x1870] ss:$8 sps:$4 sm:$0xff]  }
 0x2d8   :  { %6125 = vmatpush1.bf16.msra.mxu0 %v8376_v14  ;;  %5634 = vmatprep.subr.bf16.mxu1 %v8381_v4  ;;  %v8467_v14 = vld [vmem:[%s11311_s1 + $0x1884] ss:$8 sps:$4 sm:$0xff]   ;;  %v8465_v4 = vld [vmem:[%s11311_s1 + $0x1880] ss:$8 sps:$4 sm:$0xff]  }
 0x2d9   :  { %6126 = vmatprep.subr.bf16.mxu0 %v8384_v48  ;;  %v8470_v48 = vld [vmem:[%s11311_s1 + $0x1894] ss:$8 sps:$4 sm:$0xff]  }
 0x2db   :  { %5635 = vmatpush1.bf16.msra.mxu1 %v8379_v6  ;;  %v8468_v6 = vld [vmem:[%s11311_s1 + $0x1890] ss:$8 sps:$4 sm:$0xff]  }
 0x2dc   :  { %6127 = vmatpush1.bf16.msra.mxu0 %v8382_v37  ;;  %5636 = vmatprep.subr.bf16.mxu1 %v8387_v45  ;;  %v8473_v37 = vld [vmem:[%s11311_s1 + $0x18a4] ss:$8 sps:$4 sm:$0xff]   ;;  %v8471_v45 = vld [vmem:[%s11311_s1 + $0x18a0] ss:$8 sps:$4 sm:$0xff]  }
 0x2dd   :  { %6128 = vmatprep.subr.bf16.mxu0 %v8390_v7  ;;  %v8476_v7 = vld [vmem:[%s11311_s1 + $0x18b4] ss:$8 sps:$4 sm:$0xff]  }
 0x2df   :  { %5637 = vmatpush1.bf16.msra.mxu1 %v8385_v54  ;;  %v8474_v54 = vld [vmem:[%s11311_s1 + $0x18b0] ss:$8 sps:$4 sm:$0xff]  }
 0x2e0   :  { %6129 = vmatpush1.bf16.msra.mxu0 %v8388_v9  ;;  %5638 = vmatprep.subr.bf16.mxu1 %v8393_v10  ;;  %v8479_v9 = vld [vmem:[%s11311_s1 + $0x18c4] ss:$8 sps:$4 sm:$0xff]   ;;  %v8477_v10 = vld [vmem:[%s11311_s1 + $0x18c0] ss:$8 sps:$4 sm:$0xff]  }
 0x2e1   :  { %6130 = vmatprep.subr.bf16.mxu0 %v8396_v13  ;;  %v8482_v13 = vld [vmem:[%s11311_s1 + $0x18d4] ss:$8 sps:$4 sm:$0xff]  }
 0x2e3   :  { %5639 = vmatpush1.bf16.msra.mxu1 %v8391_v16  ;;  %v8480_v16 = vld [vmem:[%s11311_s1 + $0x18d0] ss:$8 sps:$4 sm:$0xff]  }
 0x2e4   :  { %6131 = vmatpush1.bf16.msra.mxu0 %v8394_v53  ;;  %5640 = vmatprep.subr.bf16.mxu1 %v8399_v56  ;;  %v8485_v53 = vld [vmem:[%s11311_s1 + $0x18e4] ss:$8 sps:$4 sm:$0xff]   ;;  %v8483_v56 = vld [vmem:[%s11311_s1 + $0x18e0] ss:$8 sps:$4 sm:$0xff]  }
 0x2e5   :  { %6132 = vmatprep.subr.bf16.mxu0 %v8402_v21  ;;  %v8488_v21 = vld [vmem:[%s11311_s1 + $0x18f4] ss:$8 sps:$4 sm:$0xff]  }
 0x2e7   :  { %5641 = vmatpush1.bf16.msra.mxu1 %v8397_v60  ;;  %v8486_v60 = vld [vmem:[%s11311_s1 + $0x18f0] ss:$8 sps:$4 sm:$0xff]  }
 0x2e8   :  { %6133 = vmatpush1.bf16.msra.mxu0 %v8400_v15  ;;  %5642 = vmatprep.subr.bf16.mxu1 %v8405_v24  ;;  %v357_v15 = vpack.c.bf16 %v11102_v36, %v11102_v36  ;;  %v6198_v24 = vld [vmem:[%s11313_s3] sm:$0xff]  ;;  %v6212_v36 = vld [vmem:[%s11313_s3 + $0x70] sm:$0xff] }
 0x2e9   :  { %6134 = vmatprep.subr.bf16.mxu0 %v8408_v25  ;;  %v6199_v25 = vld [vmem:[%s11313_s3 + $0x8] sm:$0xff] }
 0x2eb   :  { %5643 = vmatpush1.bf16.msra.mxu1 %v8403_v26  ;;  %v6200_v26 = vld [vmem:[%s11313_s3 + $0x10] sm:$0xff] }
 0x2ec   :  { %6135 = vmatpush1.bf16.msra.mxu0 %v8406_v27  ;;  %5644 = vmatprep.subr.bf16.mxu1 %v8411_v28  ;;  %v8518_v27 = vmov 0.0|0.0   ;;  %v7142_v28 = vpack.c.bf16 %v6199_v25, %v6198_v24 }
 0x2ed   :  { %6136 = vmatprep.subr.bf16.mxu0 %v8414_v29  ;;  %v6201_v29 = vld [vmem:[%s11313_s3 + $0x18] sm:$0xff] }
 0x2ef   :  { %5645 = vmatpush1.bf16.msra.mxu1 %v8409_v30  ;;  %v7145_v30 = vpack.c.bf16 %v6201_v29, %v6200_v26 }
 0x2f0   :  { %6137 = vmatpush1.bf16.msra.mxu0 %v8412_v31  ;;  %5646 = vmatprep.subr.bf16.mxu1 %v8417_v50  ;;  %v6202_v31 = vld [vmem:[%s11313_s3 + $0x20] sm:$0xff]  ;;  %v6203_v50 = vld [vmem:[%s11313_s3 + $0x28] sm:$0xff] }
 0x2f1   :  { %6138 = vmatprep.subr.bf16.mxu0 %v8420_v5  ;;  %v7148_v5 = vpack.c.bf16 %v6203_v50, %v6202_v31 }
 0x2f3   :  { %5647 = vmatpush1.bf16.msra.mxu1 %v8415_v32  ;;  %v6204_v32 = vld [vmem:[%s11313_s3 + $0x30] sm:$0xff] }
 0x2f4   :  { %6139 = vmatpush1.bf16.msra.mxu0 %v8418_v11  ;;  %5648 = vmatprep.subr.bf16.mxu1 %v8423_v34  ;;  %v6205_v11 = vld [vmem:[%s11313_s3 + $0x38] sm:$0xff] }
 0x2f5   :  { %6140 = vmatprep.subr.bf16.mxu0 %v8426_v55  ;;  %v7151_v34 = vpack.c.bf16 %v6205_v11, %v6204_v32  ;;  %v6206_v55 = vld [vmem:[%s11313_s3 + $0x40] sm:$0xff] }
 0x2f7   :  { %5649 = vmatpush1.bf16.msra.mxu1 %v8421_v8  ;;  %v6207_v8 = vld [vmem:[%s11313_s3 + $0x48] sm:$0xff] }
 0x2f8   :  { %6141 = vmatpush1.bf16.msra.mxu0 %v8424_v49  ;;  %5650 = vmatprep.subr.bf16.mxu1 %v8429_v35  ;;  %v7154_v49 = vpack.c.bf16 %v6207_v8, %v6206_v55  ;;  %v6208_v35 = vld [vmem:[%s11313_s3 + $0x50] sm:$0xff] }
 0x2f9   :  { %6142 = vmatprep.subr.bf16.mxu0 %v8432_v18  ;;  %v6209_v18 = vld [vmem:[%s11313_s3 + $0x58] sm:$0xff] }
 0x2fb   :  { %5651 = vmatpush1.bf16.msra.mxu1 %v8427_v39  ;;  %v7157_v39 = vpack.c.bf16 %v6209_v18, %v6208_v35 }
 0x2fc   :  { %6143 = vmatpush1.bf16.msra.mxu0 %v8430_v40  ;;  %5652 = vmatprep.subr.bf16.mxu1 %v8435_v41  ;;  %v6210_v40 = vld [vmem:[%s11313_s3 + $0x60] sm:$0xff]  ;;  %v6211_v41 = vld [vmem:[%s11313_s3 + $0x68] sm:$0xff] }
 0x2fd   :  { %6144 = vmatprep.subr.bf16.mxu0 %v8438_v44  ;;  %v7160_v44 = vpack.c.bf16 %v6211_v41, %v6210_v40 }
 0x2ff   :  { %5653 = vmatpush1.bf16.msra.mxu1 %v8433_v17  ;;  %v6213_v17 = vld [vmem:[%s11313_s3 + $0x78] sm:$0xff] }
 0x300   :  { %6145 = vmatpush1.bf16.msra.mxu0 %v8436_v20  ;;  %7141 = vmatprep.subr.bf16.mxu1 %v8518_v27  ;;  %v7163_v20 = vpack.c.bf16 %v6213_v17, %v6212_v36 }
 0x301   :  { %6155 = vmatprep.subr.bf16.mxu0 %v8443_v47  ;;  %v6215_v47 = vld [vmem:[%s11313_s3 + $0x88] sm:$0xff] }
 0x302   :  { %5655 = vmatmul.mubr.bf16.vlgmr.msra.gmra.mrb[0].mxu1 %v331_v51  ;;  %v7166_v51 = vpack.c.bf16 %v6215_v47, %v6214_v46 }
 0x303   :  { %6147 = vmatmul.mubr.bf16.vlgmr.msra.gmra.mrb[0].mxu0 %v355_v52  ;;  %7143 = vmatpush1.bf16.msra.mxu1 %v7142_v28  ;;  %v6216_v52 = vld [vmem:[%s11313_s3 + $0x90] sm:$0xff] }
 0x304   :  { %6156 = vmatpush1.bf16.msra.mxu0 %v8441_v22  ;;  %6187 = vmatprep.mubr.bf16.mxu0 %v358_v23  ;;  %v6217_v22 = vld [vmem:[%s11313_s3 + $0x98] sm:$0xff] }
 0x305   :  { %6157 = vmatprep.subr.bf16.mxu0 %v8446_v57  ;;  %7144 = vmatprep.subr.bf16.mxu1 %v8518_v27  ;;  %v7169_v23 = vpack.c.bf16 %v6217_v22, %v6216_v52  ;;  %v6218_v57 = vld [vmem:[%s11313_s3 + $0xa0] sm:$0xff] }
 0x307   :  { %7146 = vmatpush1.bf16.msra.mxu1 %v7145_v30 }
 0x308   :  { %6158 = vmatpush1.bf16.msra.mxu0 %v8444_v12  ;;  %7147 = vmatprep.subr.bf16.mxu1 %v8518_v27  ;;  %v6219_v12 = vld [vmem:[%s11313_s3 + $0xa8] sm:$0xff] }
 0x309   :  { %6159 = vmatprep.subr.bf16.mxu0 %v8449_v33  ;;  %v7172_v33 = vpack.c.bf16 %v6219_v12, %v6218_v57 }
 0x30b   :  { %7149 = vmatpush1.bf16.msra.mxu1 %v7148_v5 }
 0x30c   :  { %6160 = vmatpush1.bf16.msra.mxu0 %v8447_v58  ;;  %7150 = vmatprep.subr.bf16.mxu1 %v8518_v27  ;;  %v6220_v58 = vld [vmem:[%s11313_s3 + $0xb0] sm:$0xff] }
 0x30d   :  { %6161 = vmatprep.subr.bf16.mxu0 %v8452_v59  ;;  %v6221_v59 = vld [vmem:[%s11313_s3 + $0xb8] sm:$0xff] }
 0x30f   :  { %7152 = vmatpush1.bf16.msra.mxu1 %v7151_v34 }
 0x310   :  { %6162 = vmatpush1.bf16.msra.mxu0 %v8450_v42  ;;  %7153 = vmatprep.subr.bf16.mxu1 %v8518_v27  ;;  %v7175_v42 = vpack.c.bf16 %v6221_v59, %v6220_v58 }
 0x311   :  { %6163 = vmatprep.subr.bf16.mxu0 %v8455_v61  ;;  %v6222_v61 = vld [vmem:[%s11313_s3 + $0xc0] sm:$0xff] }
 0x313   :  { %7155 = vmatpush1.bf16.msra.mxu1 %v7154_v49 }
 0x314   :  { %6164 = vmatpush1.bf16.msra.mxu0 %v8453_v62  ;;  %7156 = vmatprep.subr.bf16.mxu1 %v8518_v27  ;;  %v8519_v62 = vmov 0.0  }
 0x315   :  { %6165 = vmatprep.subr.bf16.mxu0 %v8458_v63 }
 0x317   :  { %7158 = vmatpush1.bf16.msra.mxu1 %v7157_v39 }
 0x318   :  { %6166 = vmatpush1.bf16.msra.mxu0 %v8456_v0  ;;  %7159 = vmatprep.subr.bf16.mxu1 %v8518_v27 }
 0x319   :  { %6167 = vmatprep.subr.bf16.mxu0 %v8461_v1 }
 0x31b   :  { %7161 = vmatpush1.bf16.msra.mxu1 %v7160_v44 }
 0x31c   :  { %6168 = vmatpush1.bf16.msra.mxu0 %v8459_v2  ;;  %7162 = vmatprep.subr.bf16.mxu1 %v8518_v27 }
 0x31d   :  { %6169 = vmatprep.subr.bf16.mxu0 %v8464_v3  ;;  %v1163_v3 = vsub.s32 0, %v8669_v43 }
 0x31f   :  { %7164 = vmatpush1.bf16.msra.mxu1 %v7163_v20 }
 0x320   :  { %6170 = vmatpush1.bf16.msra.mxu0 %v8462_v19  ;;  %7165 = vmatprep.subr.bf16.mxu1 %v8518_v27  ;;  %v1159_v19 = vld [vmem:[%s11312_s2] sm:$0x3] }
 0x321   :  { %6171 = vmatprep.subr.bf16.mxu0 %v8467_v14  ;;  %v1167_v14 = vsub.s32 1, %v8669_v43  ;;  %v7139_v43 = vld [vmem:[%s11314_s4] ss:$0 sm:$0xff]  ;;  %s6330_s4 = sshll.u32 %s8520_s14, 4  ;;  %s6331_s4 = int_to_ptr.vmem [resolvable:$true] %s6330_s4 }
 0x322   :  { %s8493_s15 = scalar_lea.vmem %s6331_s4, 32  ;;  %p8498_p1 = scmp.lt.s32.totalorder %s6331_s4, %s6331_s4 }
 0x323   :  { %7167 = vmatpush1.bf16.msra.mxu1 %v7166_v51  ;;  %p8494_p0 = scmp.ne.s32.totalorder %s6331_s4, %s8493_s15  ;;  %p8499_p2 = scmp.lt.s32.totalorder %s8493_s15, %s8493_s15 }
 0x324   :  { %6172 = vmatpush1.bf16.msra.mxu0 %v8465_v4  ;;  %7168 = vmatprep.subr.bf16.mxu1 %v8518_v27  ;;  %v1164_v4 = vrot.slane %v1159_v19, %v1163_v3 }
 0x325   :  { %6173 = vmatprep.subr.bf16.mxu0 %v8470_v48  ;;  %v1168_v48 = vrot.slane %v1159_v19, %v1167_v14  ;;  %p8500_p3 = por %p8499_p2, %p8498_p1 }
 0x327   :  { %7170 = vmatpush1.bf16.msra.mxu1 %v7169_v23  ;;  %p8501_p4 = pnand %p8500_p3, %p8494_p0 }
 0x328   :  { %6174 = vmatpush1.bf16.msra.mxu0 %v8468_v6  ;;  %7171 = vmatprep.subr.bf16.mxu1 %v8518_v27 }
 0x329   :  { %6175 = vmatprep.subr.bf16.mxu0 %v8473_v37 }
 0x32b   :  { %7173 = vmatpush1.bf16.msra.mxu1 %v7172_v33 }
 0x32c   :  { %6176 = vmatpush1.bf16.msra.mxu0 %v8471_v45  ;;  %7174 = vmatprep.subr.bf16.mxu1 %v8518_v27 }
 0x32d   :  { %6177 = vmatprep.subr.bf16.mxu0 %v8476_v7 }
 0x32f   :  { %7176 = vmatpush1.bf16.msra.mxu1 %v7175_v42 }
 0x330   :  { %6178 = vmatpush1.bf16.msra.mxu0 %v8474_v54  ;;  %6282 = vmatprep.subr.mxu1 %v8519_v62 }
 0x331   :  { %6179 = vmatprep.subr.bf16.mxu0 %v8479_v9 }
 0x333   :  { %6283 = vmatpush1.msra.mxu1 %v6222_v61 }
 0x334   :  { %6180 = vmatpush1.bf16.msra.mxu0 %v8477_v10 }
 0x335   :  { %6181 = vmatprep.subr.bf16.mxu0 %v8482_v13 }
 0x338   :  { %6182 = vmatpush1.bf16.msra.mxu0 %v8480_v16 }
 0x339   :  { %6183 = vmatprep.subr.bf16.mxu0 %v8485_v53 }
 0x33c   :  { %6184 = vmatpush1.bf16.msra.mxu0 %v8483_v56  ;;  %v6305_v56 = vand.u32 127, %v51_v38 }
 0x33d   :  { %6185 = vmatprep.subr.bf16.mxu0 %v8488_v21 }
 0x33e   :  { %vm6306_vm1 = vcmp.lt.s32.totalorder %v6305_v56, 2  ;;  %vm6321_vm3 = vcmp.eq.s32.totalorder %v6305_v56, 2 }
 0x340   :  { %6186 = vmatpush1.bf16.msra.mxu0 %v8486_v60 }
 0x343   :  { %6188 = vmatmul.mubr.bf16.vlgmr.msra.gmra.mrb[0].mxu0 %v357_v15 }
 0x3d5   :  { %v5656_v63 = vpop.f32.mrb[0].mxu1 }
 0x3d6   :  { %v5658_v0 = vpop.f32.mrb[1].mxu1  ;;  %v7177_v6 = vadd.f32 %v5656_v63, %v1164_v4 }
 0x3d7   :  { %v5660_v1 = vpop.f32.mrb[2].mxu1  ;;  %v7179_v37 = vadd.f32 %v5658_v0, %v1168_v48 }
 0x3d8   :  { %v5661_v2 = vpop.f32.mrb[3].mxu1 }
 0x416   :  { %v6189_v45 = vpop.f32.mrb[0].mxu0 }
 0x417   :  { %v7178_v7 = vadd.f32 %v7177_v6, %v6189_v45  ;;  %v6191_v54 = vpop.f32.mrb[1].mxu0 }
 0x418   :  { %v7180_v9 = vadd.f32 %v7179_v37, %v6191_v54  ;;  %v6193_v10 = vpop.f32.mrb[2].mxu0 }
 0x419   :  { %v6194_v13 = vpop.f32.mrb[3].mxu0  ;;  %v6196_v53 = vmax.f32 %v7178_v7, 0.0 }
 0x41a   :  { %v6197_v16 = vmax.f32 %v7180_v9, 0.0 }
 0x41c   :  { %7140 = vmatprep.mubr.msk.f32.mxu1 %vm6230_vm0, %v6197_v16 }
 0x41d   :  { %6299 = vmatmul.mubr.f32.vlgmr.msra.gmra.mrb[4].mxu1 %v6196_v53 }
 0x4f0   :  { %v6300_v21 = vpop.f32.mrb[4].mxu1 }
 0x4f1   :  { %v6301_v60 = vadd.f32 %v7139_v43, %v6300_v21  ;;  %v6302_v15 = vpop.f32.mrb[5].mxu1 }
 0x4f3   :  { %v6307_v24 = vsel %vm6306_vm1, %v6301_v60, -1e+30 }
 0x4f4   :  { %v6309_v25 = vsel %vm6308_vm2, %v6307_v24, -inf }
 0x4f5   :  { %6310 = vmax.xlane.f32.xlu0 %v6309_v25 }
 0x582   :  { %v6311_v26 = vpop.xlane.xlu0 %6310 }
 0x583   :  { %v6312_v27 = vsub.f32 %v6301_v60, %v6311_v26 }
 0x585   :  { %v6313_v28 = vmul.f32 1.442695, %v6312_v27 }
 0x587   :  { %8489 = vpow2.f32 %v6313_v28 }
 0x591   :  { %v8490_v29 = vpop.eup %8489 }
 0x592   :  { %v6315_v30 = vsel %vm6306_vm1, %v8490_v29, 0.0 }
 0x593   :  { %v6316_v31 = vsel %vm6308_vm2, %v6315_v30, 0.0 }
 0x594   :  { %6317 = vadd.xlane.f32.xlu0 %v6316_v31 }
 0x621   :  { %v6318_v38 = vpop.xlane.xlu0 %6317 }
 0x622   :  { %8491 = vrcp.f32 %v6318_v38 }
 0x62c   :  { %v8492_v50 = vpop.eup %8491 }
 0x62d   :  { %v6320_v5 = vmul.f32 %v8492_v50, %v6315_v30 }
 0x62f   :  { %v6322_v32 = vsel %vm6321_vm3, %v6301_v60, %v6320_v5 }
 0x630   :  { %6323 = vst [vmem:[#allocation2] sm:$0x3] %v6322_v32 }
 0x631   :  { %8504 = shalt.err (!%p8501_p4)
}
 0x632   :  { %s8505_s18 = scalar_lea.hbm %s11315_s5, 32 }
 0x633   :  { %p8506_p5 = scmp.ne.s32.totalorder %s11315_s5, %s8505_s18  ;;  %p8509_p6 = scmp.lt.u32.totalorder %s8505_s18, %s11315_s5 }
 0x635   :  { %p8511_p7 = pnand %p8509_p6, %p8506_p5 }
 0x637   :  { %8514 = shalt.err (!%p8511_p7)
}
 0x638   :  { %6333 = dma.vmem_to_hbm [thread:$0]  %s6331_s4, 32, %s11315_s5, [#allocation3]  }
 0x639   :  { %8515 = dma.done.wait [#allocation3], 32  }
 0x63a   :  { %8516 = vsyncadd [#allocation3], 4294967264 }
 0x63b   :  { %6337 = vsyncpa [#allocation3], 1 }

</bundles_post_ra>
